<compile_context>
chip_gen: v7x
topology: tpu7x:2x2x1
jax: 0.10.0
libtpu: 0.0.40
codegen_flags: <defaults>
</compile_context>

<pallas_src>
import functools

import jax
import jax.numpy as jnp
from jax.experimental import pallas as pl
from jax.experimental.pallas import tpu as pltpu


LAYER_DIMS = [561, 526, 33, 545, 808, 97, 1]          # fc1..fc7 output dims


def _round_up(x, m):
    return (x + m - 1) // m * m


PADDED_DIMS = [_round_up(d, 128) for d in LAYER_DIMS]  # [640,640,128,640,896,128,128]


def _mlp_kernel(x_ref,
                w1, b1, w2, b2, w3, b3, w4, b4, w5, b5, w6, b6, w7, b7,
                o_ref):
    """Entire MLP forward for one (TB, F_pad) batch tile; weights VMEM-resident."""

    def dense(h_f32, w_ref, b_ref, relu=True):
        # bf16 operands into the MXU, f32 accumulation, f32 bias-add / ReLU.
        y = jnp.dot(h_f32.astype(w_ref.dtype), w_ref[...],
                    preferred_element_type=jnp.float32)
        y = y + b_ref[...]
        return jnp.maximum(y, 0.0) if relu else y

    h = x_ref[...]                      # f32 [TB, F_pad]
    h = dense(h, w1, b1)                # fc1 + relu
    h = dense(h, w2, b2)                # fc2 + relu
    # dropout (eval mode) -> identity
    h = dense(h, w3, b3)                # fc3 + relu
    h = dense(h, w4, b4)                # fc4 + relu
    # dropout (eval mode) -> identity
    h = dense(h, w5, b5)                # fc5 + relu
    h = dense(h, w6, b6)                # fc6 + relu
    h = dense(h, w7, b7, relu=False)    # fc7 (no activation)
    o_ref[...] = h                      # lane-dense [TB, 128] store; col 0 is real


@functools.partial(jax.jit, static_argnames=("block_b",))
def pitch_velocity_forward(x, padded_params, block_b=128):
    """x: [B, num_features] f32.  padded_params: list of (W_bf16 [in_pad,out_pad],
    b_f32 [1,out_pad]) produced by pad_and_cast_params."""
    B, F = x.shape
    F_pad = padded_params[0][0].shape[0]
    out_pad = padded_params[-1][0].shape[1]

    # Batch tile: multiple of 8 sublanes, capped at block_b; pad B up to it.
    tb = min(block_b, _round_up(B, 8))
    B_pad = _round_up(B, tb)
    x_p = jnp.pad(x, ((0, B_pad - B), (0, F_pad - F)))

    flat = []
    in_specs = [pl.BlockSpec((tb, F_pad), lambda i: (i, 0))]
    for (w, b) in padded_params:
        flat.extend([w, b])
        # Constant block index -> fetched once, stays resident in VMEM.
        in_specs.append(pl.BlockSpec(w.shape, lambda i: (0, 0)))
        in_specs.append(pl.BlockSpec(b.shape, lambda i: (0, 0)))

    out = pl.pallas_call(
        _mlp_kernel,
        out_shape=jax.ShapeDtypeStruct((B_pad, out_pad), jnp.float32),
        grid=(B_pad // tb,),
        in_specs=in_specs,
        out_specs=pl.BlockSpec((tb, out_pad), lambda i: (i, 0)),
        compiler_params=pltpu.CompilerParams(
            dimension_semantics=("parallel",),
            # ~2.7 MB bf16 weights (double-buffered) + x/out tiles + f32
            # intermediates: << 32 MiB, safe on v5e/v6e/v7x.
            vmem_limit_bytes=32 * 1024 * 1024,
        ),
    )(x_p, *flat)
    return out[:B, :1]


def init_params(key, num_features):
    """Unpadded f32 params matching PyTorch nn.Linear shapes (W stored [in,out])."""
    params = []
    in_dim = num_features
    for out_dim in LAYER_DIMS:
        key, kw, kb = jax.random.split(key, 3)
        bound = 1.0 / jnp.sqrt(jnp.float32(in_dim))
        w = jax.random.uniform(kw, (in_dim, out_dim), jnp.float32,
                               minval=-bound, maxval=bound)
        b = jax.random.uniform(kb, (1, out_dim), jnp.float32,
                               minval=-bound, maxval=bound)
        params.append((w, b))
        in_dim = out_dim
    return params


def pad_and_cast_params(params, num_features):
    """Zero-pad every layer to 128-multiples; weights -> bf16, biases stay f32."""
    padded = []
    in_pad = _round_up(num_features, 128)
    for (w, b), out_pad in zip(params, PADDED_DIMS):
        in_dim, out_dim = w.shape
        wp = jnp.pad(w.astype(jnp.bfloat16),
                     ((0, in_pad - in_dim), (0, out_pad - out_dim)))
        bp = jnp.pad(b, ((0, 0), (0, out_pad - out_dim)))
        padded.append((wp, bp))
        in_pad = out_pad
    return padded


def reference_forward_f32(x, params):
    """Pure-JAX f32 reference (eval-mode dropout = identity)."""
    h = x
    for i, (w, b) in enumerate(params):
        h = h @ w + b
        if i < len(params) - 1:
            h = jnp.maximum(h, 0.0)
    return h


def reference_forward_mixed(x, params):
    """Pure-JAX reference mirroring the kernel's bf16-in / f32-accumulate path."""
    h = x.astype(jnp.float32)
    for i, (w, b) in enumerate(params):
        y = jnp.dot(h.astype(jnp.bfloat16), w.astype(jnp.bfloat16),
                    preferred_element_type=jnp.float32) + b
        h = jnp.maximum(y, 0.0) if i < len(params) - 1 else y
    return h


if __name__ == "__main__":
    key = jax.random.PRNGKey(0)
    k_x, k_p = jax.random.split(key)

    batch = 8
    num_features = 16
    x = jax.random.normal(k_x, (batch, num_features), jnp.float32)
    params = init_params(k_p, num_features)
    padded_params = pad_and_cast_params(params, num_features)

    out = pitch_velocity_forward(x, padded_params)
    out = jax.block_until_ready(out)
    assert out.shape == (batch, 1), out.shape

    # Tight check vs a reference that uses the same mixed-precision recipe.
    ref_mixed = reference_forward_mixed(x, params)
    assert jnp.allclose(out, ref_mixed, atol=1e-2, rtol=1e-2), (
        f"mixed-precision mismatch: max abs err "
        f"{jnp.max(jnp.abs(out - ref_mixed))}")

    # Loose sanity check vs the full-f32 reference (bf16 weights lose ~1% rel).
    ref_f32 = reference_forward_f32(x, params)
    assert jnp.allclose(out, ref_f32, atol=0.1, rtol=0.1), (
        f"f32-reference mismatch: max abs err {jnp.max(jnp.abs(out - ref_f32))}")

    print("KERNEL_OK")
</pallas_src>

<mosaic_0001>
module attributes {stable_mosaic.version = 11 : i64} {
  func.func @_mlp_kernel(%arg0: i32, %arg1: memref<8x128xf32, #tpu.memory_space<vmem>>, %arg2: memref<128x640xbf16, #tpu.memory_space<vmem>>, %arg3: memref<1x640xf32, #tpu.memory_space<vmem>>, %arg4: memref<640x640xbf16, #tpu.memory_space<vmem>>, %arg5: memref<1x640xf32, #tpu.memory_space<vmem>>, %arg6: memref<640x128xbf16, #tpu.memory_space<vmem>>, %arg7: memref<1x128xf32, #tpu.memory_space<vmem>>, %arg8: memref<128x640xbf16, #tpu.memory_space<vmem>>, %arg9: memref<1x640xf32, #tpu.memory_space<vmem>>, %arg10: memref<640x896xbf16, #tpu.memory_space<vmem>>, %arg11: memref<1x896xf32, #tpu.memory_space<vmem>>, %arg12: memref<896x128xbf16, #tpu.memory_space<vmem>>, %arg13: memref<1x128xf32, #tpu.memory_space<vmem>>, %arg14: memref<128x128xbf16, #tpu.memory_space<vmem>>, %arg15: memref<1x128xf32, #tpu.memory_space<vmem>>, %arg16: memref<8x128xf32, #tpu.memory_space<vmem>>) attributes {dimension_semantics = [#tpu.dimension_semantics<parallel>], iteration_bounds = array<i64: 1>, scalar_prefetch = 0 : i64, scratch_operands = 0 : i64, tpu.core_type = #tpu.core_type<tc>, window_params = [{transform_indices = @transform_0, window_bounds = array<i64: 8, 128>}, {pipeline_mode = #tpu.pipeline_mode<synchronous>, transform_indices = @transform_1, window_bounds = array<i64: 128, 640>}, {pipeline_mode = #tpu.pipeline_mode<synchronous>, transform_indices = @transform_2, window_bounds = array<i64: 1, 640>}, {pipeline_mode = #tpu.pipeline_mode<synchronous>, transform_indices = @transform_3, window_bounds = array<i64: 640, 640>}, {pipeline_mode = #tpu.pipeline_mode<synchronous>, transform_indices = @transform_4, window_bounds = array<i64: 1, 640>}, {pipeline_mode = #tpu.pipeline_mode<synchronous>, transform_indices = @transform_5, window_bounds = array<i64: 640, 128>}, {pipeline_mode = #tpu.pipeline_mode<synchronous>, transform_indices = @transform_6, window_bounds = array<i64: 1, 128>}, {pipeline_mode = #tpu.pipeline_mode<synchronous>, transform_indices = @transform_7, window_bounds = array<i64: 128, 640>}, {pipeline_mode = #tpu.pipeline_mode<synchronous>, transform_indices = @transform_8, window_bounds = array<i64: 1, 640>}, {pipeline_mode = #tpu.pipeline_mode<synchronous>, transform_indices = @transform_9, window_bounds = array<i64: 640, 896>}, {pipeline_mode = #tpu.pipeline_mode<synchronous>, transform_indices = @transform_10, window_bounds = array<i64: 1, 896>}, {pipeline_mode = #tpu.pipeline_mode<synchronous>, transform_indices = @transform_11, window_bounds = array<i64: 896, 128>}, {pipeline_mode = #tpu.pipeline_mode<synchronous>, transform_indices = @transform_12, window_bounds = array<i64: 1, 128>}, {pipeline_mode = #tpu.pipeline_mode<synchronous>, transform_indices = @transform_13, window_bounds = array<i64: 128, 128>}, {pipeline_mode = #tpu.pipeline_mode<synchronous>, transform_indices = @transform_14, window_bounds = array<i64: 1, 128>}, {transform_indices = @transform_15, window_bounds = array<i64: 8, 128>}]} {
    %c0 = arith.constant 0 : index
    %c0_0 = arith.constant 0 : index
    %0 = vector.load %arg1[%c0, %c0_0] : memref<8x128xf32, #tpu.memory_space<vmem>>, vector<8x128xf32>
    %1 = arith.truncf %0 : vector<8x128xf32> to vector<8x128xbf16>
    %c0_1 = arith.constant 0 : index
    %c0_2 = arith.constant 0 : index
    %2 = vector.load %arg2[%c0_1, %c0_2] : memref<128x640xbf16, #tpu.memory_space<vmem>>, vector<128x640xbf16>
    %cst = arith.constant dense<0.000000e+00> : vector<8x640xf32>
    %3 = tpu.matmul %1, %2, %cst {dimension_numbers = #tpu.dot_dimension_numbers<[1], [0], [0], [1], [0, 0, 1, 1], [], []>} : vector<8x128xbf16>, vector<128x640xbf16>, vector<8x640xf32> -> vector<8x640xf32>
    %c0_3 = arith.constant 0 : index
    %c0_4 = arith.constant 0 : index
    %4 = vector.load %arg3[%c0_3, %c0_4] : memref<1x640xf32, #tpu.memory_space<vmem>>, vector<1x640xf32>
    %5 = vector.broadcast %4 : vector<1x640xf32> to vector<8x640xf32>
    %6 = arith.addf %3, %5 : vector<8x640xf32>
    %cst_5 = arith.constant 0.000000e+00 : f32
    %7 = vector.broadcast %cst_5 : f32 to vector<8x640xf32>
    %8 = arith.maximumf %6, %7 : vector<8x640xf32>
    %9 = arith.truncf %8 : vector<8x640xf32> to vector<8x640xbf16>
    %c0_6 = arith.constant 0 : index
    %c0_7 = arith.constant 0 : index
    %10 = vector.load %arg4[%c0_6, %c0_7] : memref<640x640xbf16, #tpu.memory_space<vmem>>, vector<640x640xbf16>
    %cst_8 = arith.constant dense<0.000000e+00> : vector<8x640xf32>
    %11 = tpu.matmul %9, %10, %cst_8 {dimension_numbers = #tpu.dot_dimension_numbers<[1], [0], [0], [1], [0, 0, 1, 1], [], []>} : vector<8x640xbf16>, vector<640x640xbf16>, vector<8x640xf32> -> vector<8x640xf32>
    %c0_9 = arith.constant 0 : index
    %c0_10 = arith.constant 0 : index
    %12 = vector.load %arg5[%c0_9, %c0_10] : memref<1x640xf32, #tpu.memory_space<vmem>>, vector<1x640xf32>
    %13 = vector.broadcast %12 : vector<1x640xf32> to vector<8x640xf32>
    %14 = arith.addf %11, %13 : vector<8x640xf32>
    %cst_11 = arith.constant 0.000000e+00 : f32
    %15 = vector.broadcast %cst_11 : f32 to vector<8x640xf32>
    %16 = arith.maximumf %14, %15 : vector<8x640xf32>
    %17 = arith.truncf %16 : vector<8x640xf32> to vector<8x640xbf16>
    %c0_12 = arith.constant 0 : index
    %c0_13 = arith.constant 0 : index
    %18 = vector.load %arg6[%c0_12, %c0_13] : memref<640x128xbf16, #tpu.memory_space<vmem>>, vector<640x128xbf16>
    %cst_14 = arith.constant dense<0.000000e+00> : vector<8x128xf32>
    %19 = tpu.matmul %17, %18, %cst_14 {dimension_numbers = #tpu.dot_dimension_numbers<[1], [0], [0], [1], [0, 0, 1, 1], [], []>} : vector<8x640xbf16>, vector<640x128xbf16>, vector<8x128xf32> -> vector<8x128xf32>
    %c0_15 = arith.constant 0 : index
    %c0_16 = arith.constant 0 : index
    %20 = vector.load %arg7[%c0_15, %c0_16] : memref<1x128xf32, #tpu.memory_space<vmem>>, vector<1x128xf32>
    %21 = vector.broadcast %20 : vector<1x128xf32> to vector<8x128xf32>
    %22 = arith.addf %19, %21 : vector<8x128xf32>
    %cst_17 = arith.constant 0.000000e+00 : f32
    %23 = vector.broadcast %cst_17 : f32 to vector<8x128xf32>
    %24 = arith.maximumf %22, %23 : vector<8x128xf32>
    %25 = arith.truncf %24 : vector<8x128xf32> to vector<8x128xbf16>
    %c0_18 = arith.constant 0 : index
    %c0_19 = arith.constant 0 : index
    %26 = vector.load %arg8[%c0_18, %c0_19] : memref<128x640xbf16, #tpu.memory_space<vmem>>, vector<128x640xbf16>
    %cst_20 = arith.constant dense<0.000000e+00> : vector<8x640xf32>
    %27 = tpu.matmul %25, %26, %cst_20 {dimension_numbers = #tpu.dot_dimension_numbers<[1], [0], [0], [1], [0, 0, 1, 1], [], []>} : vector<8x128xbf16>, vector<128x640xbf16>, vector<8x640xf32> -> vector<8x640xf32>
    %c0_21 = arith.constant 0 : index
    %c0_22 = arith.constant 0 : index
    %28 = vector.load %arg9[%c0_21, %c0_22] : memref<1x640xf32, #tpu.memory_space<vmem>>, vector<1x640xf32>
    %29 = vector.broadcast %28 : vector<1x640xf32> to vector<8x640xf32>
    %30 = arith.addf %27, %29 : vector<8x640xf32>
    %cst_23 = arith.constant 0.000000e+00 : f32
    %31 = vector.broadcast %cst_23 : f32 to vector<8x640xf32>
    %32 = arith.maximumf %30, %31 : vector<8x640xf32>
    %33 = arith.truncf %32 : vector<8x640xf32> to vector<8x640xbf16>
    %c0_24 = arith.constant 0 : index
    %c0_25 = arith.constant 0 : index
    %34 = vector.load %arg10[%c0_24, %c0_25] : memref<640x896xbf16, #tpu.memory_space<vmem>>, vector<640x896xbf16>
    %cst_26 = arith.constant dense<0.000000e+00> : vector<8x896xf32>
    %35 = tpu.matmul %33, %34, %cst_26 {dimension_numbers = #tpu.dot_dimension_numbers<[1], [0], [0], [1], [0, 0, 1, 1], [], []>} : vector<8x640xbf16>, vector<640x896xbf16>, vector<8x896xf32> -> vector<8x896xf32>
    %c0_27 = arith.constant 0 : index
    %c0_28 = arith.constant 0 : index
    %36 = vector.load %arg11[%c0_27, %c0_28] : memref<1x896xf32, #tpu.memory_space<vmem>>, vector<1x896xf32>
    %37 = vector.broadcast %36 : vector<1x896xf32> to vector<8x896xf32>
    %38 = arith.addf %35, %37 : vector<8x896xf32>
    %cst_29 = arith.constant 0.000000e+00 : f32
    %39 = vector.broadcast %cst_29 : f32 to vector<8x896xf32>
    %40 = arith.maximumf %38, %39 : vector<8x896xf32>
    %41 = arith.truncf %40 : vector<8x896xf32> to vector<8x896xbf16>
    %c0_30 = arith.constant 0 : index
    %c0_31 = arith.constant 0 : index
    %42 = vector.load %arg12[%c0_30, %c0_31] : memref<896x128xbf16, #tpu.memory_space<vmem>>, vector<896x128xbf16>
    %cst_32 = arith.constant dense<0.000000e+00> : vector<8x128xf32>
    %43 = tpu.matmul %41, %42, %cst_32 {dimension_numbers = #tpu.dot_dimension_numbers<[1], [0], [0], [1], [0, 0, 1, 1], [], []>} : vector<8x896xbf16>, vector<896x128xbf16>, vector<8x128xf32> -> vector<8x128xf32>
    %c0_33 = arith.constant 0 : index
    %c0_34 = arith.constant 0 : index
    %44 = vector.load %arg13[%c0_33, %c0_34] : memref<1x128xf32, #tpu.memory_space<vmem>>, vector<1x128xf32>
    %45 = vector.broadcast %44 : vector<1x128xf32> to vector<8x128xf32>
    %46 = arith.addf %43, %45 : vector<8x128xf32>
    %cst_35 = arith.constant 0.000000e+00 : f32
    %47 = vector.broadcast %cst_35 : f32 to vector<8x128xf32>
    %48 = arith.maximumf %46, %47 : vector<8x128xf32>
    %49 = arith.truncf %48 : vector<8x128xf32> to vector<8x128xbf16>
    %c0_36 = arith.constant 0 : index
    %c0_37 = arith.constant 0 : index
    %50 = vector.load %arg14[%c0_36, %c0_37] : memref<128x128xbf16, #tpu.memory_space<vmem>>, vector<128x128xbf16>
    %cst_38 = arith.constant dense<0.000000e+00> : vector<8x128xf32>
    %51 = tpu.matmul %49, %50, %cst_38 {dimension_numbers = #tpu.dot_dimension_numbers<[1], [0], [0], [1], [0, 0, 1, 1], [], []>} : vector<8x128xbf16>, vector<128x128xbf16>, vector<8x128xf32> -> vector<8x128xf32>
    %c0_39 = arith.constant 0 : index
    %c0_40 = arith.constant 0 : index
    %52 = vector.load %arg15[%c0_39, %c0_40] : memref<1x128xf32, #tpu.memory_space<vmem>>, vector<1x128xf32>
    %53 = vector.broadcast %52 : vector<1x128xf32> to vector<8x128xf32>
    %54 = arith.addf %51, %53 : vector<8x128xf32>
    %c0_41 = arith.constant 0 : index
    %c0_42 = arith.constant 0 : index
    %55 = vector.load %arg16[%c0_41, %c0_42] : memref<8x128xf32, #tpu.memory_space<vmem>>, vector<8x128xf32>
    tpu.vector_store %arg16[%c0_41, %c0_42], %54 {strides = array<i32>} : memref<8x128xf32, #tpu.memory_space<vmem>>, vector<8x128xf32>,
    return
  }
  func.func @transform_0(%arg0: i32) -> (i32, i32) {
    %c0_i32 = arith.constant 0 : i32
    %c0_i32_0 = arith.constant 0 : i32
    return %arg0, %c0_i32 : i32, i32
  }
  func.func @transform_1(%arg0: i32) -> (i32, i32) {
    %c0_i32 = arith.constant 0 : i32
    %c0_i32_0 = arith.constant 0 : i32
    %c0_i32_1 = arith.constant 0 : i32
    return %c0_i32, %c0_i32_0 : i32, i32
  }
  func.func @transform_2(%arg0: i32) -> (i32, i32) {
    %c0_i32 = arith.constant 0 : i32
    %c0_i32_0 = arith.constant 0 : i32
    %c0_i32_1 = arith.constant 0 : i32
    return %c0_i32, %c0_i32_0 : i32, i32
  }
  func.func @transform_3(%arg0: i32) -> (i32, i32) {
    %c0_i32 = arith.constant 0 : i32
    %c0_i32_0 = arith.constant 0 : i32
    %c0_i32_1 = arith.constant 0 : i32
    return %c0_i32, %c0_i32_0 : i32, i32
  }
  func.func @transform_4(%arg0: i32) -> (i32, i32) {
    %c0_i32 = arith.constant 0 : i32
    %c0_i32_0 = arith.constant 0 : i32
    %c0_i32_1 = arith.constant 0 : i32
    return %c0_i32, %c0_i32_0 : i32, i32
  }
  func.func @transform_5(%arg0: i32) -> (i32, i32) {
    %c0_i32 = arith.constant 0 : i32
    %c0_i32_0 = arith.constant 0 : i32
    %c0_i32_1 = arith.constant 0 : i32
    return %c0_i32, %c0_i32_0 : i32, i32
  }
  func.func @transform_6(%arg0: i32) -> (i32, i32) {
    %c0_i32 = arith.constant 0 : i32
    %c0_i32_0 = arith.constant 0 : i32
    %c0_i32_1 = arith.constant 0 : i32
    return %c0_i32, %c0_i32_0 : i32, i32
  }
  func.func @transform_7(%arg0: i32) -> (i32, i32) {
    %c0_i32 = arith.constant 0 : i32
    %c0_i32_0 = arith.constant 0 : i32
    %c0_i32_1 = arith.constant 0 : i32
    return %c0_i32, %c0_i32_0 : i32, i32
  }
  func.func @transform_8(%arg0: i32) -> (i32, i32) {
    %c0_i32 = arith.constant 0 : i32
    %c0_i32_0 = arith.constant 0 : i32
    %c0_i32_1 = arith.constant 0 : i32
    return %c0_i32, %c0_i32_0 : i32, i32
  }
  func.func @transform_9(%arg0: i32) -> (i32, i32) {
    %c0_i32 = arith.constant 0 : i32
    %c0_i32_0 = arith.constant 0 : i32
    %c0_i32_1 = arith.constant 0 : i32
    return %c0_i32, %c0_i32_0 : i32, i32
  }
  func.func @transform_10(%arg0: i32) -> (i32, i32) {
    %c0_i32 = arith.constant 0 : i32
    %c0_i32_0 = arith.constant 0 : i32
    %c0_i32_1 = arith.constant 0 : i32
    return %c0_i32, %c0_i32_0 : i32, i32
  }
  func.func @transform_11(%arg0: i32) -> (i32, i32) {
    %c0_i32 = arith.constant 0 : i32
    %c0_i32_0 = arith.constant 0 : i32
    %c0_i32_1 = arith.constant 0 : i32
    return %c0_i32, %c0_i32_0 : i32, i32
  }
  func.func @transform_12(%arg0: i32) -> (i32, i32) {
    %c0_i32 = arith.constant 0 : i32
    %c0_i32_0 = arith.constant 0 : i32
    %c0_i32_1 = arith.constant 0 : i32
    return %c0_i32, %c0_i32_0 : i32, i32
  }
  func.func @transform_13(%arg0: i32) -> (i32, i32) {
    %c0_i32 = arith.constant 0 : i32
    %c0_i32_0 = arith.constant 0 : i32
    %c0_i32_1 = arith.constant 0 : i32
    return %c0_i32, %c0_i32_0 : i32, i32
  }
  func.func @transform_14(%arg0: i32) -> (i32, i32) {
    %c0_i32 = arith.constant 0 : i32
    %c0_i32_0 = arith.constant 0 : i32
    %c0_i32_1 = arith.constant 0 : i32
    return %c0_i32, %c0_i32_0 : i32, i32
  }
  func.func @transform_15(%arg0: i32) -> (i32, i32) {
    %c0_i32 = arith.constant 0 : i32
    %c0_i32_0 = arith.constant 0 : i32
    return %arg0, %c0_i32 : i32, i32
  }
}

</mosaic_0001>

<bundles_post_ra>
// kernel: pitch_velocity_forward.1
= control target key start
LH: loop header
LB: loop body
LE: loop exit
PB: predicated region body
PF: predicated region fallthrough
CT: control target
= control target key end

     0   :  { %20 = vsyncpa [#allocation3], 0  ;;  %s9113_s0 = inlined_call_operand.vmem [shape: f32[8,128], index: 0, kind: input, shape index: {}]   ;;  %s9114_s1 = inlined_call_operand.hbm [shape: bf16[128,640], index: 1, kind: input, shape index: {}]   ;;  %s9115_s2 = inlined_call_operand.hbm [shape: f32[1,640], index: 2, kind: input, shape index: {}]   ;;  %s9116_s3 = inlined_call_operand.hbm [shape: bf16[640,640], index: 3, kind: input, shape index: {}]   ;;  %s9117_s4 = inlined_call_operand.hbm [shape: f32[1,640], index: 4, kind: input, shape index: {}]   ;;  %s9118_s5 = inlined_call_operand.hbm [shape: bf16[640,128], index: 5, kind: input, shape index: {}]   ;;  %s9119_s6 = inlined_call_operand.hbm [shape: f32[1,128], index: 6, kind: input, shape index: {}]   ;;  %s9120_s7 = inlined_call_operand.hbm [shape: bf16[128,640], index: 7, kind: input, shape index: {}]   ;;  %s9121_s8 = inlined_call_operand.hbm [shape: f32[1,640], index: 8, kind: input, shape index: {}]   ;;  %s9122_s9 = inlined_call_operand.hbm [shape: bf16[640,896], index: 9, kind: input, shape index: {}]   ;;  %s9123_s10 = inlined_call_operand.hbm [shape: f32[1,896], index: 10, kind: input, shape index: {}]   ;;  %s9124_s11 = inlined_call_operand.hbm [shape: bf16[896,128], index: 11, kind: input, shape index: {}]   ;;  %s9125_s12 = inlined_call_operand.hbm [shape: f32[1,128], index: 12, kind: input, shape index: {}]   ;;  %s9126_s13 = inlined_call_operand.hbm [shape: bf16[128,128], index: 13, kind: input, shape index: {}]   ;;  %s9127_s14 = inlined_call_operand.hbm [shape: f32[1,128], index: 14, kind: input, shape index: {}]   ;;  %s9128_s15 = inlined_call_operand.vmem [shape: f32[8,128], index: 15, kind: output, shape index: {}]  }
   0x1   :  { %21 = vsyncpa [#allocation5], 0 }
   0x2   :  { %22 = vsyncpa [#allocation8], 0 }
   0x3   :  { %23 = vsyncpa [#allocation11], 0 }
   0x4   :  { %24 = vsyncpa [#allocation14], 0 }
   0x5   :  { %25 = vsyncpa [#allocation17], 0 }
   0x6   :  { %26 = vsyncpa [#allocation20], 0 }
   0x7   :  { %27 = vsyncpa [#allocation23], 0  ;;  %s8593_s18 = smov [#allocation4]   ;;  %s8594_s20 = smov [#allocation7]  }
   0x8   :  { %s48_s19 = sshll.u32 %s8593_s18, 4  ;;  %s70_s21 = sshll.u32 %s8594_s20, 4  ;;  %s49_s19 = int_to_ptr.vmem [resolvable:$true] %s48_s19  ;;  %s71_s21 = int_to_ptr.vmem [resolvable:$true] %s70_s21 }
   0x9   :  { %s8269_s24 = scalar_lea.hbm %s9115_s2, 80 }
   0xa   :  { %p8270_p0 = scmp.ne.s32.totalorder %s9115_s2, %s8269_s24  ;;  %p8273_p1 = scmp.lt.u32.totalorder %s8269_s24, %s9115_s2 }
   0xc   :  { %p8275_p2 = pnand %p8273_p1, %p8270_p0 }
   0xe   :  { %8278 = shalt.err (!%p8275_p2)
}
   0xf   :  { %s8279_s29 = scalar_lea.vmem %s49_s19, 80  ;;  %s8283_s30 = scalar_lea.vmem %s49_s19, 96 }
  0x10   :  { %p8280_p3 = scmp.ne.s32.totalorder %s49_s19, %s8279_s29  ;;  %p8284_p4 = scmp.lt.s32.totalorder %s49_s19, %s49_s19 }
  0x11   :  { %p8285_p5 = scmp.lt.s32.totalorder %s8283_s30, %s8279_s29 }
  0x13   :  { %p8286_p6 = por %p8285_p5, %p8284_p4 }
  0x15   :  { %p8287_p7 = pnand %p8286_p6, %p8280_p3 }
  0x17   :  { %8290 = shalt.err (!%p8287_p7)
}
  0x18   :  { %51 = dma.hbm_to_vmem [thread:$0]  %s9115_s2, 80, %s49_s19, [#allocation5]  }
  0x19   :  { %s8291_s22 = scalar_lea.hbm %s9117_s4, 80 }
  0x1a   :  { %p8292_p8 = scmp.ne.s32.totalorder %s9117_s4, %s8291_s22  ;;  %p8295_p9 = scmp.lt.u32.totalorder %s8291_s22, %s9117_s4 }
  0x1c   :  { %p8297_p10 = pnand %p8295_p9, %p8292_p8 }
  0x1e   :  { %8300 = shalt.err (!%p8297_p10)
}
  0x1f   :  { %s8301_s27 = scalar_lea.vmem %s71_s21, 80  ;;  %s8305_s28 = scalar_lea.vmem %s71_s21, 96 }
  0x20   :  { %p8302_p11 = scmp.ne.s32.totalorder %s71_s21, %s8301_s27  ;;  %p8306_p12 = scmp.lt.s32.totalorder %s71_s21, %s71_s21 }
  0x21   :  { %p8307_p13 = scmp.lt.s32.totalorder %s8305_s28, %s8301_s27 }
  0x23   :  { %p8308_p0 = por %p8307_p13, %p8306_p12 }
  0x25   :  { %p8309_p1 = pnand %p8308_p0, %p8302_p11 }
  0x27   :  { %8312 = shalt.err (!%p8309_p1)
}
  0x28   :  { %73 = dma.hbm_to_vmem [thread:$0]  %s9117_s4, 80, %s71_s21, [#allocation8]  }
  0x29   :  { %s8595_s29 = smov [#allocation10]   ;;  %s8596_s16 = smov [#allocation13]  }
  0x2a   :  { %s92_s30 = sshll.u32 %s8595_s29, 4  ;;  %s114_s17 = sshll.u32 %s8596_s16, 4  ;;  %s93_s30 = int_to_ptr.vmem [resolvable:$true] %s92_s30  ;;  %s115_s17 = int_to_ptr.vmem [resolvable:$true] %s114_s17 }
  0x2b   :  { %s8313_s22 = scalar_lea.hbm %s9119_s6, 16 }
  0x2c   :  { %p8314_p2 = scmp.ne.s32.totalorder %s9119_s6, %s8313_s22  ;;  %p8317_p3 = scmp.lt.u32.totalorder %s8313_s22, %s9119_s6 }
  0x2e   :  { %p8319_p4 = pnand %p8317_p3, %p8314_p2 }
  0x30   :  { %8322 = shalt.err (!%p8319_p4)
}
  0x31   :  { %s8323_s4 = scalar_lea.vmem %s93_s30, 16  ;;  %s8327_s21 = scalar_lea.vmem %s93_s30, 32 }
  0x32   :  { %p8324_p5 = scmp.ne.s32.totalorder %s93_s30, %s8323_s4  ;;  %p8328_p6 = scmp.lt.s32.totalorder %s93_s30, %s93_s30 }
  0x33   :  { %p8329_p7 = scmp.lt.s32.totalorder %s8327_s21, %s8323_s4 }
  0x35   :  { %p8330_p8 = por %p8329_p7, %p8328_p6 }
  0x37   :  { %p8331_p9 = pnand %p8330_p8, %p8324_p5 }
  0x39   :  { %8334 = shalt.err (!%p8331_p9)
}
  0x3a   :  { %95 = dma.hbm_to_vmem [thread:$0]  %s9119_s6, 16, %s93_s30, [#allocation11]  }
  0x3b   :  { %s8335_s29 = scalar_lea.hbm %s9121_s8, 80 }
  0x3c   :  { %p8336_p10 = scmp.ne.s32.totalorder %s9121_s8, %s8335_s29  ;;  %p8339_p11 = scmp.lt.u32.totalorder %s8335_s29, %s9121_s8 }
  0x3e   :  { %p8341_p12 = pnand %p8339_p11, %p8336_p10 }
  0x40   :  { %8344 = shalt.err (!%p8341_p12)
}
  0x41   :  { %s8345_s23 = scalar_lea.vmem %s115_s17, 80  ;;  %s8349_s24 = scalar_lea.vmem %s115_s17, 96 }
  0x42   :  { %p8346_p13 = scmp.ne.s32.totalorder %s115_s17, %s8345_s23  ;;  %p8350_p0 = scmp.lt.s32.totalorder %s115_s17, %s115_s17 }
  0x43   :  { %p8351_p1 = scmp.lt.s32.totalorder %s8349_s24, %s8345_s23 }
  0x45   :  { %p8352_p2 = por %p8351_p1, %p8350_p0 }
  0x47   :  { %p8353_p3 = pnand %p8352_p2, %p8346_p13 }
  0x49   :  { %8356 = shalt.err (!%p8353_p3)
}
  0x4a   :  { %117 = dma.hbm_to_vmem [thread:$0]  %s9121_s8, 80, %s115_s17, [#allocation14]  }
  0x4b   :  { %s8597_s25 = smov [#allocation16]   ;;  %s8598_s4 = smov [#allocation19]  }
  0x4c   :  { %s136_s26 = sshll.u32 %s8597_s25, 4  ;;  %s158_s21 = sshll.u32 %s8598_s4, 4  ;;  %s137_s26 = int_to_ptr.vmem [resolvable:$true] %s136_s26  ;;  %s159_s21 = int_to_ptr.vmem [resolvable:$true] %s158_s21 }
  0x4d   :  { %s8357_s2 = scalar_lea.hbm %s9123_s10, 112 }
  0x4e   :  { %p8358_p4 = scmp.ne.s32.totalorder %s9123_s10, %s8357_s2  ;;  %p8361_p5 = scmp.lt.u32.totalorder %s8357_s2, %s9123_s10 }
  0x50   :  { %p8363_p6 = pnand %p8361_p5, %p8358_p4 }
  0x52   :  { %8366 = shalt.err (!%p8363_p6)
}
  0x53   :  { %s8367_s8 = scalar_lea.vmem %s137_s26, 112  ;;  %s8371_s17 = scalar_lea.vmem %s137_s26, 128 }
  0x54   :  { %p8368_p7 = scmp.ne.s32.totalorder %s137_s26, %s8367_s8  ;;  %p8372_p8 = scmp.lt.s32.totalorder %s137_s26, %s137_s26 }
  0x55   :  { %p8373_p9 = scmp.lt.s32.totalorder %s8371_s17, %s8367_s8 }
  0x57   :  { %p8374_p10 = por %p8373_p9, %p8372_p8 }
  0x59   :  { %p8375_p11 = pnand %p8374_p10, %p8368_p7 }
  0x5b   :  { %8378 = shalt.err (!%p8375_p11)
}
  0x5c   :  { %139 = dma.hbm_to_vmem [thread:$0]  %s9123_s10, 112, %s137_s26, [#allocation17]  }
  0x5d   :  { %s8379_s6 = scalar_lea.hbm %s9125_s12, 16 }
  0x5e   :  { %p8380_p12 = scmp.ne.s32.totalorder %s9125_s12, %s8379_s6  ;;  %p8383_p13 = scmp.lt.u32.totalorder %s8379_s6, %s9125_s12 }
  0x60   :  { %p8385_p0 = pnand %p8383_p13, %p8380_p12 }
  0x62   :  { %8388 = shalt.err (!%p8385_p0)
}
  0x63   :  { %s8389_s28 = scalar_lea.vmem %s159_s21, 16  ;;  %s8393_s2 = scalar_lea.vmem %s159_s21, 32 }
  0x64   :  { %p8390_p1 = scmp.ne.s32.totalorder %s159_s21, %s8389_s28  ;;  %p8394_p2 = scmp.lt.s32.totalorder %s159_s21, %s159_s21 }
  0x65   :  { %p8395_p3 = scmp.lt.s32.totalorder %s8393_s2, %s8389_s28 }
  0x67   :  { %p8396_p4 = por %p8395_p3, %p8394_p2 }
  0x69   :  { %p8397_p5 = pnand %p8396_p4, %p8390_p1 }
  0x6b   :  { %8400 = shalt.err (!%p8397_p5)
}
  0x6c   :  { %161 = dma.hbm_to_vmem [thread:$0]  %s9125_s12, 16, %s159_s21, [#allocation20]  }
  0x6d   :  { %s8599_s19 = smov [#allocation2]   ;;  %s8401_s8 = scalar_lea.hbm %s9114_s1, 5120 }
  0x6e   :  { %s35_s29 = sshll.u32 %s8599_s19, 4  ;;  %p8402_p6 = scmp.ne.s32.totalorder %s9114_s1, %s8401_s8  ;;  %s36_s29 = int_to_ptr.vmem [resolvable:$true] %s35_s29 }
  0x6f   :  { %p8405_p7 = scmp.lt.u32.totalorder %s8401_s8, %s9114_s1 }
  0x71   :  { %p8407_p8 = pnand %p8405_p7, %p8402_p6 }
  0x73   :  { %8410 = shalt.err (!%p8407_p8)
}
  0x74   :  { %s8411_s24 = scalar_lea.vmem %s36_s29, 5120  ;;  %p8416_p10 = scmp.lt.s32.totalorder %s36_s29, %s36_s29 }
  0x75   :  { %p8412_p9 = scmp.ne.s32.totalorder %s36_s29, %s8411_s24  ;;  %p8417_p11 = scmp.lt.s32.totalorder %s8411_s24, %s8411_s24 }
  0x77   :  { %p8418_p12 = por %p8417_p11, %p8416_p10 }
  0x79   :  { %p8419_p13 = pnand %p8418_p12, %p8412_p9 }
  0x7b   :  { %8422 = shalt.err (!%p8419_p13)
}
  0x7c   :  { %s8600_s12 = smov 320   ;;  %s8601_s21 = smov 20  }
  0x7d   :  { %41 = dma.hbm_to_vmem [thread:$0]  %s9114_s1, 5120, %s36_s29, [#allocation3], %s8600_s12, %s8600_s12, %s8601_s21  }
  0x7e   :  { %s8602_s25 = smov [#allocation6]   ;;  %s8603_s27 = smov [#allocation9]  }
  0x7f   :  { %s57_s4 = sshll.u32 %s8602_s25, 4  ;;  %s79_s28 = sshll.u32 %s8603_s27, 4  ;;  %s58_s4 = int_to_ptr.vmem [resolvable:$true] %s57_s4  ;;  %s80_s28 = int_to_ptr.vmem [resolvable:$true] %s79_s28 }
  0x80   :  { %s8423_s26 = scalar_lea.hbm %s9116_s3, 25600 }
  0x81   :  { %p8424_p0 = scmp.ne.s32.totalorder %s9116_s3, %s8423_s26  ;;  %p8427_p1 = scmp.lt.u32.totalorder %s8423_s26, %s9116_s3 }
  0x83   :  { %p8429_p2 = pnand %p8427_p1, %p8424_p0 }
  0x85   :  { %8432 = shalt.err (!%p8429_p2)
}
  0x86   :  { %s8433_s1 = scalar_lea.vmem %s58_s4, 25600  ;;  %p8438_p4 = scmp.lt.s32.totalorder %s58_s4, %s58_s4 }
  0x87   :  { %p8434_p3 = scmp.ne.s32.totalorder %s58_s4, %s8433_s1  ;;  %p8439_p5 = scmp.lt.s32.totalorder %s8433_s1, %s8433_s1 }
  0x89   :  { %p8440_p6 = por %p8439_p5, %p8438_p4 }
  0x8b   :  { %p8441_p7 = pnand %p8440_p6, %p8434_p3 }
  0x8d   :  { %8444 = shalt.err (!%p8441_p7)
}
  0x8e   :  { %63 = dma.hbm_to_vmem [thread:$0]  %s9116_s3, 25600, %s58_s4, [#allocation5], %s8600_s12, %s8600_s12, %s8601_s21  }
  0x8f   :  { %s8445_s23 = scalar_lea.hbm %s9118_s5, 5120 }
  0x90   :  { %p8446_p8 = scmp.ne.s32.totalorder %s9118_s5, %s8445_s23  ;;  %p8449_p9 = scmp.lt.u32.totalorder %s8445_s23, %s9118_s5 }
  0x92   :  { %p8451_p10 = pnand %p8449_p9, %p8446_p8 }
  0x94   :  { %8454 = shalt.err (!%p8451_p10)
}
  0x95   :  { %s8455_s27 = scalar_lea.vmem %s80_s28, 5120  ;;  %p8460_p12 = scmp.lt.s32.totalorder %s80_s28, %s80_s28 }
  0x96   :  { %p8456_p11 = scmp.ne.s32.totalorder %s80_s28, %s8455_s27  ;;  %p8461_p13 = scmp.lt.s32.totalorder %s8455_s27, %s8455_s27 }
  0x98   :  { %p8462_p0 = por %p8461_p13, %p8460_p12 }
  0x9a   :  { %p8463_p1 = pnand %p8462_p0, %p8456_p11 }
  0x9c   :  { %8466 = shalt.err (!%p8463_p1)
}
  0x9d   :  { %s8604_s3 = smov 64   ;;  %s8605_s4 = smov 4  }
  0x9e   :  { %85 = dma.hbm_to_vmem [thread:$0]  %s9118_s5, 5120, %s80_s28, [#allocation8], %s8604_s3, %s8604_s3, %s8605_s4  }
  0x9f   :  { %s8606_s26 = smov [#allocation12]   ;;  %s8607_s16 = smov [#allocation15]  }
  0xa0   :  { %s101_s19 = sshll.u32 %s8606_s26, 4  ;;  %s123_s18 = sshll.u32 %s8607_s16, 4  ;;  %s102_s19 = int_to_ptr.vmem [resolvable:$true] %s101_s19  ;;  %s124_s18 = int_to_ptr.vmem [resolvable:$true] %s123_s18 }
  0xa1   :  { %s8467_s29 = scalar_lea.hbm %s9120_s7, 5120 }
  0xa2   :  { %p8468_p2 = scmp.ne.s32.totalorder %s9120_s7, %s8467_s29  ;;  %p8471_p3 = scmp.lt.u32.totalorder %s8467_s29, %s9120_s7 }
  0xa4   :  { %p8473_p4 = pnand %p8471_p3, %p8468_p2 }
  0xa6   :  { %8476 = shalt.err (!%p8473_p4)
}
  0xa7   :  { %s8477_s5 = scalar_lea.vmem %s102_s19, 5120  ;;  %p8482_p6 = scmp.lt.s32.totalorder %s102_s19, %s102_s19 }
  0xa8   :  { %p8478_p5 = scmp.ne.s32.totalorder %s102_s19, %s8477_s5  ;;  %p8483_p7 = scmp.lt.s32.totalorder %s8477_s5, %s8477_s5 }
  0xaa   :  { %p8484_p8 = por %p8483_p7, %p8482_p6 }
  0xac   :  { %p8485_p9 = pnand %p8484_p8, %p8478_p5 }
  0xae   :  { %8488 = shalt.err (!%p8485_p9)
}
  0xaf   :  { %107 = dma.hbm_to_vmem [thread:$0]  %s9120_s7, 5120, %s102_s19, [#allocation11], %s8600_s12, %s8600_s12, %s8601_s21  }
  0xb0   :  { %s8489_s25 = scalar_lea.hbm %s9122_s9, 35840 }
  0xb1   :  { %p8490_p10 = scmp.ne.s32.totalorder %s9122_s9, %s8489_s25  ;;  %p8493_p11 = scmp.lt.u32.totalorder %s8489_s25, %s9122_s9 }
  0xb3   :  { %p8495_p12 = pnand %p8493_p11, %p8490_p10 }
  0xb5   :  { %8498 = shalt.err (!%p8495_p12)
}
  0xb6   :  { %s8499_s16 = scalar_lea.vmem %s124_s18, 35840  ;;  %p8504_p0 = scmp.lt.s32.totalorder %s124_s18, %s124_s18 }
  0xb7   :  { %p8500_p13 = scmp.ne.s32.totalorder %s124_s18, %s8499_s16  ;;  %p8505_p1 = scmp.lt.s32.totalorder %s8499_s16, %s8499_s16 }
  0xb9   :  { %p8506_p2 = por %p8505_p1, %p8504_p0 }
  0xbb   :  { %p8507_p3 = pnand %p8506_p2, %p8500_p13 }
  0xbd   :  { %8510 = shalt.err (!%p8507_p3)
}
  0xbe   :  { %s8608_s7 = smov 448   ;;  %s8609_s12 = smov 28  }
  0xbf   :  { %129 = dma.hbm_to_vmem [thread:$0]  %s9122_s9, 35840, %s124_s18, [#allocation14], %s8608_s7, %s8608_s7, %s8609_s12  }
  0xc0   :  { %s8610_s8 = smov [#allocation18]   ;;  %s8611_s29 = smov [#allocation21]  }
  0xc1   :  { %s145_s1 = sshll.u32 %s8610_s8, 4  ;;  %s167_s17 = sshll.u32 %s8611_s29, 4  ;;  %s146_s1 = int_to_ptr.vmem [resolvable:$true] %s145_s1  ;;  %s168_s17 = int_to_ptr.vmem [resolvable:$true] %s167_s17 }
  0xc2   :  { %s8511_s23 = scalar_lea.hbm %s9124_s11, 7168 }
  0xc3   :  { %p8512_p4 = scmp.ne.s32.totalorder %s9124_s11, %s8511_s23  ;;  %p8515_p5 = scmp.lt.u32.totalorder %s8511_s23, %s9124_s11 }
  0xc5   :  { %p8517_p6 = pnand %p8515_p5, %p8512_p4 }
  0xc7   :  { %8520 = shalt.err (!%p8517_p6)
}
  0xc8   :  { %s8521_s9 = scalar_lea.vmem %s146_s1, 7168  ;;  %p8526_p8 = scmp.lt.s32.totalorder %s146_s1, %s146_s1 }
  0xc9   :  { %p8522_p7 = scmp.ne.s32.totalorder %s146_s1, %s8521_s9  ;;  %p8527_p9 = scmp.lt.s32.totalorder %s8521_s9, %s8521_s9 }
  0xcb   :  { %p8528_p10 = por %p8527_p9, %p8526_p8 }
  0xcd   :  { %p8529_p11 = pnand %p8528_p10, %p8522_p7 }
  0xcf   :  { %8532 = shalt.err (!%p8529_p11)
}
  0xd0   :  { %151 = dma.hbm_to_vmem [thread:$0]  %s9124_s11, 7168, %s146_s1, [#allocation17], %s8604_s3, %s8604_s3, %s8605_s4  }
  0xd1   :  { %s8533_s2 = scalar_lea.hbm %s9126_s13, 1024 }
  0xd2   :  { %p8534_p12 = scmp.ne.s32.totalorder %s9126_s13, %s8533_s2  ;;  %p8537_p13 = scmp.lt.u32.totalorder %s8533_s2, %s9126_s13 }
  0xd4   :  { %p8539_p0 = pnand %p8537_p13, %p8534_p12 }
  0xd6   :  { %8542 = shalt.err (!%p8539_p0)
}
  0xd7   :  { %s8543_s12 = scalar_lea.vmem %s168_s17, 1024  ;;  %p8548_p2 = scmp.lt.s32.totalorder %s168_s17, %s168_s17 }
  0xd8   :  { %p8544_p1 = scmp.ne.s32.totalorder %s168_s17, %s8543_s12  ;;  %p8549_p3 = scmp.lt.s32.totalorder %s8543_s12, %s8543_s12 }
  0xda   :  { %p8550_p4 = por %p8549_p3, %p8548_p2 }
  0xdc   :  { %p8551_p5 = pnand %p8550_p4, %p8544_p1 }
  0xde   :  { %8554 = shalt.err (!%p8551_p5)
}
  0xdf   :  { %173 = dma.hbm_to_vmem [thread:$0]  %s9126_s13, 1024, %s168_s17, [#allocation20], %s8604_s3, %s8604_s3, %s8605_s4  }
  0xe0   :  { %s8612_s19 = smov [#allocation22]   ;;  %s8555_s20 = scalar_lea.hbm %s9127_s14, 16 }
  0xe1   :  { %s180_s8 = sshll.u32 %s8612_s19, 4  ;;  %p8556_p6 = scmp.ne.s32.totalorder %s9127_s14, %s8555_s20  ;;  %s181_s8 = int_to_ptr.vmem [resolvable:$true] %s180_s8 }
  0xe2   :  { %p8559_p7 = scmp.lt.u32.totalorder %s8555_s20, %s9127_s14 }
  0xe4   :  { %p8561_p8 = pnand %p8559_p7, %p8556_p6 }
  0xe6   :  { %8564 = shalt.err (!%p8561_p8)
}
  0xe7   :  { %s8565_s24 = scalar_lea.vmem %s181_s8, 16  ;;  %s8569_s13 = scalar_lea.vmem %s181_s8, 32 }
  0xe8   :  { %p8566_p9 = scmp.ne.s32.totalorder %s181_s8, %s8565_s24  ;;  %p8570_p10 = scmp.lt.s32.totalorder %s181_s8, %s181_s8 }
  0xe9   :  { %p8571_p11 = scmp.lt.s32.totalorder %s8569_s13, %s8565_s24 }
  0xeb   :  { %p8572_p12 = por %p8571_p11, %p8570_p10 }
  0xed   :  { %p8573_p13 = pnand %p8572_p12, %p8566_p9 }
  0xef   :  { %8576 = shalt.err (!%p8573_p13)
}
  0xf0   :  { %183 = dma.hbm_to_vmem [thread:$0]  %s9127_s14, 16, %s181_s8, [#allocation23]  }
  0xf1   :  { %8577 = dma.done.wait [#allocation3], 5120  }
  0xf2   :  { %8578 = vsyncadd [#allocation3], 4294962176 }
  0xf3   :  { %8579 = dma.done.wait [#allocation5], 25680  }
  0xf4   :  { %8580 = vsyncadd [#allocation5], 4294941616 }
  0xf5   :  { %8581 = dma.done.wait [#allocation8], 5200  }
  0xf6   :  { %8582 = vsyncadd [#allocation8], 4294962096 }
  0xf7   :  { %8583 = dma.done.wait [#allocation11], 5136  }
  0xf8   :  { %8584 = vsyncadd [#allocation11], 4294962160 }
  0xf9   :  { %8585 = dma.done.wait [#allocation14], 35920  }
  0xfa   :  { %8586 = vsyncadd [#allocation14], 4294931376 }
  0xfb   :  { %8587 = dma.done.wait [#allocation17], 7280  }
  0xfc   :  { %8588 = vsyncadd [#allocation17], 4294960016 }
  0xfd   :  { %8589 = dma.done.wait [#allocation20], 1040  }
  0xfe   :  { %8590 = vsyncadd [#allocation20], 4294966256 }
  0xff   :  { %8591 = dma.done.wait [#allocation23], 16  }
 0x100   :  { %8592 = vsyncadd [#allocation23], 4294967280  ;;  %v8613_v0 = vmov 0   ;;  %v7373_v1 = vld [vmem:[#allocation2 + $0x4] ss:$20 sps:$4 sm:$0xff]   ;;  %v8614_v33 = vmov 0.0  }
 0x101   :  { %544 = vmatprep.mubr.bf16.mxu0 %v8613_v0  ;;  %585 = vmatprep.mubr.bf16.mxu1 %v8613_v0  ;;  %v7375_v2 = vld [vmem:[#allocation2] ss:$20 sps:$4 sm:$0xff]   ;;  %v7378_v4 = vld [vmem:[#allocation2 + $0x28] ss:$20 sps:$4 sm:$0xff]   ;;  %v7381_v6 = vld [vmem:[#allocation2 + $0x50] ss:$20 sps:$4 sm:$0xff]  }
 0x102   :  { %512 = vmatprep.subr.bf16.mxu0 %v7373_v1  ;;  %v7376_v3 = vld [vmem:[#allocation2 + $0x2c] ss:$20 sps:$4 sm:$0xff]   ;;  %v7379_v5 = vld [vmem:[#allocation2 + $0x54] ss:$20 sps:$4 sm:$0xff]   ;;  %v7382_v7 = vld [vmem:[#allocation2 + $0x7c] ss:$20 sps:$4 sm:$0xff]  }
 0x103   :  { %513 = vmatpush1.bf16.msra.mxu0 %v7375_v2  ;;  %v7384_v8 = vld [vmem:[#allocation2 + $0x78] ss:$20 sps:$4 sm:$0xff]   ;;  %v7399_v11 = vld [vmem:[#allocation2 + $0x8] ss:$20 sps:$4 sm:$0xff]   ;;  %v7387_v13 = vld [vmem:[#allocation2 + $0xa0] ss:$20 sps:$4 sm:$0xff]  }
 0x104   :  { %514 = vmatprep.subr.bf16.mxu0 %v7376_v3  ;;  %v7385_v9 = vld [vmem:[#allocation2 + $0xa4] ss:$20 sps:$4 sm:$0xff]   ;;  %v7397_v10 = vld [vmem:[#allocation2 + $0xc] ss:$20 sps:$4 sm:$0xff]   ;;  %v7400_v12 = vld [vmem:[#allocation2 + $0x34] ss:$20 sps:$4 sm:$0xff]  }
 0x105   :  { %553 = vmatprep.subr.bf16.mxu1 %v7397_v10  ;;  %v7402_v14 = vld [vmem:[#allocation2 + $0x30] ss:$20 sps:$4 sm:$0xff]   ;;  %v7388_v16 = vld [vmem:[#allocation2 + $0xcc] ss:$20 sps:$4 sm:$0xff]   ;;  %v7390_v17 = vld [vmem:[#allocation2 + $0xc8] ss:$20 sps:$4 sm:$0xff]  }
 0x106   :  { %554 = vmatpush1.bf16.msra.mxu1 %v7399_v11  ;;  %v7403_v15 = vld [vmem:[#allocation2 + $0x5c] ss:$20 sps:$4 sm:$0xff]   ;;  %v7405_v18 = vld [vmem:[#allocation2 + $0x58] ss:$20 sps:$4 sm:$0xff]   ;;  %v7391_v20 = vld [vmem:[#allocation2 + $0xf4] ss:$20 sps:$4 sm:$0xff]  }
 0x107   :  { %515 = vmatpush1.bf16.msra.mxu0 %v7378_v4  ;;  %555 = vmatprep.subr.bf16.mxu1 %v7400_v12  ;;  %v7406_v19 = vld [vmem:[#allocation2 + $0x84] ss:$20 sps:$4 sm:$0xff]   ;;  %v7408_v22 = vld [vmem:[#allocation2 + $0x80] ss:$20 sps:$4 sm:$0xff]   ;;  %v7394_v24 = vld [vmem:[#allocation2 + $0x11c] ss:$20 sps:$4 sm:$0xff]  }
 0x108   :  { %516 = vmatprep.subr.bf16.mxu0 %v7379_v5  ;;  %v7393_v21 = vld [vmem:[#allocation2 + $0xf0] ss:$20 sps:$4 sm:$0xff]   ;;  %v7409_v23 = vld [vmem:[#allocation2 + $0xac] ss:$20 sps:$4 sm:$0xff]   ;;  %v7411_v27 = vld [vmem:[#allocation2 + $0xa8] ss:$20 sps:$4 sm:$0xff]  }
 0x109   :  { %v7396_v25 = vld [vmem:[#allocation2 + $0x118] ss:$20 sps:$4 sm:$0xff]   ;;  %v227_v26 = vld [vmem:[%s9113_s0] sm:$0xff]  ;;  %v7412_v28 = vld [vmem:[#allocation2 + $0xd4] ss:$20 sps:$4 sm:$0xff]   ;;  %vm8615_vm0 = vmmov 0  }
 0x10a   :  { %556 = vmatpush1.bf16.msra.mxu1 %v7402_v14  ;;  %v8887_v29 = vpack.c.bf16 %v227_v26, %v227_v26  ;;  %v7414_v30 = vld [vmem:[#allocation2 + $0xd0] ss:$20 sps:$4 sm:$0xff]   ;;  %v7417_v34 = vld [vmem:[#allocation2 + $0xf8] ss:$20 sps:$4 sm:$0xff]   ;;  %v7420_v37 = vld [vmem:[#allocation2 + $0x120] ss:$20 sps:$4 sm:$0xff]  }
 0x10b   :  { %517 = vmatpush1.bf16.msra.mxu0 %v7381_v6  ;;  %557 = vmatprep.subr.bf16.mxu1 %v7403_v15  ;;  %v7415_v31 = vld [vmem:[#allocation2 + $0xfc] ss:$20 sps:$4 sm:$0xff]   ;;  %v7418_v35 = vld [vmem:[#allocation2 + $0x124] ss:$20 sps:$4 sm:$0xff]   ;;  %v7423_v38 = vld [vmem:[#allocation2 + $0x60] ss:$20 sps:$4 sm:$0xff]  }
 0x10c   :  { %518 = vmatprep.subr.bf16.mxu0 %v7382_v7  ;;  %v7421_v32 = vld [vmem:[#allocation2 + $0x10] ss:$20 sps:$4 sm:$0xff]   ;;  %v7422_v36 = vld [vmem:[#allocation2 + $0x38] ss:$20 sps:$4 sm:$0xff]   ;;  %v7424_v40 = vld [vmem:[#allocation2 + $0x88] ss:$20 sps:$4 sm:$0xff]  }
 0x10d   :  { %v7431_v39 = vld [vmem:[#allocation6 + $0x4] ss:$20 sps:$4 sm:$0xff]   ;;  %v7429_v41 = vld [vmem:[#allocation6] ss:$20 sps:$4 sm:$0xff]   ;;  %v7435_v44 = vld [vmem:[#allocation6 + $0x28] ss:$20 sps:$4 sm:$0xff]  }
 0x10e   :  { %558 = vmatpush1.bf16.msra.mxu1 %v7405_v18  ;;  %v7437_v42 = vld [vmem:[#allocation6 + $0x2c] ss:$20 sps:$4 sm:$0xff]   ;;  %v7443_v45 = vld [vmem:[#allocation6 + $0x54] ss:$20 sps:$4 sm:$0xff]   ;;  %v7441_v47 = vld [vmem:[#allocation6 + $0x50] ss:$20 sps:$4 sm:$0xff]  }
 0x10f   :  { %519 = vmatpush1.bf16.msra.mxu0 %v7384_v8  ;;  %559 = vmatprep.subr.bf16.mxu1 %v7406_v19  ;;  %v7425_v43 = vld [vmem:[#allocation2 + $0xb0] ss:$20 sps:$4 sm:$0xff]   ;;  %v7426_v46 = vld [vmem:[#allocation2 + $0xd8] ss:$20 sps:$4 sm:$0xff]   ;;  %v7427_v49 = vld [vmem:[#allocation2 + $0x100] ss:$20 sps:$4 sm:$0xff]  }
 0x110   :  { %520 = vmatprep.subr.bf16.mxu0 %v7385_v9  ;;  %v7449_v48 = vld [vmem:[#allocation6 + $0x7c] ss:$20 sps:$4 sm:$0xff]   ;;  %v7447_v50 = vld [vmem:[#allocation6 + $0x78] ss:$20 sps:$4 sm:$0xff]   ;;  %v7453_v53 = vld [vmem:[#allocation6 + $0xa0] ss:$20 sps:$4 sm:$0xff]  }
 0x111   :  { %v7455_v51 = vld [vmem:[#allocation6 + $0xa4] ss:$20 sps:$4 sm:$0xff]   ;;  %v7461_v54 = vld [vmem:[#allocation6 + $0xcc] ss:$20 sps:$4 sm:$0xff]   ;;  %v7432_v56 = vld [vmem:[#allocation6 + $0x8] ss:$20 sps:$4 sm:$0xff]  }
 0x112   :  { %560 = vmatpush1.bf16.msra.mxu1 %v7408_v22  ;;  %v7428_v52 = vld [vmem:[#allocation2 + $0x128] ss:$20 sps:$4 sm:$0xff]   ;;  %v7459_v57 = vld [vmem:[#allocation6 + $0xc8] ss:$20 sps:$4 sm:$0xff]  }
 0x113   :  { %521 = vmatpush1.bf16.msra.mxu0 %v7387_v13  ;;  %561 = vmatprep.subr.bf16.mxu1 %v7409_v23  ;;  %v7434_v55 = vld [vmem:[#allocation6 + $0xc] ss:$20 sps:$4 sm:$0xff]   ;;  %v7467_v58 = vld [vmem:[#allocation6 + $0xf4] ss:$20 sps:$4 sm:$0xff]   ;;  %v7438_v60 = vld [vmem:[#allocation6 + $0x30] ss:$20 sps:$4 sm:$0xff]  }
 0x114   :  { %522 = vmatprep.subr.bf16.mxu0 %v7388_v16  ;;  %v7440_v59 = vld [vmem:[#allocation6 + $0x34] ss:$20 sps:$4 sm:$0xff]   ;;  %v7446_v61 = vld [vmem:[#allocation6 + $0x5c] ss:$20 sps:$4 sm:$0xff]   ;;  %v7471_v1 = vld [vmem:[#allocation6 + $0x118] ss:$20 sps:$4 sm:$0xff]  }
 0x115   :  { %v7465_v62 = vld [vmem:[#allocation6 + $0xf0] ss:$20 sps:$4 sm:$0xff]   ;;  %v7444_v2 = vld [vmem:[#allocation6 + $0x58] ss:$20 sps:$4 sm:$0xff]   ;;  %v7477_v5 = vld [vmem:[#allocation6 + $0x140] ss:$20 sps:$4 sm:$0xff]  }
 0x116   :  { %562 = vmatpush1.bf16.msra.mxu1 %v7411_v27  ;;  %v7473_v63 = vld [vmem:[#allocation6 + $0x11c] ss:$20 sps:$4 sm:$0xff]   ;;  %v7479_v3 = vld [vmem:[#allocation6 + $0x144] ss:$20 sps:$4 sm:$0xff]   ;;  %v7450_v6 = vld [vmem:[#allocation6 + $0x80] ss:$20 sps:$4 sm:$0xff]  }
 0x117   :  { %523 = vmatpush1.bf16.msra.mxu0 %v7390_v17  ;;  %563 = vmatprep.subr.bf16.mxu1 %v7412_v28  ;;  %v7452_v4 = vld [vmem:[#allocation6 + $0x84] ss:$20 sps:$4 sm:$0xff]   ;;  %v7485_v7 = vld [vmem:[#allocation6 + $0x16c] ss:$20 sps:$4 sm:$0xff]   ;;  %v7483_v9 = vld [vmem:[#allocation6 + $0x168] ss:$20 sps:$4 sm:$0xff]  }
 0x118   :  { %524 = vmatprep.subr.bf16.mxu0 %v7391_v20  ;;  %v7458_v8 = vld [vmem:[#allocation6 + $0xac] ss:$20 sps:$4 sm:$0xff]   ;;  %v7456_v10 = vld [vmem:[#allocation6 + $0xa8] ss:$20 sps:$4 sm:$0xff]   ;;  %v7489_v13 = vld [vmem:[#allocation6 + $0x190] ss:$20 sps:$4 sm:$0xff]  }
 0x119   :  { %v7491_v11 = vld [vmem:[#allocation6 + $0x194] ss:$20 sps:$4 sm:$0xff]   ;;  %v7462_v14 = vld [vmem:[#allocation6 + $0xd0] ss:$20 sps:$4 sm:$0xff]   ;;  %v7495_v17 = vld [vmem:[#allocation6 + $0x1b8] ss:$20 sps:$4 sm:$0xff]  }
 0x11a   :  { %564 = vmatpush1.bf16.msra.mxu1 %v7414_v30  ;;  %v7464_v12 = vld [vmem:[#allocation6 + $0xd4] ss:$20 sps:$4 sm:$0xff]   ;;  %v7497_v15 = vld [vmem:[#allocation6 + $0x1bc] ss:$20 sps:$4 sm:$0xff]   ;;  %v7468_v18 = vld [vmem:[#allocation6 + $0xf8] ss:$20 sps:$4 sm:$0xff]  }
 0x11b   :  { %525 = vmatpush1.bf16.msra.mxu0 %v7393_v21  ;;  %565 = vmatprep.subr.bf16.mxu1 %v7415_v31  ;;  %v7470_v16 = vld [vmem:[#allocation6 + $0xfc] ss:$20 sps:$4 sm:$0xff]   ;;  %v7503_v19 = vld [vmem:[#allocation6 + $0x1e4] ss:$20 sps:$4 sm:$0xff]   ;;  %v7501_v21 = vld [vmem:[#allocation6 + $0x1e0] ss:$20 sps:$4 sm:$0xff]  }
 0x11c   :  { %526 = vmatprep.subr.bf16.mxu0 %v7394_v24  ;;  %v7476_v20 = vld [vmem:[#allocation6 + $0x124] ss:$20 sps:$4 sm:$0xff]   ;;  %v7474_v22 = vld [vmem:[#allocation6 + $0x120] ss:$20 sps:$4 sm:$0xff]   ;;  %v7480_v26 = vld [vmem:[#allocation6 + $0x148] ss:$20 sps:$4 sm:$0xff]  }
 0x11d   :  { %v7509_v23 = vld [vmem:[#allocation6 + $0x20c] ss:$20 sps:$4 sm:$0xff]   ;;  %v7488_v27 = vld [vmem:[#allocation6 + $0x174] ss:$20 sps:$4 sm:$0xff]   ;;  %v7486_v28 = vld [vmem:[#allocation6 + $0x170] ss:$20 sps:$4 sm:$0xff]  }
 0x11e   :  { %566 = vmatpush1.bf16.msra.mxu1 %v7417_v34  ;;  %v7482_v24 = vld [vmem:[#allocation6 + $0x14c] ss:$20 sps:$4 sm:$0xff]   ;;  %v7500_v31 = vld [vmem:[#allocation6 + $0x1c4] ss:$20 sps:$4 sm:$0xff]  }
 0x11f   :  { %527 = vmatpush1.bf16.msra.mxu0 %v7396_v25  ;;  %567 = vmatprep.subr.bf16.mxu1 %v7418_v35  ;;  %v7507_v25 = vld [vmem:[#allocation6 + $0x208] ss:$20 sps:$4 sm:$0xff]   ;;  %v7492_v30 = vld [vmem:[#allocation6 + $0x198] ss:$20 sps:$4 sm:$0xff]  }
 0x120   :  { %7160 = vmatprep.subr.bf16.mxu0 %v8614_v33  ;;  %v7506_v34 = vld [vmem:[#allocation6 + $0x1ec] ss:$20 sps:$4 sm:$0xff]   ;;  %v7504_v35 = vld [vmem:[#allocation6 + $0x1e8] ss:$20 sps:$4 sm:$0xff]  }
 0x122   :  { %545 = vmatmul.mubr.bf16.vlgmr.msra.gmra.mrb[0].mxu0 %v8887_v29  ;;  %568 = vmatpush1.bf16.msra.mxu1 %v7420_v37  ;;  %v7510_v37 = vld [vmem:[#allocation6 + $0x210] ss:$20 sps:$4 sm:$0xff]  }
 0x123   :  { %7161 = vmatpush3.bf16.msra.mxu0 %v7421_v32  ;;  %7176 = vmatprep.mubr.msk.bf16.mxu0 %vm8615_vm0, %v8614_v33  ;;  %v7498_v32 = vld [vmem:[#allocation6 + $0x1c0] ss:$20 sps:$4 sm:$0xff]  }
 0x124   :  { %7162 = vmatprep.subr.bf16.mxu0 %v8614_v33  ;;  %1951 = vmatprep.subr.bf16.mxu1 %v7431_v39  ;;  %v7513_v39 = vld [vmem:[#allocation6 + $0x230] ss:$20 sps:$4 sm:$0xff]  }
 0x125   :  { %586 = vmatmul.mubr.bf16.vlgmr.msra.gmra.mrb[0].mxu1 %v8887_v29 }
 0x126   :  { %1952 = vmatpush1.bf16.msra.mxu1 %v7429_v41  ;;  %v7516_v41 = vld [vmem:[#allocation6 + $0x238] ss:$20 sps:$4 sm:$0xff]  }
 0x127   :  { %7163 = vmatpush3.bf16.msra.mxu0 %v7422_v36  ;;  %1953 = vmatprep.subr.bf16.mxu1 %v7437_v42  ;;  %v7512_v36 = vld [vmem:[#allocation6 + $0x214] ss:$20 sps:$4 sm:$0xff]   ;;  %v7521_v42 = vld [vmem:[#allocation6 + $0x25c] ss:$20 sps:$4 sm:$0xff]  }
 0x128   :  { %7164 = vmatprep.subr.bf16.mxu0 %v8614_v33 }
 0x12a   :  { %1954 = vmatpush1.bf16.msra.mxu1 %v7435_v44  ;;  %v7524_v44 = vld [vmem:[#allocation6 + $0x264] ss:$20 sps:$4 sm:$0xff]  }
 0x12b   :  { %7165 = vmatpush3.bf16.msra.mxu0 %v7423_v38  ;;  %1955 = vmatprep.subr.bf16.mxu1 %v7443_v45  ;;  %v7515_v38 = vld [vmem:[#allocation6 + $0x234] ss:$20 sps:$4 sm:$0xff]  }
 0x12c   :  { %7166 = vmatprep.subr.bf16.mxu0 %v8614_v33  ;;  %v7522_v45 = vld [vmem:[#allocation6 + $0x260] ss:$20 sps:$4 sm:$0xff]  }
 0x12e   :  { %1956 = vmatpush1.bf16.msra.mxu1 %v7441_v47  ;;  %v7530_v47 = vld [vmem:[#allocation6 + $0x28c] ss:$20 sps:$4 sm:$0xff]  }
 0x12f   :  { %7167 = vmatpush3.bf16.msra.mxu0 %v7424_v40  ;;  %1957 = vmatprep.subr.bf16.mxu1 %v7449_v48  ;;  %v7518_v40 = vld [vmem:[#allocation6 + $0x23c] ss:$20 sps:$4 sm:$0xff]   ;;  %v279_v48 = vlaneseq }
 0x130   :  { %7168 = vmatprep.subr.bf16.mxu0 %v8614_v33 }
 0x132   :  { %1958 = vmatpush1.bf16.msra.mxu1 %v7447_v50  ;;  %v8904_v50 = vld [vmem:[#allocation4] sm:$0x1f] }
 0x133   :  { %7169 = vmatpush3.bf16.msra.mxu0 %v7425_v43  ;;  %1959 = vmatprep.subr.bf16.mxu1 %v7455_v51  ;;  %v7519_v43 = vld [vmem:[#allocation6 + $0x258] ss:$20 sps:$4 sm:$0xff]  }
 0x134   :  { %7170 = vmatprep.subr.bf16.mxu0 %v8614_v33 }
 0x136   :  { %1960 = vmatpush1.bf16.msra.mxu1 %v7453_v53 }
 0x137   :  { %7171 = vmatpush3.bf16.msra.mxu0 %v7426_v46  ;;  %1961 = vmatprep.subr.bf16.mxu1 %v7461_v54  ;;  %v7527_v46 = vld [vmem:[#allocation6 + $0x284] ss:$20 sps:$4 sm:$0xff]  }
 0x138   :  { %7172 = vmatprep.subr.bf16.mxu0 %v8614_v33 }
 0x13a   :  { %1962 = vmatpush1.bf16.msra.mxu1 %v7459_v57 }
 0x13b   :  { %7173 = vmatpush3.bf16.msra.mxu0 %v7427_v49  ;;  %1963 = vmatprep.subr.bf16.mxu1 %v7467_v58  ;;  %v8902_v49 = vshrl.u32 %v279_v48, 7  ;;  %v7573_v48 = vld [vmem:[#allocation6 + $0x3c0] ss:$20 sps:$4 sm:$0xff]  }
 0x13c   :  { %7174 = vmatprep.subr.bf16.mxu0 %v8614_v33 }
 0x13d   :  { %v8907_v51 = vsub.s32 0, %v8902_v49 }
 0x13e   :  { %1964 = vmatpush1.bf16.msra.mxu1 %v7465_v62 }
 0x13f   :  { %7175 = vmatpush3.bf16.msra.mxu0 %v7428_v52  ;;  %1965 = vmatprep.subr.bf16.mxu1 %v7473_v63  ;;  %v8910_v52 = vsub.s32 1, %v8902_v49  ;;  %v282_v53 = vrot.slane %v8904_v50, %v8907_v51  ;;  %v7525_v63 = vld [vmem:[#allocation6 + $0x280] ss:$20 sps:$4 sm:$0xff]  }
 0x140   :  { %2074 = vmatprep.subr.bf16.mxu0 %v7434_v55 }
 0x141   :  { %v286_v54 = vrot.slane %v8904_v50, %v8910_v52 }
 0x142   :  { %7177 = vmatmul.mubr.bf16.vlgmr.msra.gmra.mrb[4].mxu0 %v8887_v29  ;;  %1966 = vmatpush1.bf16.msra.mxu1 %v7471_v1  ;;  %v7494_v29 = vld [vmem:[#allocation6 + $0x19c] ss:$20 sps:$4 sm:$0xff]  }
 0x143   :  { %2075 = vmatpush1.bf16.msra.mxu0 %v7432_v56  ;;  %1967 = vmatprep.subr.bf16.mxu1 %v7479_v3  ;;  %v7528_v1 = vld [vmem:[#allocation6 + $0x288] ss:$20 sps:$4 sm:$0xff]  }
 0x144   :  { %2076 = vmatprep.subr.bf16.mxu0 %v7440_v59  ;;  %v7536_v3 = vld [vmem:[#allocation6 + $0x2b4] ss:$20 sps:$4 sm:$0xff]  }
 0x146   :  { %1968 = vmatpush1.bf16.msra.mxu1 %v7477_v5 }
 0x147   :  { %2077 = vmatpush1.bf16.msra.mxu0 %v7438_v60  ;;  %1969 = vmatprep.subr.bf16.mxu1 %v7485_v7  ;;  %v7531_v7 = vld [vmem:[#allocation6 + $0x2a8] ss:$20 sps:$4 sm:$0xff]  }
 0x148   :  { %2078 = vmatprep.subr.bf16.mxu0 %v7446_v61 }
 0x14a   :  { %1970 = vmatpush1.bf16.msra.mxu1 %v7483_v9  ;;  %v7539_v9 = vld [vmem:[#allocation6 + $0x2d4] ss:$20 sps:$4 sm:$0xff]  }
 0x14b   :  { %2079 = vmatpush1.bf16.msra.mxu0 %v7444_v2  ;;  %1971 = vmatprep.subr.bf16.mxu1 %v7491_v11  ;;  %v7533_v2 = vld [vmem:[#allocation6 + $0x2ac] ss:$20 sps:$4 sm:$0xff]   ;;  %v7542_v11 = vld [vmem:[#allocation6 + $0x2dc] ss:$20 sps:$4 sm:$0xff]  }
 0x14c   :  { %2080 = vmatprep.subr.bf16.mxu0 %v7452_v4  ;;  %v8917_v4 = vsub.s32 3, %v8902_v49 }
 0x14e   :  { %1972 = vmatpush1.bf16.msra.mxu1 %v7489_v13  ;;  %v7537_v13 = vld [vmem:[#allocation6 + $0x2d0] ss:$20 sps:$4 sm:$0xff]  }
 0x14f   :  { %2081 = vmatpush1.bf16.msra.mxu0 %v7450_v6  ;;  %1973 = vmatprep.subr.bf16.mxu1 %v7497_v15 }
 0x150   :  { %2082 = vmatprep.subr.bf16.mxu0 %v7458_v8  ;;  %v7534_v8 = vld [vmem:[#allocation6 + $0x2b0] ss:$20 sps:$4 sm:$0xff]  }
 0x152   :  { %1974 = vmatpush1.bf16.msra.mxu1 %v7495_v17 }
 0x153   :  { %2083 = vmatpush1.bf16.msra.mxu0 %v7456_v10  ;;  %1975 = vmatprep.subr.bf16.mxu1 %v7503_v19  ;;  %v294_v10 = vrot.slane %v8904_v50, %v8917_v4 }
 0x154   :  { %2084 = vmatprep.subr.bf16.mxu0 %v7464_v12 }
 0x156   :  { %1976 = vmatpush1.bf16.msra.mxu1 %v7501_v21 }
 0x157   :  { %2085 = vmatpush1.bf16.msra.mxu0 %v7462_v14  ;;  %1977 = vmatprep.subr.bf16.mxu1 %v7509_v23  ;;  %v7540_v14 = vld [vmem:[#allocation6 + $0x2d8] ss:$20 sps:$4 sm:$0xff]   ;;  %v7546_v23 = vld [vmem:[#allocation6 + $0x300] ss:$20 sps:$4 sm:$0xff]  }
 0x158   :  { %2086 = vmatprep.subr.bf16.mxu0 %v7470_v16  ;;  %v7545_v16 = vld [vmem:[#allocation6 + $0x2fc] ss:$20 sps:$4 sm:$0xff]  }
 0x15a   :  { %1978 = vmatpush1.bf16.msra.mxu1 %v7507_v25 }
 0x15b   :  { %2087 = vmatpush1.bf16.msra.mxu0 %v7468_v18  ;;  %1979 = vmatprep.subr.bf16.mxu1 %v7515_v38  ;;  %v7569_v38 = vld [vmem:[#allocation6 + $0x39c] ss:$20 sps:$4 sm:$0xff]  }
 0x15c   :  { %2088 = vmatprep.subr.bf16.mxu0 %v7476_v20  ;;  %v7548_v20 = vld [vmem:[#allocation6 + $0x304] ss:$20 sps:$4 sm:$0xff]  }
 0x15e   :  { %1980 = vmatpush1.bf16.msra.mxu1 %v7513_v39  ;;  %v7572_v39 = vld [vmem:[#allocation6 + $0x3a4] ss:$20 sps:$4 sm:$0xff]  }
 0x15f   :  { %2089 = vmatpush1.bf16.msra.mxu0 %v7474_v22  ;;  %1981 = vmatprep.subr.bf16.mxu1 %v7521_v42  ;;  %v7543_v22 = vld [vmem:[#allocation6 + $0x2f8] ss:$20 sps:$4 sm:$0xff]  }
 0x160   :  { %2090 = vmatprep.subr.bf16.mxu0 %v7482_v24  ;;  %v7551_v24 = vld [vmem:[#allocation6 + $0x324] ss:$20 sps:$4 sm:$0xff]  }
 0x162   :  { %1982 = vmatpush1.bf16.msra.mxu1 %v7519_v43  ;;  %v7575_v43 = vld [vmem:[#allocation6 + $0x3c4] ss:$20 sps:$4 sm:$0xff]  }
 0x163   :  { %2091 = vmatpush1.bf16.msra.mxu0 %v7480_v26  ;;  %1992 = vmatprep.subr.bf16.mxu1 %v7527_v46  ;;  %v7554_v26 = vld [vmem:[#allocation6 + $0x32c] ss:$20 sps:$4 sm:$0xff]  }
 0x164   :  { %2092 = vmatprep.subr.bf16.mxu0 %v7488_v27  ;;  %v7549_v27 = vld [vmem:[#allocation6 + $0x320] ss:$20 sps:$4 sm:$0xff]  }
 0x165   :  { %v7578_v46 = vld [vmem:[#allocation6 + $0x3cc] ss:$20 sps:$4 sm:$0xff]  }
 0x167   :  { %2093 = vmatpush1.bf16.msra.mxu0 %v7486_v28  ;;  %v7552_v28 = vld [vmem:[#allocation6 + $0x328] ss:$20 sps:$4 sm:$0xff]  }
 0x168   :  { %2094 = vmatprep.subr.bf16.mxu0 %v7494_v29  ;;  %v7557_v29 = vld [vmem:[#allocation6 + $0x34c] ss:$20 sps:$4 sm:$0xff]  }
 0x16b   :  { %2095 = vmatpush1.bf16.msra.mxu0 %v7492_v30  ;;  %v7560_v30 = vld [vmem:[#allocation6 + $0x354] ss:$20 sps:$4 sm:$0xff]  }
 0x16c   :  { %2096 = vmatprep.subr.bf16.mxu0 %v7500_v31  ;;  %v7555_v31 = vld [vmem:[#allocation6 + $0x348] ss:$20 sps:$4 sm:$0xff]  }
 0x16f   :  { %2097 = vmatpush1.bf16.msra.mxu0 %v7498_v32  ;;  %v7558_v32 = vld [vmem:[#allocation6 + $0x350] ss:$20 sps:$4 sm:$0xff]  }
 0x170   :  { %2098 = vmatprep.subr.bf16.mxu0 %v7506_v34  ;;  %v7563_v34 = vld [vmem:[#allocation6 + $0x374] ss:$20 sps:$4 sm:$0xff]  }
 0x173   :  { %2099 = vmatpush1.bf16.msra.mxu0 %v7504_v35  ;;  %v7566_v35 = vld [vmem:[#allocation6 + $0x37c] ss:$20 sps:$4 sm:$0xff]  }
 0x174   :  { %2100 = vmatprep.subr.bf16.mxu0 %v7512_v36  ;;  %v7561_v36 = vld [vmem:[#allocation6 + $0x370] ss:$20 sps:$4 sm:$0xff]  }
 0x177   :  { %2101 = vmatpush1.bf16.msra.mxu0 %v7510_v37  ;;  %v7564_v37 = vld [vmem:[#allocation6 + $0x378] ss:$20 sps:$4 sm:$0xff]  }
 0x178   :  { %2102 = vmatprep.subr.bf16.mxu0 %v7518_v40  ;;  %v7567_v40 = vld [vmem:[#allocation6 + $0x398] ss:$20 sps:$4 sm:$0xff]  }
 0x17b   :  { %2103 = vmatpush1.bf16.msra.mxu0 %v7516_v41  ;;  %v7570_v41 = vld [vmem:[#allocation6 + $0x3a0] ss:$20 sps:$4 sm:$0xff]  }
 0x17c   :  { %2104 = vmatprep.subr.bf16.mxu0 %v7524_v44 }
 0x17f   :  { %2105 = vmatpush1.bf16.msra.mxu0 %v7522_v45 }
 0x180   :  { %2115 = vmatprep.subr.bf16.mxu0 %v7530_v47 }
 0x1f5   :  { %v546_v55 = vpop.f32.mrb[0].mxu0 }
 0x1f6   :  { %v547_v56 = vadd.f32 %v546_v55, %v282_v53  ;;  %v548_v57 = vpop.f32.mrb[1].mxu0  ;;  %v7576_v53 = vld [vmem:[#allocation6 + $0x3c8] ss:$20 sps:$4 sm:$0xff]  }
 0x1f7   :  { %v549_v58 = vadd.f32 %v548_v57, %v286_v54  ;;  %v550_v59 = vpop.f32.mrb[2].mxu0  ;;  %v7581_v54 = vld [vmem:[#allocation6 + $0x3ec] ss:$20 sps:$4 sm:$0xff]   ;;  %v7584_v55 = vld [vmem:[#allocation6 + $0x3f4] ss:$20 sps:$4 sm:$0xff]  }
 0x1f8   :  { %v634_v60 = vmax.f32 %v547_v56, 0.0  ;;  %v551_v61 = vpop.f32.mrb[3].mxu0  ;;  %v8929_v12 = vpop.f32.mrb[0].mxu1  ;;  %v7579_v56 = vld [vmem:[#allocation6 + $0x3e8] ss:$20 sps:$4 sm:$0xff]  }
 0x1f9   :  { %v635_v62 = vmax.f32 %v549_v58, 0.0  ;;  %v589_v15 = vpop.f32.mrb[1].mxu1  ;;  %v7582_v57 = vld [vmem:[#allocation6 + $0x3f0] ss:$20 sps:$4 sm:$0xff]   ;;  %v7587_v58 = vld [vmem:[#allocation6 + $0x414] ss:$20 sps:$4 sm:$0xff]  }
 0x1fa   :  { %v8921_v6 = vpack.c.bf16 %v634_v60, %v634_v60  ;;  %v590_v17 = vadd.f32 %v589_v15, %v294_v10  ;;  %v591_v18 = vpop.f32.mrb[2].mxu1  ;;  %v7590_v59 = vld [vmem:[#allocation6 + $0x41c] ss:$20 sps:$4 sm:$0xff]   ;;  %v7588_v61 = vld [vmem:[#allocation6 + $0x418] ss:$20 sps:$4 sm:$0xff]  }
 0x1fb   :  { %v8919_v5 = vpack.c.bf16 %v635_v62, %v635_v62  ;;  %v592_v19 = vpop.f32.mrb[3].mxu1  ;;  %v7585_v60 = vld [vmem:[#allocation6 + $0x410] ss:$20 sps:$4 sm:$0xff]   ;;  %v7600_v10 = vld [vmem:[#allocation6 + $0x468] ss:$20 sps:$4 sm:$0xff]  }
 0x1fc   :  { %v637_v21 = vmax.f32 %v590_v17, 0.0  ;;  %v7593_v62 = vld [vmem:[#allocation6 + $0x43c] ss:$20 sps:$4 sm:$0xff]   ;;  %v7611_v17 = vld [vmem:[#allocation6 + $0x4b4] ss:$20 sps:$4 sm:$0xff]  }
 0x1fd   :  { %1983 = vmatprep.mubr.bf16.mxu1 %v8919_v5  ;;  %2106 = vmatprep.mubr.bf16.mxu0 %v8919_v5  ;;  %v7603_v15 = vld [vmem:[#allocation6 + $0x488] ss:$20 sps:$4 sm:$0xff]   ;;  %v7609_v19 = vld [vmem:[#allocation6 + $0x4b0] ss:$20 sps:$4 sm:$0xff]  }
 0x1fe   :  { %1984 = vmatmul.mubr.bf16.vlgmr.msra.gmra.mrb[4].mxu1 %v8921_v6  ;;  %2107 = vmatmul.mubr.bf16.vlgmr.msra.gmra.mrb[8].mxu0 %v8921_v6  ;;  %v8931_v25 = vpack.c.bf16 %v637_v21, %v637_v21  ;;  %v7614_v18 = vld [vmem:[#allocation6 + $0x4bc] ss:$20 sps:$4 sm:$0xff]  }
 0x1ff   :  { %1993 = vmatpush1.bf16.msra.mxu1 %v7525_v63  ;;  %2116 = vmatpush1.bf16.msra.mxu0 %v7528_v1  ;;  %v7596_v63 = vld [vmem:[#allocation6 + $0x444] ss:$20 sps:$4 sm:$0xff]  }
 0x200   :  { %1994 = vmatprep.subr.bf16.mxu1 %v7533_v2  ;;  %2117 = vmatprep.subr.bf16.mxu0 %v7536_v3  ;;  %v7591_v1 = vld [vmem:[#allocation6 + $0x438] ss:$20 sps:$4 sm:$0xff]   ;;  %v7594_v2 = vld [vmem:[#allocation6 + $0x440] ss:$20 sps:$4 sm:$0xff]  }
 0x201   :  { %2024 = vmatprep.mubr.bf16.mxu1 %v8931_v25  ;;  %2147 = vmatprep.mubr.bf16.mxu0 %v8931_v25  ;;  %v7599_v3 = vld [vmem:[#allocation6 + $0x464] ss:$20 sps:$4 sm:$0xff]  }
 0x203   :  { %1995 = vmatpush1.bf16.msra.mxu1 %v7531_v7  ;;  %2118 = vmatpush1.bf16.msra.mxu0 %v7534_v8  ;;  %v7602_v7 = vld [vmem:[#allocation6 + $0x46c] ss:$20 sps:$4 sm:$0xff]   ;;  %v8938_v8 = vsub.s32 2, %v8902_v49 }
 0x204   :  { %1996 = vmatprep.subr.bf16.mxu1 %v7539_v9  ;;  %2119 = vmatprep.subr.bf16.mxu0 %v7542_v11  ;;  %v7597_v9 = vld [vmem:[#allocation6 + $0x460] ss:$20 sps:$4 sm:$0xff]  }
 0x205   :  { %v7605_v11 = vld [vmem:[#allocation6 + $0x48c] ss:$20 sps:$4 sm:$0xff]  }
 0x207   :  { %1997 = vmatpush1.bf16.msra.mxu1 %v7537_v13  ;;  %2120 = vmatpush1.bf16.msra.mxu0 %v7540_v14  ;;  %v7608_v13 = vld [vmem:[#allocation6 + $0x494] ss:$20 sps:$4 sm:$0xff]   ;;  %v290_v14 = vrot.slane %v8904_v50, %v8938_v8 }
 0x208   :  { %1998 = vmatprep.subr.bf16.mxu1 %v7545_v16  ;;  %2121 = vmatprep.subr.bf16.mxu0 %v7548_v20  ;;  %v7606_v16 = vld [vmem:[#allocation6 + $0x490] ss:$20 sps:$4 sm:$0xff]   ;;  %v7612_v20 = vld [vmem:[#allocation6 + $0x4b8] ss:$20 sps:$4 sm:$0xff]  }
 0x209   :  { %v588_v21 = vadd.f32 %v8929_v12, %v290_v14  ;;  %v7629_v12 = vld [vmem:[#allocation6 + $0x52c] ss:$20 sps:$4 sm:$0xff]   ;;  %v7672_v14 = vld [vmem:[#allocation6 + $0x290] ss:$20 sps:$4 sm:$0xff]  }
 0x20b   :  { %1999 = vmatpush1.bf16.msra.mxu1 %v7543_v22  ;;  %2122 = vmatpush1.bf16.msra.mxu0 %v7546_v23  ;;  %v7617_v22 = vld [vmem:[#allocation6 + $0x4dc] ss:$20 sps:$4 sm:$0xff]   ;;  %v7620_v23 = vld [vmem:[#allocation6 + $0x4e4] ss:$20 sps:$4 sm:$0xff]  }
 0x20c   :  { %2000 = vmatprep.subr.bf16.mxu1 %v7551_v24  ;;  %2123 = vmatprep.subr.bf16.mxu0 %v7554_v26  ;;  %v7615_v24 = vld [vmem:[#allocation6 + $0x4d8] ss:$20 sps:$4 sm:$0xff]   ;;  %v7618_v26 = vld [vmem:[#allocation6 + $0x4e0] ss:$20 sps:$4 sm:$0xff]  }
 0x20f   :  { %2001 = vmatpush1.bf16.msra.mxu1 %v7549_v27  ;;  %2124 = vmatpush1.bf16.msra.mxu0 %v7552_v28  ;;  %v636_v27 = vmax.f32 %v588_v21, 0.0  ;;  %v7623_v28 = vld [vmem:[#allocation6 + $0x504] ss:$20 sps:$4 sm:$0xff]   ;;  %v7679_v21 = vld [vmem:[#allocation6 + $0x60] ss:$20 sps:$4 sm:$0xff]  }
 0x210   :  { %2002 = vmatprep.subr.bf16.mxu1 %v7557_v29  ;;  %2125 = vmatprep.subr.bf16.mxu0 %v7560_v30  ;;  %v7626_v29 = vld [vmem:[#allocation6 + $0x50c] ss:$20 sps:$4 sm:$0xff]  }
 0x211   :  { %v7621_v30 = vld [vmem:[#allocation6 + $0x500] ss:$20 sps:$4 sm:$0xff]  }
 0x213   :  { %2003 = vmatpush1.bf16.msra.mxu1 %v7555_v31  ;;  %2126 = vmatpush1.bf16.msra.mxu0 %v7558_v32  ;;  %v7624_v31 = vld [vmem:[#allocation6 + $0x508] ss:$20 sps:$4 sm:$0xff]   ;;  %v8943_v32 = vpack.c.bf16 %v636_v27, %v636_v27 }
 0x214   :  { %2004 = vmatprep.subr.bf16.mxu1 %v7563_v34  ;;  %2127 = vmatprep.subr.bf16.mxu0 %v7566_v35  ;;  %v7632_v34 = vld [vmem:[#allocation6 + $0x534] ss:$20 sps:$4 sm:$0xff]  }
 0x215   :  { %v8935_v42 = vpop.f32.mrb[4].mxu0  ;;  %v7627_v35 = vld [vmem:[#allocation6 + $0x528] ss:$20 sps:$4 sm:$0xff]  }
 0x216   :  { %v7178_v44 = vpop.f32.mrb[5].mxu0  ;;  %v7684_v27 = vld [vmem:[#allocation6 + $0x308] ss:$20 sps:$4 sm:$0xff]  }
 0x217   :  { %2005 = vmatpush1.bf16.msra.mxu1 %v7561_v36  ;;  %2128 = vmatpush1.bf16.msra.mxu0 %v7564_v37  ;;  %v631_v45 = vpop.f32.mrb[6].mxu0  ;;  %v7630_v36 = vld [vmem:[#allocation6 + $0x530] ss:$20 sps:$4 sm:$0xff]   ;;  %v7635_v37 = vld [vmem:[#allocation6 + $0x554] ss:$20 sps:$4 sm:$0xff]   ;;  %v8950_v44 = vsub.s32 4, %v8902_v49 }
 0x218   :  { %2006 = vmatprep.subr.bf16.mxu1 %v7569_v38  ;;  %2129 = vmatprep.subr.bf16.mxu0 %v7572_v39  ;;  %v7179_v47 = vpop.f32.mrb[7].mxu0  ;;  %v7638_v38 = vld [vmem:[#allocation6 + $0x55c] ss:$20 sps:$4 sm:$0xff]   ;;  %v7639_v45 = vld [vmem:[#allocation6 + $0x578] ss:$20 sps:$4 sm:$0xff]  }
 0x219   :  { %v7633_v39 = vld [vmem:[#allocation6 + $0x550] ss:$20 sps:$4 sm:$0xff]  }
 0x21a   :  { %v7647_v47 = vld [vmem:[#allocation6 + $0x5a4] ss:$20 sps:$4 sm:$0xff]  }
 0x21b   :  { %2007 = vmatpush1.bf16.msra.mxu1 %v7567_v40  ;;  %2130 = vmatpush1.bf16.msra.mxu0 %v7570_v41  ;;  %v7636_v40 = vld [vmem:[#allocation6 + $0x558] ss:$20 sps:$4 sm:$0xff]   ;;  %v7641_v41 = vld [vmem:[#allocation6 + $0x57c] ss:$20 sps:$4 sm:$0xff]  }
 0x21c   :  { %2008 = vmatprep.subr.bf16.mxu1 %v7575_v43  ;;  %2131 = vmatprep.subr.bf16.mxu0 %v7578_v46  ;;  %v7644_v43 = vld [vmem:[#allocation6 + $0x584] ss:$20 sps:$4 sm:$0xff]   ;;  %v7642_v46 = vld [vmem:[#allocation6 + $0x580] ss:$20 sps:$4 sm:$0xff]  }
 0x21f   :  { %2009 = vmatpush1.bf16.msra.mxu1 %v7573_v48  ;;  %2132 = vmatpush1.bf16.msra.mxu0 %v7576_v53  ;;  %v7650_v48 = vld [vmem:[#allocation6 + $0x5ac] ss:$20 sps:$4 sm:$0xff]   ;;  %v298_v53 = vrot.slane %v8904_v50, %v8950_v44  ;;  %v7657_v50 = vld [vmem:[#allocation6 + $0x5f0] ss:$20 sps:$4 sm:$0xff]  }
 0x220   :  { %2010 = vmatprep.subr.bf16.mxu1 %v7581_v54  ;;  %2133 = vmatprep.subr.bf16.mxu0 %v7584_v55  ;;  %v7645_v54 = vld [vmem:[#allocation6 + $0x5a0] ss:$20 sps:$4 sm:$0xff]   ;;  %v7648_v55 = vld [vmem:[#allocation6 + $0x5a8] ss:$20 sps:$4 sm:$0xff]  }
 0x223   :  { %2011 = vmatpush1.bf16.msra.mxu1 %v7579_v56  ;;  %2134 = vmatpush1.bf16.msra.mxu0 %v7582_v57  ;;  %v7653_v56 = vld [vmem:[#allocation6 + $0x5cc] ss:$20 sps:$4 sm:$0xff]   ;;  %v7656_v57 = vld [vmem:[#allocation6 + $0x5d4] ss:$20 sps:$4 sm:$0xff]  }
 0x224   :  { %2012 = vmatprep.subr.bf16.mxu1 %v7587_v58  ;;  %2135 = vmatprep.subr.bf16.mxu0 %v7590_v59  ;;  %v629_v58 = vadd.f32 %v8935_v42, %v298_v53  ;;  %v7651_v59 = vld [vmem:[#allocation6 + $0x5c8] ss:$20 sps:$4 sm:$0xff]   ;;  %v7663_v42 = vld [vmem:[#allocation6 + $0x618] ss:$20 sps:$4 sm:$0xff]  }
 0x225   :  { %v7702_v53 = vld [vmem:[#allocation6 + $0x538] ss:$20 sps:$4 sm:$0xff]  }
 0x227   :  { %2013 = vmatpush1.bf16.msra.mxu1 %v7585_v60  ;;  %2136 = vmatpush1.bf16.msra.mxu0 %v7588_v61  ;;  %v7654_v60 = vld [vmem:[#allocation6 + $0x5d0] ss:$20 sps:$4 sm:$0xff]   ;;  %v638_v61 = vmax.f32 %v629_v58, 0.0 }
 0x228   :  { %2014 = vmatprep.subr.bf16.mxu1 %v7593_v62  ;;  %2137 = vmatprep.subr.bf16.mxu0 %v7596_v63  ;;  %v7659_v62 = vld [vmem:[#allocation6 + $0x5f4] ss:$20 sps:$4 sm:$0xff]   ;;  %v7662_v63 = vld [vmem:[#allocation6 + $0x5fc] ss:$20 sps:$4 sm:$0xff]  }
 0x229   :  { %v7723_v58 = vld [vmem:[#allocation9 + $0x18] sm:$0xff]  }
 0x22b   :  { %2015 = vmatpush1.bf16.msra.mxu1 %v7591_v1  ;;  %2138 = vmatpush1.bf16.msra.mxu0 %v7594_v2  ;;  %v7660_v1 = vld [vmem:[#allocation6 + $0x5f8] ss:$20 sps:$4 sm:$0xff]   ;;  %v7665_v2 = vld [vmem:[#allocation6 + $0x61c] ss:$20 sps:$4 sm:$0xff]  }
 0x22c   :  { %2016 = vmatprep.subr.bf16.mxu1 %v7599_v3  ;;  %2139 = vmatprep.subr.bf16.mxu0 %v7602_v7  ;;  %v7668_v3 = vld [vmem:[#allocation6 + $0x624] ss:$20 sps:$4 sm:$0xff]   ;;  %v7666_v7 = vld [vmem:[#allocation6 + $0x620] ss:$20 sps:$4 sm:$0xff]  }
 0x22f   :  { %2017 = vmatpush1.bf16.msra.mxu1 %v7597_v9  ;;  %2140 = vmatpush1.bf16.msra.mxu0 %v7600_v10  ;;  %v7669_v9 = vld [vmem:[#allocation6 + $0x150] ss:$20 sps:$4 sm:$0xff]  }
 0x230   :  { %2018 = vmatprep.subr.bf16.mxu1 %v7605_v11  ;;  %2141 = vmatprep.subr.bf16.mxu0 %v7608_v13  ;;  %v7670_v10 = vld [vmem:[#allocation6 + $0x3d0] ss:$20 sps:$4 sm:$0xff]   ;;  %v8955_v13 = vpack.c.bf16 %v638_v61, %v638_v61 }
 0x231   :  { %v7671_v11 = vld [vmem:[#allocation6 + $0x10] ss:$20 sps:$4 sm:$0xff]  }
 0x232   :  { %v7727_v61 = vld [vmem:[#allocation9 + $0x20] sm:$0xff]  }
 0x233   :  { %2019 = vmatpush1.bf16.msra.mxu1 %v7603_v15  ;;  %2142 = vmatpush1.bf16.msra.mxu0 %v7606_v16  ;;  %v7673_v15 = vld [vmem:[#allocation6 + $0x178] ss:$20 sps:$4 sm:$0xff]  }
 0x234   :  { %2020 = vmatprep.subr.bf16.mxu1 %v7611_v17  ;;  %2143 = vmatprep.subr.bf16.mxu0 %v7614_v18  ;;  %v7674_v16 = vld [vmem:[#allocation6 + $0x3f8] ss:$20 sps:$4 sm:$0xff]  }
 0x235   :  { %v7675_v17 = vld [vmem:[#allocation6 + $0x38] ss:$20 sps:$4 sm:$0xff]  }
 0x236   :  { %v7676_v18 = vld [vmem:[#allocation6 + $0x2b8] ss:$20 sps:$4 sm:$0xff]  }
 0x237   :  { %2021 = vmatpush1.bf16.msra.mxu1 %v7609_v19  ;;  %2144 = vmatpush1.bf16.msra.mxu0 %v7612_v20  ;;  %v7677_v19 = vld [vmem:[#allocation6 + $0x1a0] ss:$20 sps:$4 sm:$0xff]  }
 0x238   :  { %2022 = vmatprep.subr.bf16.mxu1 %v7617_v22  ;;  %2145 = vmatprep.subr.bf16.mxu0 %v7620_v23  ;;  %v7678_v20 = vld [vmem:[#allocation6 + $0x420] ss:$20 sps:$4 sm:$0xff]   ;;  %v7681_v23 = vld [vmem:[#allocation6 + $0x1c8] ss:$20 sps:$4 sm:$0xff]  }
 0x239   :  { %v7680_v22 = vld [vmem:[#allocation6 + $0x2e0] ss:$20 sps:$4 sm:$0xff]  }
 0x23b   :  { %2023 = vmatpush1.bf16.msra.mxu1 %v7615_v24  ;;  %2146 = vmatpush1.bf16.msra.mxu0 %v7618_v26  ;;  %v7682_v24 = vld [vmem:[#allocation6 + $0x448] ss:$20 sps:$4 sm:$0xff]  }
 0x23c   :  { %2033 = vmatprep.subr.bf16.mxu1 %v7623_v28  ;;  %2156 = vmatprep.subr.bf16.mxu0 %v7626_v29  ;;  %v7683_v26 = vld [vmem:[#allocation6 + $0x88] ss:$20 sps:$4 sm:$0xff]   ;;  %v7685_v28 = vld [vmem:[#allocation6 + $0x1f0] ss:$20 sps:$4 sm:$0xff]  }
 0x23d   :  { %v7686_v29 = vld [vmem:[#allocation6 + $0x470] ss:$20 sps:$4 sm:$0xff]  }
 0x23e   :  { %2025 = vmatmul.mubr.bf16.vlgmr.msra.gmra.mrb[4].mxu1 %v8943_v32  ;;  %2148 = vmatmul.mubr.bf16.vlgmr.msra.gmra.mrb[8].mxu0 %v8943_v32 }
 0x23f   :  { %2034 = vmatpush1.bf16.msra.mxu1 %v7621_v30  ;;  %2157 = vmatpush1.bf16.msra.mxu0 %v7624_v31  ;;  %v7689_v30 = vld [vmem:[#allocation6 + $0x218] ss:$20 sps:$4 sm:$0xff]  }
 0x240   :  { %2035 = vmatprep.subr.bf16.mxu1 %v7629_v12  ;;  %2158 = vmatprep.subr.bf16.mxu0 %v7632_v34  ;;  %v7690_v31 = vld [vmem:[#allocation6 + $0x498] ss:$20 sps:$4 sm:$0xff]  }
 0x241   :  { %2065 = vmatprep.mubr.bf16.mxu1 %v8613_v0  ;;  %2188 = vmatprep.mubr.bf16.mxu0 %v8613_v0  ;;  %v7691_v12 = vld [vmem:[#allocation6 + $0xd8] ss:$20 sps:$4 sm:$0xff]  }
 0x242   :  { %v7692_v34 = vld [vmem:[#allocation6 + $0x358] ss:$20 sps:$4 sm:$0xff]  }
 0x243   :  { %2036 = vmatpush1.bf16.msra.mxu1 %v7627_v35  ;;  %2159 = vmatpush1.bf16.msra.mxu0 %v7630_v36  ;;  %v7693_v35 = vld [vmem:[#allocation6 + $0x240] ss:$20 sps:$4 sm:$0xff]  }
 0x244   :  { %2037 = vmatprep.subr.bf16.mxu1 %v7635_v37  ;;  %2160 = vmatprep.subr.bf16.mxu0 %v7638_v38  ;;  %v7694_v36 = vld [vmem:[#allocation6 + $0x4c0] ss:$20 sps:$4 sm:$0xff]  }
 0x245   :  { %v7695_v37 = vld [vmem:[#allocation6 + $0x100] ss:$20 sps:$4 sm:$0xff]  }
 0x246   :  { %v7696_v38 = vld [vmem:[#allocation6 + $0x380] ss:$20 sps:$4 sm:$0xff]  }
 0x247   :  { %2038 = vmatpush1.bf16.msra.mxu1 %v7633_v39  ;;  %2161 = vmatpush1.bf16.msra.mxu0 %v7636_v40  ;;  %v7697_v39 = vld [vmem:[#allocation6 + $0x268] ss:$20 sps:$4 sm:$0xff]  }
 0x248   :  { %2039 = vmatprep.subr.bf16.mxu1 %v7641_v41  ;;  %2162 = vmatprep.subr.bf16.mxu0 %v7644_v43  ;;  %v7698_v40 = vld [vmem:[#allocation6 + $0x4e8] ss:$20 sps:$4 sm:$0xff]  }
 0x249   :  { %v7699_v41 = vld [vmem:[#allocation6 + $0x128] ss:$20 sps:$4 sm:$0xff]  }
 0x24a   :  { %v7700_v43 = vld [vmem:[#allocation6 + $0x3a8] ss:$20 sps:$4 sm:$0xff]  }
 0x24b   :  { %2040 = vmatpush1.bf16.msra.mxu1 %v7639_v45  ;;  %2163 = vmatpush1.bf16.msra.mxu0 %v7642_v46  ;;  %v7709_v45 = vld [vmem:[#allocation9 + $0x40] sm:$0xff]  }
 0x24c   :  { %2041 = vmatprep.subr.bf16.mxu1 %v7647_v47  ;;  %2164 = vmatprep.subr.bf16.mxu0 %v7650_v48  ;;  %v7701_v46 = vld [vmem:[#allocation6 + $0x510] ss:$20 sps:$4 sm:$0xff]  }
 0x24d   :  { %v7711_v47 = vld [vmem:[#allocation9] sm:$0xff]   ;;  %v7713_v48 = vld [vmem:[#allocation9 + $0x48] sm:$0xff]  }
 0x24f   :  { %2042 = vmatpush1.bf16.msra.mxu1 %v7645_v54  ;;  %2165 = vmatpush1.bf16.msra.mxu0 %v7648_v55  ;;  %v7715_v54 = vld [vmem:[#allocation9 + $0x8] sm:$0xff]   ;;  %v7717_v55 = vld [vmem:[#allocation9 + $0x50] sm:$0xff]  }
 0x250   :  { %2043 = vmatprep.subr.bf16.mxu1 %v7653_v56  ;;  %2166 = vmatprep.subr.bf16.mxu0 %v7656_v57  ;;  %v7703_v56 = vld [vmem:[#allocation6 + $0x560] ss:$20 sps:$4 sm:$0xff]  }
 0x251   :  { %v7721_v57 = vld [vmem:[#allocation9 + $0x58] sm:$0xff]  }
 0x253   :  { %2044 = vmatpush1.bf16.msra.mxu1 %v7651_v59  ;;  %2167 = vmatpush1.bf16.msra.mxu0 %v7654_v60  ;;  %v7725_v59 = vld [vmem:[#allocation9 + $0x60] sm:$0xff]  }
 0x254   :  { %2045 = vmatprep.subr.bf16.mxu1 %v7659_v62  ;;  %2168 = vmatprep.subr.bf16.mxu0 %v7662_v63  ;;  %v7705_v60 = vld [vmem:[#allocation6 + $0x5b0] ss:$20 sps:$4 sm:$0xff]   ;;  %v7706_v63 = vld [vmem:[#allocation6 + $0x5d8] ss:$20 sps:$4 sm:$0xff]  }
 0x255   :  { %v7729_v62 = vld [vmem:[#allocation9 + $0x68] sm:$0xff]  }
 0x257   :  { %2046 = vmatpush1.bf16.msra.mxu1 %v7657_v50  ;;  %2169 = vmatpush1.bf16.msra.mxu0 %v7660_v1  ;;  %v7731_v50 = vld [vmem:[#allocation9 + $0x28] sm:$0xff]  }
 0x258   :  { %2047 = vmatprep.subr.bf16.mxu1 %v7665_v2  ;;  %2170 = vmatprep.subr.bf16.mxu0 %v7668_v3  ;;  %v7707_v1 = vld [vmem:[#allocation6 + $0x600] ss:$20 sps:$4 sm:$0xff]   ;;  %v7708_v2 = vld [vmem:[#allocation6 + $0x628] ss:$20 sps:$4 sm:$0xff]  }
 0x259   :  { %v7710_v3 = vld [vmem:[#allocation9 + $0xc0] sm:$0xff]  }
 0x25b   :  { %2048 = vmatpush1.bf16.msra.mxu1 %v7663_v42  ;;  %2171 = vmatpush1.bf16.msra.mxu0 %v7666_v7  ;;  %v7712_v42 = vld [vmem:[#allocation9 + $0x80] sm:$0xff]   ;;  %v7714_v7 = vld [vmem:[#allocation9 + $0xc8] sm:$0xff]  }
 0x25c   :  { %6908 = vmatprep.subr.bf16.mxu1 %v7669_v9  ;;  %6930 = vmatprep.subr.bf16.mxu0 %v7670_v10  ;;  %v7716_v9 = vld [vmem:[#allocation9 + $0x88] sm:$0xff]   ;;  %v7718_v10 = vld [vmem:[#allocation9 + $0xd0] sm:$0xff]  }
 0x25e   :  { %2066 = vmatmul.mubr.bf16.vlgmr.msra.gmra.mrb[4].mxu1 %v8955_v13  ;;  %2189 = vmatmul.mubr.bf16.vlgmr.msra.gmra.mrb[8].mxu0 %v8955_v13 }
 0x25f   :  { %6909 = vmatpush3.bf16.msra.mxu1 %v7671_v11  ;;  %2229 = vmatprep.mubr.bf16.mxu1 %v8919_v5  ;;  %v7687_v5 = vld [vmem:[#allocation6 + $0xb0] ss:$20 sps:$4 sm:$0xff]   ;;  %v7720_v11 = vld [vmem:[#allocation9 + $0x90] sm:$0xff]  }
 0x260   :  { %6931 = vmatpush3.bf16.msra.mxu0 %v7672_v14  ;;  %2269 = vmatprep.mubr.bf16.mxu0 %v8931_v25  ;;  %v7688_v25 = vld [vmem:[#allocation6 + $0x330] ss:$20 sps:$4 sm:$0xff]  }
 0x261   :  { %6910 = vmatprep.subr.bf16.mxu1 %v7673_v15  ;;  %6932 = vmatprep.subr.bf16.mxu0 %v7674_v16  ;;  %v7722_v14 = vld [vmem:[#allocation9 + $0xd8] sm:$0xff]   ;;  %v7726_v16 = vld [vmem:[#allocation9 + $0xe0] sm:$0xff]  }
 0x262   :  { %v7724_v15 = vld [vmem:[#allocation9 + $0x98] sm:$0xff]  }
 0x263   :  { %6911 = vmatpush3.bf16.msra.mxu1 %v7675_v17  ;;  %v7728_v17 = vld [vmem:[#allocation9 + $0xa0] sm:$0xff]  }
 0x264   :  { %6933 = vmatpush3.bf16.msra.mxu0 %v7676_v18  ;;  %6912 = vmatprep.subr.bf16.mxu1 %v7677_v19  ;;  %v7730_v18 = vld [vmem:[#allocation9 + $0xe8] sm:$0xff]  }
 0x265   :  { %6934 = vmatprep.subr.bf16.mxu0 %v7678_v20  ;;  %v7732_v19 = vld [vmem:[#allocation9 + $0xa8] sm:$0xff]   ;;  %v7734_v20 = vld [vmem:[#allocation9 + $0xf0] sm:$0xff]  }
 0x267   :  { %6913 = vmatpush3.bf16.msra.mxu1 %v7679_v21  ;;  %v7735_v21 = vld [vmem:[#allocation9 + $0x30] sm:$0xff]  }
 0x268   :  { %6935 = vmatpush3.bf16.msra.mxu0 %v7680_v22  ;;  %6914 = vmatprep.subr.bf16.mxu1 %v7681_v23  ;;  %v7736_v22 = vld [vmem:[#allocation9 + $0xb0] sm:$0xff]   ;;  %v7737_v23 = vld [vmem:[#allocation9 + $0x78] sm:$0xff]  }
 0x269   :  { %6936 = vmatprep.subr.bf16.mxu0 %v7682_v24  ;;  %v7738_v24 = vld [vmem:[#allocation9 + $0xf8] sm:$0xff]  }
 0x26b   :  { %6915 = vmatpush3.bf16.msra.mxu1 %v7683_v26  ;;  %v7739_v26 = vld [vmem:[#allocation9 + $0x38] sm:$0xff]  }
 0x26c   :  { %6937 = vmatpush3.bf16.msra.mxu0 %v7684_v27  ;;  %6916 = vmatprep.subr.bf16.mxu1 %v7685_v28  ;;  %v7740_v27 = vld [vmem:[#allocation9 + $0xb8] sm:$0xff]  }
 0x26d   :  { %6938 = vmatprep.subr.bf16.mxu0 %v7686_v29  ;;  %v8975_v28 = vld [vmem:[#allocation7] sm:$0x1f] }
 0x26e   :  { %v889_v29 = vrot.slane %v8975_v28, %v8907_v51 }
 0x26f   :  { %6917 = vmatpush3.bf16.msra.mxu1 %v7687_v5  ;;  %v897_v5 = vrot.slane %v8975_v28, %v8938_v8 }
 0x270   :  { %6939 = vmatpush3.bf16.msra.mxu0 %v7688_v25  ;;  %6918 = vmatprep.subr.bf16.mxu1 %v7689_v30  ;;  %v893_v25 = vrot.slane %v8975_v28, %v8910_v52  ;;  %v901_v30 = vrot.slane %v8975_v28, %v8917_v4 }
 0x271   :  { %6940 = vmatprep.subr.bf16.mxu0 %v7690_v31 }
 0x273   :  { %6919 = vmatpush3.bf16.msra.mxu1 %v7691_v12 }
 0x274   :  { %6941 = vmatpush3.bf16.msra.mxu0 %v7692_v34  ;;  %6920 = vmatprep.subr.bf16.mxu1 %v7693_v35 }
 0x275   :  { %6942 = vmatprep.subr.bf16.mxu0 %v7694_v36 }
 0x277   :  { %6921 = vmatpush3.bf16.msra.mxu1 %v7695_v37 }
 0x278   :  { %6943 = vmatpush3.bf16.msra.mxu0 %v7696_v38  ;;  %6922 = vmatprep.subr.bf16.mxu1 %v7697_v39 }
 0x279   :  { %6944 = vmatprep.subr.bf16.mxu0 %v7698_v40 }
 0x27b   :  { %6923 = vmatpush3.bf16.msra.mxu1 %v7699_v41 }
 0x27c   :  { %6945 = vmatpush3.bf16.msra.mxu0 %v7700_v43  ;;  %7180 = vmatprep.subr.bf16.mxu1 %v8614_v33 }
 0x27d   :  { %6961 = vmatprep.subr.bf16.mxu0 %v7709_v45 }
 0x27e   :  { %2230 = vmatmul.mubr.bf16.vlgmr.msra.gmra.mrb[8].mxu1 %v8921_v6  ;;  %v7719_v6 = vld [vmem:[#allocation9 + $0x10] sm:$0xff]  }
 0x27f   :  { %2270 = vmatmul.mubr.bf16.vlgmr.msra.gmra.mrb[12].mxu0 %v8943_v32  ;;  %7181 = vmatpush3.bf16.msra.mxu1 %v7701_v46  ;;  %v7704_v32 = vld [vmem:[#allocation6 + $0x588] ss:$20 sps:$4 sm:$0xff]  }
 0x280   :  { %7182 = vmatprep.subr.bf16.mxu1 %v8614_v33  ;;  %7196 = vmatprep.mubr.msk.bf16.mxu1 %vm8615_vm0, %v8614_v33 }
 0x281   :  { %6962 = vmatpush3.bf16.msra.mxu0 %v7711_v47 }
 0x282   :  { %6963 = vmatprep.subr.bf16.mxu0 %v7713_v48 }
 0x283   :  { %7183 = vmatpush3.bf16.msra.mxu1 %v7702_v53 }
 0x284   :  { %7184 = vmatprep.subr.bf16.mxu1 %v8614_v33 }
 0x285   :  { %6964 = vmatpush3.bf16.msra.mxu0 %v7715_v54 }
 0x286   :  { %6965 = vmatprep.subr.bf16.mxu0 %v7717_v55 }
 0x287   :  { %7185 = vmatpush3.bf16.msra.mxu1 %v7703_v56  ;;  %v7741_v56 = vld [vmem:[#allocation9 + $0x100] sm:$0xff]  }
 0x288   :  { %7186 = vmatprep.subr.bf16.mxu1 %v8614_v33 }
 0x289   :  { %6966 = vmatpush3.bf16.msra.mxu0 %v7719_v6 }
 0x28a   :  { %6967 = vmatprep.subr.bf16.mxu0 %v7721_v57 }
 0x28b   :  { %7187 = vmatpush3.bf16.msra.mxu1 %v7704_v32  ;;  %v7742_v32 = vld [vmem:[#allocation9 + $0x108] sm:$0xff]  }
 0x28c   :  { %7188 = vmatprep.subr.bf16.mxu1 %v8614_v33 }
 0x28d   :  { %6968 = vmatpush3.bf16.msra.mxu0 %v7723_v58  ;;  %v7743_v58 = vld [vmem:[#allocation9 + $0x110] sm:$0xff]  }
 0x28e   :  { %6969 = vmatprep.subr.bf16.mxu0 %v7725_v59  ;;  %v7744_v59 = vld [vmem:[#allocation9 + $0x118] sm:$0xff]  }
 0x28f   :  { %7189 = vmatpush3.bf16.msra.mxu1 %v7705_v60  ;;  %v7745_v60 = vld [vmem:[#allocation9 + $0x120] sm:$0xff]  }
 0x290   :  { %7190 = vmatprep.subr.bf16.mxu1 %v8614_v33 }
 0x291   :  { %6970 = vmatpush3.bf16.msra.mxu0 %v7727_v61  ;;  %v7746_v61 = vld [vmem:[#allocation9 + $0x128] sm:$0xff]  }
 0x292   :  { %6971 = vmatprep.subr.bf16.mxu0 %v7729_v62  ;;  %v7747_v62 = vld [vmem:[#allocation9 + $0x130] sm:$0xff]  }
 0x293   :  { %7191 = vmatpush3.bf16.msra.mxu1 %v7706_v63 }
 0x294   :  { %7192 = vmatprep.subr.bf16.mxu1 %v8614_v33 }
 0x295   :  { %6972 = vmatpush3.bf16.msra.mxu0 %v7731_v50  ;;  %v905_v50 = vrot.slane %v8975_v28, %v8950_v44  ;;  %v7754_v28 = vld [vmem:[#allocation12 + $0xc] ss:$20 sps:$4 sm:$0xff]  }
 0x297   :  { %7193 = vmatpush3.bf16.msra.mxu1 %v7707_v1 }
 0x298   :  { %7194 = vmatprep.subr.bf16.mxu1 %v8614_v33 }
 0x29b   :  { %7195 = vmatpush3.bf16.msra.mxu1 %v7708_v2 }
 0x29c   :  { %6983 = vmatprep.subr.bf16.mxu1 %v7710_v3 }
 0x29e   :  { %7197 = vmatmul.mubr.bf16.vlgmr.msra.gmra.mrb[12].mxu1 %v8955_v13  ;;  %v7733_v13 = vld [vmem:[#allocation9 + $0x70] sm:$0xff]  }
 0x29f   :  { %6984 = vmatpush3.bf16.msra.mxu1 %v7712_v42  ;;  %6973 = vmatprep.subr.bf16.mxu0 %v7733_v13 }
 0x2a0   :  { %6985 = vmatprep.subr.bf16.mxu1 %v7714_v7  ;;  %6974 = vmatpush3.bf16.msra.mxu0 %v7735_v21 }
 0x2a1   :  { %6975 = vmatprep.subr.bf16.mxu0 %v7737_v23 }
 0x2a3   :  { %6986 = vmatpush3.bf16.msra.mxu1 %v7716_v9  ;;  %v7748_v9 = vld [vmem:[#allocation9 + $0x138] sm:$0xff]  }
 0x2a4   :  { %6987 = vmatprep.subr.bf16.mxu1 %v7718_v10  ;;  %6976 = vmatpush3.bf16.msra.mxu0 %v7739_v26  ;;  %v7751_v26 = vld [vmem:[#allocation12 + $0x4] ss:$20 sps:$4 sm:$0xff]  }
 0x2a5   :  { %7200 = vmatprep.subr.bf16.mxu0 %v8614_v33 }
 0x2a7   :  { %6988 = vmatpush3.bf16.msra.mxu1 %v7720_v11 }
 0x2a8   :  { %6989 = vmatprep.subr.bf16.mxu1 %v7722_v14 }
 0x2ab   :  { %6990 = vmatpush3.bf16.msra.mxu1 %v7724_v15 }
 0x2ac   :  { %6991 = vmatprep.subr.bf16.mxu1 %v7726_v16 }
 0x2af   :  { %6992 = vmatpush3.bf16.msra.mxu1 %v7728_v17 }
 0x2b0   :  { %6993 = vmatprep.subr.bf16.mxu1 %v7730_v18 }
 0x2b3   :  { %6994 = vmatpush3.bf16.msra.mxu1 %v7732_v19 }
 0x2b4   :  { %6995 = vmatprep.subr.bf16.mxu1 %v7734_v20 }
 0x2b7   :  { %6996 = vmatpush3.bf16.msra.mxu1 %v7736_v22 }
 0x2b8   :  { %6997 = vmatprep.subr.bf16.mxu1 %v7738_v24  ;;  %v7749_v24 = vld [vmem:[#allocation12] ss:$20 sps:$4 sm:$0xff]  }
 0x2bb   :  { %6998 = vmatpush3.bf16.msra.mxu1 %v7740_v27  ;;  %v7752_v27 = vld [vmem:[#allocation12 + $0x8] ss:$20 sps:$4 sm:$0xff]  }
 0x2bc   :  { %3059 = vmatprep.subr.bf16.mxu1 %v7751_v26  ;;  %v7811_v26 = vld [vmem:[#allocation15 + $0x38] ss:$28 sps:$4 sm:$0xff]  }
 0x331   :  { %v2067_v31 = vpop.f32.mrb[4].mxu1  ;;  %v2190_v12 = vpop.f32.mrb[8].mxu0 }
 0x332   :  { %v7300_v34 = vadd.f32 %v2067_v31, %v889_v29  ;;  %v7302_v35 = vadd.f32 %v2190_v12, %v897_v5  ;;  %v2069_v36 = vpop.f32.mrb[5].mxu1  ;;  %v2192_v37 = vpop.f32.mrb[9].mxu0  ;;  %v7757_v29 = vld [vmem:[#allocation12 + $0x2c] ss:$20 sps:$4 sm:$0xff]   ;;  %v7760_v5 = vld [vmem:[#allocation12 + $0x34] ss:$20 sps:$4 sm:$0xff]  }
 0x333   :  { %v7301_v38 = vadd.f32 %v2069_v36, %v893_v25  ;;  %v7303_v39 = vadd.f32 %v2192_v37, %v901_v30  ;;  %v2071_v40 = vpop.f32.mrb[6].mxu1  ;;  %v2194_v41 = vpop.f32.mrb[10].mxu0  ;;  %v7755_v25 = vld [vmem:[#allocation12 + $0x28] ss:$20 sps:$4 sm:$0xff]   ;;  %v7758_v30 = vld [vmem:[#allocation12 + $0x30] ss:$20 sps:$4 sm:$0xff]  }
 0x334   :  { %v2317_v43 = vmax.f32 %v7300_v34, 0.0  ;;  %v2319_v45 = vmax.f32 %v7302_v35, 0.0  ;;  %v2072_v46 = vpop.f32.mrb[7].mxu1  ;;  %v2195_v47 = vpop.f32.mrb[11].mxu0  ;;  %v7763_v31 = vld [vmem:[#allocation12 + $0x54] ss:$20 sps:$4 sm:$0xff]  }
 0x335   :  { %v2318_v48 = vmax.f32 %v7301_v38, 0.0  ;;  %v2320_v53 = vmax.f32 %v7303_v39, 0.0  ;;  %v7766_v12 = vld [vmem:[#allocation12 + $0x5c] ss:$20 sps:$4 sm:$0xff]   ;;  %v7764_v35 = vld [vmem:[#allocation12 + $0x58] ss:$20 sps:$4 sm:$0xff]  }
 0x336   :  { %v2322_v6 = vpack.c.bf16 %v2317_v43, %v2317_v43  ;;  %v2324_v57 = vpack.c.bf16 %v2319_v45, %v2319_v45  ;;  %v7761_v34 = vld [vmem:[#allocation12 + $0x50] ss:$20 sps:$4 sm:$0xff]   ;;  %v7767_v38 = vld [vmem:[#allocation12 + $0x78] ss:$20 sps:$4 sm:$0xff]   ;;  %v7770_v39 = vld [vmem:[#allocation12 + $0x80] ss:$20 sps:$4 sm:$0xff]  }
 0x337   :  { %v2323_v54 = vpack.c.bf16 %v2318_v48, %v2318_v48  ;;  %v2325_v55 = vpack.c.bf16 %v2320_v53, %v2320_v53  ;;  %v7769_v36 = vld [vmem:[#allocation12 + $0x7c] ss:$20 sps:$4 sm:$0xff]   ;;  %v7772_v37 = vld [vmem:[#allocation12 + $0x84] ss:$20 sps:$4 sm:$0xff]   ;;  %v7778_v41 = vld [vmem:[#allocation12 + $0xac] ss:$20 sps:$4 sm:$0xff]  }
 0x338   :  { %v7775_v40 = vld [vmem:[#allocation12 + $0xa4] ss:$20 sps:$4 sm:$0xff]   ;;  %v7773_v43 = vld [vmem:[#allocation12 + $0xa0] ss:$20 sps:$4 sm:$0xff]   ;;  %v7776_v45 = vld [vmem:[#allocation12 + $0xa8] ss:$20 sps:$4 sm:$0xff]  }
 0x339   :  { %2686 = vmatprep.mubr.bf16.mxu0 %v2323_v54  ;;  %2726 = vmatprep.mubr.bf16.mxu1 %v2325_v55  ;;  %v7781_v46 = vld [vmem:[#allocation12 + $0xcc] ss:$20 sps:$4 sm:$0xff]   ;;  %v7784_v47 = vld [vmem:[#allocation12 + $0xd4] ss:$20 sps:$4 sm:$0xff]   ;;  %v7782_v53 = vld [vmem:[#allocation12 + $0xd0] ss:$20 sps:$4 sm:$0xff]  }
 0x33a   :  { %2687 = vmatmul.mubr.bf16.vlgmr.msra.gmra.mrb[16].mxu0 %v2322_v6  ;;  %2727 = vmatmul.mubr.bf16.vlgmr.msra.gmra.mrb[16].mxu1 %v2324_v57  ;;  %v7779_v48 = vld [vmem:[#allocation12 + $0xc8] ss:$20 sps:$4 sm:$0xff]   ;;  %v7788_v6 = vld [vmem:[#allocation12 + $0xf8] ss:$20 sps:$4 sm:$0xff]  }
 0x33b   :  { %7201 = vmatpush3.bf16.msra.mxu0 %v7741_v56  ;;  %7216 = vmatprep.mubr.msk.bf16.mxu0 %vm8615_vm0, %v8614_v33  ;;  %v7787_v54 = vld [vmem:[#allocation12 + $0xf4] ss:$20 sps:$4 sm:$0xff]   ;;  %v7790_v55 = vld [vmem:[#allocation12 + $0xfc] ss:$20 sps:$4 sm:$0xff]  }
 0x33c   :  { %7202 = vmatprep.subr.bf16.mxu0 %v8614_v33  ;;  %3091 = vmatprep.mubr.bf16.mxu1 %v8613_v0  ;;  %v7785_v56 = vld [vmem:[#allocation12 + $0xf0] ss:$20 sps:$4 sm:$0xff]  }
 0x33d   :  { %3060 = vmatpush1.bf16.msra.mxu1 %v7749_v24  ;;  %v7793_v57 = vld [vmem:[#allocation12 + $0x11c] ss:$20 sps:$4 sm:$0xff]   ;;  %v7798_v24 = vld [vmem:[#allocation12 + $0x38] ss:$20 sps:$4 sm:$0xff]  }
 0x33e   :  { %3061 = vmatprep.subr.bf16.mxu1 %v7757_v29  ;;  %v7817_v29 = vld [vmem:[#allocation15 + $0x70] ss:$28 sps:$4 sm:$0xff]  }
 0x33f   :  { %7203 = vmatpush3.bf16.msra.mxu0 %v7742_v32  ;;  %v7791_v32 = vld [vmem:[#allocation12 + $0x118] ss:$20 sps:$4 sm:$0xff]  }
 0x340   :  { %7204 = vmatprep.subr.bf16.mxu0 %v8614_v33 }
 0x341   :  { %3062 = vmatpush1.bf16.msra.mxu1 %v7755_v25  ;;  %v7800_v25 = vld [vmem:[#allocation12 + $0x88] ss:$20 sps:$4 sm:$0xff]  }
 0x342   :  { %3063 = vmatprep.subr.bf16.mxu1 %v7763_v31  ;;  %v7831_v31 = vld [vmem:[#allocation15 + $0xe4] ss:$28 sps:$4 sm:$0xff]  }
 0x343   :  { %7205 = vmatpush3.bf16.msra.mxu0 %v7743_v58  ;;  %v7796_v58 = vld [vmem:[#allocation12 + $0x124] ss:$20 sps:$4 sm:$0xff]  }
 0x344   :  { %7206 = vmatprep.subr.bf16.mxu0 %v8614_v33 }
 0x345   :  { %3064 = vmatpush1.bf16.msra.mxu1 %v7761_v34  ;;  %v7829_v34 = vld [vmem:[#allocation15 + $0xe0] ss:$28 sps:$4 sm:$0xff]  }
 0x346   :  { %3065 = vmatprep.subr.bf16.mxu1 %v7769_v36  ;;  %v7802_v36 = vld [vmem:[#allocation12 + $0xd8] ss:$20 sps:$4 sm:$0xff]  }
 0x347   :  { %7207 = vmatpush3.bf16.msra.mxu0 %v7744_v59  ;;  %v7794_v59 = vld [vmem:[#allocation12 + $0x120] ss:$20 sps:$4 sm:$0xff]  }
 0x348   :  { %7208 = vmatprep.subr.bf16.mxu0 %v8614_v33 }
 0x349   :  { %3066 = vmatpush1.bf16.msra.mxu1 %v7767_v38  ;;  %v7843_v38 = vld [vmem:[#allocation15 + $0x154] ss:$28 sps:$4 sm:$0xff]  }
 0x34a   :  { %3067 = vmatprep.subr.bf16.mxu1 %v7775_v40  ;;  %v7841_v40 = vld [vmem:[#allocation15 + $0x150] ss:$28 sps:$4 sm:$0xff]  }
 0x34b   :  { %7209 = vmatpush3.bf16.msra.mxu0 %v7745_v60  ;;  %v7807_v60 = vld [vmem:[#allocation15 + $0x4] ss:$28 sps:$4 sm:$0xff]  }
 0x34c   :  { %7210 = vmatprep.subr.bf16.mxu0 %v8614_v33 }
 0x34d   :  { %3068 = vmatpush1.bf16.msra.mxu1 %v7773_v43  ;;  %v7804_v43 = vld [vmem:[#allocation12 + $0x128] ss:$20 sps:$4 sm:$0xff]  }
 0x34e   :  { %3069 = vmatprep.subr.bf16.mxu1 %v7781_v46  ;;  %v7847_v46 = vld [vmem:[#allocation15 + $0x188] ss:$28 sps:$4 sm:$0xff]  }
 0x34f   :  { %7211 = vmatpush3.bf16.msra.mxu0 %v7746_v61 }
 0x350   :  { %7212 = vmatprep.subr.bf16.mxu0 %v8614_v33 }
 0x351   :  { %v6924_v63 = vpop.f32.mrb[8].mxu1  ;;  %3070 = vmatpush1.bf16.msra.mxu1 %v7779_v48  ;;  %v7808_v48 = vld [vmem:[#allocation15 + $0x8] ss:$28 sps:$4 sm:$0xff]  }
 0x352   :  { %v6946_v1 = vpop.f32.mrb[12].mxu0  ;;  %v6925_v2 = vpop.f32.mrb[9].mxu1  ;;  %3071 = vmatprep.subr.bf16.mxu1 %v7787_v54  ;;  %v7853_v54 = vld [vmem:[#allocation15 + $0x1c0] ss:$28 sps:$4 sm:$0xff]  }
 0x353   :  { %v6926_v3 = vadd.f32 %v6925_v2, %v6924_v63  ;;  %v6947_v42 = vpop.f32.mrb[13].mxu0  ;;  %v6927_v7 = vpop.f32.mrb[10].mxu1  ;;  %7213 = vmatpush3.bf16.msra.mxu0 %v7747_v62  ;;  %v6472_v63 = vld [vmem:[#allocation10] ss:$0 sm:$0xff] }
 0x354   :  { %v6948_v10 = vadd.f32 %v6947_v42, %v6946_v1  ;;  %v6949_v11 = vpop.f32.mrb[14].mxu0  ;;  %v6928_v14 = vpop.f32.mrb[11].mxu1  ;;  %7214 = vmatprep.subr.bf16.mxu0 %v8614_v33 }
 0x355   :  { %v2232_v15 = vadd.f32 %v6926_v3, %v905_v50  ;;  %v6950_v16 = vpop.f32.mrb[15].mxu0  ;;  %3072 = vmatpush1.bf16.msra.mxu1 %v7785_v56  ;;  %v7814_v56 = vld [vmem:[#allocation15 + $0x40] ss:$28 sps:$4 sm:$0xff]  }
 0x356   :  { %3073 = vmatprep.subr.bf16.mxu1 %v7793_v57  ;;  %v7859_v57 = vld [vmem:[#allocation15 + $0x1f8] ss:$28 sps:$4 sm:$0xff]  }
 0x357   :  { %v2272_v17 = vadd.f32 %v6948_v10, %v2232_v15  ;;  %7215 = vmatpush3.bf16.msra.mxu0 %v7748_v9 }
 0x358   :  { %3100 = vmatprep.subr.bf16.mxu0 %v7754_v28  ;;  %v7799_v28 = vld [vmem:[#allocation12 + $0x60] ss:$20 sps:$4 sm:$0xff]  }
 0x359   :  { %3074 = vmatpush1.bf16.msra.mxu1 %v7791_v32  ;;  %v7867_v32 = vld [vmem:[#allocation15 + $0x234] ss:$28 sps:$4 sm:$0xff]  }
 0x35a   :  { %7220 = vmatprep.subr.bf16.mxu1 %v8614_v33 }
 0x371   :  { %v2311_v18 = vpop.f32.mrb[12].mxu1 }
 0x372   :  { %v2312_v19 = vadd.f32 %v2311_v18, %v2272_v17  ;;  %v7198_v13 = vpop.f32.mrb[13].mxu1 }
 0x373   :  { %v2314_v20 = vpop.f32.mrb[14].mxu1 }
 0x374   :  { %v2321_v21 = vmax.f32 %v2312_v19, 0.0  ;;  %v7199_v22 = vpop.f32.mrb[15].mxu1  ;;  %v7797_v20 = vld [vmem:[#allocation12 + $0x10] ss:$20 sps:$4 sm:$0xff]  }
 0x375   :  { %v7805_v22 = vld [vmem:[#allocation15] ss:$28 sps:$4 sm:$0xff]  }
 0x376   :  { %v2326_v23 = vpack.c.bf16 %v2321_v21, %v2321_v21 }
 0x378   :  { %7217 = vmatmul.mubr.bf16.vlgmr.msra.gmra.mrb[20].mxu0 %v2326_v23  ;;  %v7813_v23 = vld [vmem:[#allocation15 + $0x3c] ss:$28 sps:$4 sm:$0xff]  }
 0x379   :  { %3132 = vmatprep.mubr.bf16.mxu0 %v8613_v0  ;;  %3101 = vmatpush1.bf16.msra.mxu0 %v7752_v27  ;;  %v7819_v27 = vld [vmem:[#allocation15 + $0x74] ss:$28 sps:$4 sm:$0xff]  }
 0x37a   :  { %3102 = vmatprep.subr.bf16.mxu0 %v7760_v5  ;;  %v7825_v5 = vld [vmem:[#allocation15 + $0xac] ss:$28 sps:$4 sm:$0xff]  }
 0x37d   :  { %3103 = vmatpush1.bf16.msra.mxu0 %v7758_v30  ;;  %v7823_v30 = vld [vmem:[#allocation15 + $0xa8] ss:$28 sps:$4 sm:$0xff]  }
 0x37e   :  { %3104 = vmatprep.subr.bf16.mxu0 %v7766_v12  ;;  %v7801_v12 = vld [vmem:[#allocation12 + $0xb0] ss:$20 sps:$4 sm:$0xff]  }
 0x381   :  { %3105 = vmatpush1.bf16.msra.mxu0 %v7764_v35  ;;  %v7837_v35 = vld [vmem:[#allocation15 + $0x11c] ss:$28 sps:$4 sm:$0xff]  }
 0x382   :  { %3106 = vmatprep.subr.bf16.mxu0 %v7772_v37  ;;  %v7835_v37 = vld [vmem:[#allocation15 + $0x118] ss:$28 sps:$4 sm:$0xff]  }
 0x385   :  { %3107 = vmatpush1.bf16.msra.mxu0 %v7770_v39  ;;  %v7803_v39 = vld [vmem:[#allocation12 + $0x100] ss:$20 sps:$4 sm:$0xff]  }
 0x386   :  { %3108 = vmatprep.subr.bf16.mxu0 %v7778_v41  ;;  %v7849_v41 = vld [vmem:[#allocation15 + $0x18c] ss:$28 sps:$4 sm:$0xff]  }
 0x389   :  { %3109 = vmatpush1.bf16.msra.mxu0 %v7776_v45  ;;  %v7810_v45 = vld [vmem:[#allocation15 + $0xc] ss:$28 sps:$4 sm:$0xff]  }
 0x38a   :  { %3110 = vmatprep.subr.bf16.mxu0 %v7784_v47  ;;  %v7855_v47 = vld [vmem:[#allocation15 + $0x1c4] ss:$28 sps:$4 sm:$0xff]  }
 0x38d   :  { %3111 = vmatpush1.bf16.msra.mxu0 %v7782_v53  ;;  %v7816_v53 = vld [vmem:[#allocation15 + $0x44] ss:$28 sps:$4 sm:$0xff]  }
 0x38e   :  { %3112 = vmatprep.subr.bf16.mxu0 %v7790_v55  ;;  %v7861_v55 = vld [vmem:[#allocation15 + $0x1fc] ss:$28 sps:$4 sm:$0xff]  }
 0x391   :  { %3113 = vmatpush1.bf16.msra.mxu0 %v7788_v6  ;;  %v7822_v6 = vld [vmem:[#allocation15 + $0x7c] ss:$28 sps:$4 sm:$0xff]  }
 0x392   :  { %3114 = vmatprep.subr.bf16.mxu0 %v7796_v58  ;;  %v7820_v58 = vld [vmem:[#allocation15 + $0x78] ss:$28 sps:$4 sm:$0xff]  }
 0x395   :  { %3115 = vmatpush1.bf16.msra.mxu0 %v7794_v59  ;;  %v7828_v59 = vld [vmem:[#allocation15 + $0xb4] ss:$28 sps:$4 sm:$0xff]  }
 0x396   :  { %4988 = vmatprep.subr.bf16.mxu0 %v7807_v60  ;;  %v7865_v60 = vld [vmem:[#allocation15 + $0x230] ss:$28 sps:$4 sm:$0xff]  }
 0x40d   :  { %v6977_v61 = vpop.f32.mrb[16].mxu0  ;;  %v6999_v62 = vpop.f32.mrb[16].mxu1 }
 0x40e   :  { %v6978_v50 = vpop.f32.mrb[17].mxu0  ;;  %v7000_v1 = vpop.f32.mrb[17].mxu1 }
 0x40f   :  { %v6979_v2 = vadd.f32 %v6978_v50, %v6977_v61  ;;  %v7001_v3 = vadd.f32 %v7000_v1, %v6999_v62  ;;  %v6980_v42 = vpop.f32.mrb[18].mxu0  ;;  %v7002_v7 = vpop.f32.mrb[18].mxu1  ;;  %v7873_v61 = vld [vmem:[#allocation15 + $0x26c] ss:$28 sps:$4 sm:$0xff]   ;;  %v7879_v1 = vld [vmem:[#allocation15 + $0x2a4] ss:$28 sps:$4 sm:$0xff]  }
 0x410   :  { %v6981_v9 = vpop.f32.mrb[19].mxu0  ;;  %v7003_v10 = vpop.f32.mrb[19].mxu1  ;;  %v7826_v62 = vld [vmem:[#allocation15 + $0xb0] ss:$28 sps:$4 sm:$0xff]   ;;  %v7871_v50 = vld [vmem:[#allocation15 + $0x268] ss:$28 sps:$4 sm:$0xff]  }
 0x411   :  { %v2689_v11 = vadd.f32 %v6979_v2, %v6472_v63  ;;  %v7834_v63 = vld [vmem:[#allocation15 + $0xec] ss:$28 sps:$4 sm:$0xff]   ;;  %v7877_v42 = vld [vmem:[#allocation15 + $0x2a0] ss:$28 sps:$4 sm:$0xff]  }
 0x412   :  { %v7832_v2 = vld [vmem:[#allocation15 + $0xe8] ss:$28 sps:$4 sm:$0xff]   ;;  %v7885_v7 = vld [vmem:[#allocation15 + $0x2dc] ss:$28 sps:$4 sm:$0xff]  }
 0x413   :  { %v2729_v14 = vadd.f32 %v7001_v3, %v2689_v11  ;;  %v7840_v3 = vld [vmem:[#allocation15 + $0x124] ss:$28 sps:$4 sm:$0xff]   ;;  %v7846_v10 = vld [vmem:[#allocation15 + $0x15c] ss:$28 sps:$4 sm:$0xff]  }
 0x414   :  { %v7838_v9 = vld [vmem:[#allocation15 + $0x120] ss:$28 sps:$4 sm:$0xff]   ;;  %v7883_v11 = vld [vmem:[#allocation15 + $0x2d8] ss:$28 sps:$4 sm:$0xff]  }
 0x44b   :  { %v2768_v15 = vpop.f32.mrb[20].mxu0 }
 0x44c   :  { %v2769_v16 = vadd.f32 %v2768_v15, %v2729_v14  ;;  %v7218_v17 = vpop.f32.mrb[21].mxu0  ;;  %v7844_v14 = vld [vmem:[#allocation15 + $0x158] ss:$28 sps:$4 sm:$0xff]  }
 0x44d   :  { %v2771_v18 = vpop.f32.mrb[22].mxu0  ;;  %v7852_v15 = vld [vmem:[#allocation15 + $0x194] ss:$28 sps:$4 sm:$0xff]   ;;  %v7858_v17 = vld [vmem:[#allocation15 + $0x1cc] ss:$28 sps:$4 sm:$0xff]  }
 0x44e   :  { %v2774_v19 = vmax.f32 %v2769_v16, 0.0  ;;  %v7219_v13 = vpop.f32.mrb[23].mxu0  ;;  %v7850_v16 = vld [vmem:[#allocation15 + $0x190] ss:$28 sps:$4 sm:$0xff]   ;;  %v7856_v18 = vld [vmem:[#allocation15 + $0x1c8] ss:$28 sps:$4 sm:$0xff]  }
 0x44f   :  { %v7862_v13 = vld [vmem:[#allocation15 + $0x200] ss:$28 sps:$4 sm:$0xff]  }
 0x450   :  { %v8999_v21 = vpack.c.bf16 %v2774_v19, %v2774_v19  ;;  %v7864_v19 = vld [vmem:[#allocation15 + $0x204] ss:$28 sps:$4 sm:$0xff]  }
 0x452   :  { %3092 = vmatmul.mubr.bf16.vlgmr.msra.gmra.mrb[20].mxu1 %v8999_v21  ;;  %3133 = vmatmul.mubr.bf16.vlgmr.msra.gmra.mrb[24].mxu0 %v8999_v21 }
 0x453   :  { %7221 = vmatpush3.bf16.msra.mxu1 %v7797_v20  ;;  %7236 = vmatprep.mubr.msk.bf16.mxu1 %vm8615_vm0, %v8614_v33  ;;  %v7870_v20 = vld [vmem:[#allocation15 + $0x23c] ss:$28 sps:$4 sm:$0xff]  }
 0x454   :  { %7222 = vmatprep.subr.bf16.mxu1 %v8614_v33  ;;  %4989 = vmatpush1.bf16.msra.mxu0 %v7805_v22  ;;  %v7876_v22 = vld [vmem:[#allocation15 + $0x274] ss:$28 sps:$4 sm:$0xff]  }
 0x455   :  { %4990 = vmatprep.subr.bf16.mxu0 %v7813_v23  ;;  %v7874_v23 = vld [vmem:[#allocation15 + $0x270] ss:$28 sps:$4 sm:$0xff]  }
 0x457   :  { %7223 = vmatpush3.bf16.msra.mxu1 %v7798_v24  ;;  %v7882_v24 = vld [vmem:[#allocation15 + $0x2ac] ss:$28 sps:$4 sm:$0xff]  }
 0x458   :  { %7224 = vmatprep.subr.bf16.mxu1 %v8614_v33  ;;  %4991 = vmatpush1.bf16.msra.mxu0 %v7811_v26  ;;  %v7880_v26 = vld [vmem:[#allocation15 + $0x2a8] ss:$28 sps:$4 sm:$0xff]  }
 0x459   :  { %4992 = vmatprep.subr.bf16.mxu0 %v7819_v27  ;;  %v7888_v27 = vld [vmem:[#allocation15 + $0x2e4] ss:$28 sps:$4 sm:$0xff]  }
 0x45b   :  { %7225 = vmatpush3.bf16.msra.mxu1 %v7799_v28  ;;  %v7886_v28 = vld [vmem:[#allocation15 + $0x2e0] ss:$28 sps:$4 sm:$0xff]  }
 0x45c   :  { %7226 = vmatprep.subr.bf16.mxu1 %v8614_v33  ;;  %4993 = vmatpush1.bf16.msra.mxu0 %v7817_v29  ;;  %v7891_v29 = vld [vmem:[#allocation15 + $0x314] ss:$28 sps:$4 sm:$0xff]  }
 0x45d   :  { %4994 = vmatprep.subr.bf16.mxu0 %v7825_v5  ;;  %v7894_v5 = vld [vmem:[#allocation15 + $0x31c] ss:$28 sps:$4 sm:$0xff]  }
 0x45f   :  { %7227 = vmatpush3.bf16.msra.mxu1 %v7800_v25  ;;  %v7889_v25 = vld [vmem:[#allocation15 + $0x310] ss:$28 sps:$4 sm:$0xff]  }
 0x460   :  { %7228 = vmatprep.subr.bf16.mxu1 %v8614_v33  ;;  %4995 = vmatpush1.bf16.msra.mxu0 %v7823_v30  ;;  %v7892_v30 = vld [vmem:[#allocation15 + $0x318] ss:$28 sps:$4 sm:$0xff]  }
 0x461   :  { %4996 = vmatprep.subr.bf16.mxu0 %v7831_v31  ;;  %v7897_v31 = vld [vmem:[#allocation15 + $0x34c] ss:$28 sps:$4 sm:$0xff]  }
 0x463   :  { %7229 = vmatpush3.bf16.msra.mxu1 %v7801_v12  ;;  %v7900_v12 = vld [vmem:[#allocation15 + $0x354] ss:$28 sps:$4 sm:$0xff]  }
 0x464   :  { %7230 = vmatprep.subr.bf16.mxu1 %v8614_v33  ;;  %4997 = vmatpush1.bf16.msra.mxu0 %v7829_v34  ;;  %v7895_v34 = vld [vmem:[#allocation15 + $0x348] ss:$28 sps:$4 sm:$0xff]  }
 0x465   :  { %4998 = vmatprep.subr.bf16.mxu0 %v7837_v35  ;;  %v7898_v35 = vld [vmem:[#allocation15 + $0x350] ss:$28 sps:$4 sm:$0xff]  }
 0x467   :  { %7231 = vmatpush3.bf16.msra.mxu1 %v7802_v36  ;;  %v7903_v36 = vld [vmem:[#allocation15 + $0x384] ss:$28 sps:$4 sm:$0xff]  }
 0x468   :  { %7232 = vmatprep.subr.bf16.mxu1 %v8614_v33  ;;  %4999 = vmatpush1.bf16.msra.mxu0 %v7835_v37  ;;  %v7906_v37 = vld [vmem:[#allocation15 + $0x38c] ss:$28 sps:$4 sm:$0xff]  }
 0x469   :  { %5000 = vmatprep.subr.bf16.mxu0 %v7843_v38  ;;  %v9013_v38 = vld [vmem:[#allocation13] sm:$0x1f] }
 0x46b   :  { %7233 = vmatpush3.bf16.msra.mxu1 %v7803_v39  ;;  %v2829_v39 = vrot.slane %v9013_v38, %v8907_v51 }
 0x46c   :  { %7234 = vmatprep.subr.bf16.mxu1 %v8614_v33  ;;  %5001 = vmatpush1.bf16.msra.mxu0 %v7841_v40  ;;  %v2833_v40 = vrot.slane %v9013_v38, %v8910_v52 }
 0x46d   :  { %5002 = vmatprep.subr.bf16.mxu0 %v7849_v41  ;;  %v2841_v41 = vrot.slane %v9013_v38, %v8917_v4 }
 0x46f   :  { %7235 = vmatpush3.bf16.msra.mxu1 %v7804_v43 }
 0x470   :  { %5111 = vmatprep.subr.bf16.mxu1 %v7810_v45  ;;  %5003 = vmatpush1.bf16.msra.mxu0 %v7847_v46 }
 0x471   :  { %5004 = vmatprep.subr.bf16.mxu0 %v7855_v47 }
 0x472   :  { %7237 = vmatmul.mubr.bf16.vlgmr.msra.gmra.mrb[24].mxu1 %v8999_v21  ;;  %v7868_v21 = vld [vmem:[#allocation15 + $0x238] ss:$28 sps:$4 sm:$0xff]  }
 0x473   :  { %5112 = vmatpush1.bf16.msra.mxu1 %v7808_v48 }
 0x474   :  { %5113 = vmatprep.subr.bf16.mxu1 %v7816_v53  ;;  %5005 = vmatpush1.bf16.msra.mxu0 %v7853_v54 }
 0x475   :  { %5006 = vmatprep.subr.bf16.mxu0 %v7861_v55 }
 0x477   :  { %5114 = vmatpush1.bf16.msra.mxu1 %v7814_v56 }
 0x478   :  { %5115 = vmatprep.subr.bf16.mxu1 %v7822_v6  ;;  %5007 = vmatpush1.bf16.msra.mxu0 %v7859_v57 }
 0x479   :  { %5008 = vmatprep.subr.bf16.mxu0 %v7867_v32 }
 0x47b   :  { %5116 = vmatpush1.bf16.msra.mxu1 %v7820_v58 }
 0x47c   :  { %5117 = vmatprep.subr.bf16.mxu1 %v7828_v59  ;;  %5009 = vmatpush1.bf16.msra.mxu0 %v7865_v60 }
 0x47d   :  { %5010 = vmatprep.subr.bf16.mxu0 %v7873_v61  ;;  %v7901_v61 = vld [vmem:[#allocation15 + $0x380] ss:$28 sps:$4 sm:$0xff]  }
 0x47f   :  { %5118 = vmatpush1.bf16.msra.mxu1 %v7826_v62  ;;  %v7904_v62 = vld [vmem:[#allocation15 + $0x388] ss:$28 sps:$4 sm:$0xff]  }
 0x480   :  { %5119 = vmatprep.subr.bf16.mxu1 %v7834_v63  ;;  %5011 = vmatpush1.bf16.msra.mxu0 %v7871_v50  ;;  %v7909_v50 = vld [vmem:[#allocation15 + $0x3bc] ss:$28 sps:$4 sm:$0xff]  }
 0x481   :  { %5012 = vmatprep.subr.bf16.mxu0 %v7879_v1  ;;  %v7912_v1 = vld [vmem:[#allocation15 + $0x3c4] ss:$28 sps:$4 sm:$0xff]  }
 0x483   :  { %5120 = vmatpush1.bf16.msra.mxu1 %v7832_v2 }
 0x484   :  { %5121 = vmatprep.subr.bf16.mxu1 %v7840_v3  ;;  %5013 = vmatpush1.bf16.msra.mxu0 %v7877_v42  ;;  %v7907_v3 = vld [vmem:[#allocation15 + $0x3b8] ss:$28 sps:$4 sm:$0xff]   ;;  %v7910_v42 = vld [vmem:[#allocation15 + $0x3c0] ss:$28 sps:$4 sm:$0xff]  }
 0x485   :  { %5014 = vmatprep.subr.bf16.mxu0 %v7885_v7  ;;  %v7915_v7 = vld [vmem:[#allocation15 + $0x3f4] ss:$28 sps:$4 sm:$0xff]  }
 0x487   :  { %5122 = vmatpush1.bf16.msra.mxu1 %v7838_v9  ;;  %v7918_v9 = vld [vmem:[#allocation15 + $0x3fc] ss:$28 sps:$4 sm:$0xff]  }
 0x488   :  { %5123 = vmatprep.subr.bf16.mxu1 %v7846_v10  ;;  %5015 = vmatpush1.bf16.msra.mxu0 %v7883_v11  ;;  %v7913_v10 = vld [vmem:[#allocation15 + $0x3f0] ss:$28 sps:$4 sm:$0xff]   ;;  %v7916_v11 = vld [vmem:[#allocation15 + $0x3f8] ss:$28 sps:$4 sm:$0xff]  }
 0x489   :  { %5016 = vmatprep.subr.bf16.mxu0 %v7891_v29  ;;  %v7940_v29 = vld [vmem:[#allocation15 + $0x4d8] ss:$28 sps:$4 sm:$0xff]  }
 0x48b   :  { %5124 = vmatpush1.bf16.msra.mxu1 %v7844_v14  ;;  %v7921_v14 = vld [vmem:[#allocation15 + $0x42c] ss:$28 sps:$4 sm:$0xff]  }
 0x48c   :  { %5125 = vmatprep.subr.bf16.mxu1 %v7852_v15  ;;  %5017 = vmatpush1.bf16.msra.mxu0 %v7889_v25  ;;  %v7924_v15 = vld [vmem:[#allocation15 + $0x434] ss:$28 sps:$4 sm:$0xff]  }
 0x48d   :  { %5018 = vmatprep.subr.bf16.mxu0 %v7897_v31  ;;  %v7948_v25 = vld [vmem:[#allocation15 + $0x514] ss:$28 sps:$4 sm:$0xff]  }
 0x48f   :  { %5126 = vmatpush1.bf16.msra.mxu1 %v7850_v16  ;;  %v7919_v16 = vld [vmem:[#allocation15 + $0x428] ss:$28 sps:$4 sm:$0xff]  }
 0x490   :  { %5127 = vmatprep.subr.bf16.mxu1 %v7858_v17  ;;  %5019 = vmatpush1.bf16.msra.mxu0 %v7895_v34  ;;  %v7922_v17 = vld [vmem:[#allocation15 + $0x430] ss:$28 sps:$4 sm:$0xff]   ;;  %v7943_v34 = vld [vmem:[#allocation15 + $0x508] ss:$28 sps:$4 sm:$0xff]  }
 0x491   :  { %5029 = vmatprep.subr.bf16.mxu0 %v7903_v36 }
 0x493   :  { %5128 = vmatpush1.bf16.msra.mxu1 %v7856_v18  ;;  %v7927_v18 = vld [vmem:[#allocation15 + $0x464] ss:$28 sps:$4 sm:$0xff]  }
 0x494   :  { %5129 = vmatprep.subr.bf16.mxu1 %v7864_v19  ;;  %v7930_v19 = vld [vmem:[#allocation15 + $0x46c] ss:$28 sps:$4 sm:$0xff]  }
 0x497   :  { %5130 = vmatpush1.bf16.msra.mxu1 %v7862_v13  ;;  %v7925_v13 = vld [vmem:[#allocation15 + $0x460] ss:$28 sps:$4 sm:$0xff]  }
 0x498   :  { %5131 = vmatprep.subr.bf16.mxu1 %v7870_v20  ;;  %v7928_v20 = vld [vmem:[#allocation15 + $0x468] ss:$28 sps:$4 sm:$0xff]  }
 0x49b   :  { %5132 = vmatpush1.bf16.msra.mxu1 %v7868_v21  ;;  %v7933_v21 = vld [vmem:[#allocation15 + $0x49c] ss:$28 sps:$4 sm:$0xff]  }
 0x49c   :  { %5133 = vmatprep.subr.bf16.mxu1 %v7876_v22  ;;  %v7936_v22 = vld [vmem:[#allocation15 + $0x4a4] ss:$28 sps:$4 sm:$0xff]  }
 0x49f   :  { %5134 = vmatpush1.bf16.msra.mxu1 %v7874_v23  ;;  %v7931_v23 = vld [vmem:[#allocation15 + $0x498] ss:$28 sps:$4 sm:$0xff]  }
 0x4a0   :  { %5135 = vmatprep.subr.bf16.mxu1 %v7882_v24  ;;  %v7934_v24 = vld [vmem:[#allocation15 + $0x4a0] ss:$28 sps:$4 sm:$0xff]  }
 0x4a3   :  { %5136 = vmatpush1.bf16.msra.mxu1 %v7880_v26  ;;  %v7939_v26 = vld [vmem:[#allocation15 + $0x4d4] ss:$28 sps:$4 sm:$0xff]  }
 0x4a4   :  { %5137 = vmatprep.subr.bf16.mxu1 %v7888_v27  ;;  %v7942_v27 = vld [vmem:[#allocation15 + $0x4dc] ss:$28 sps:$4 sm:$0xff]  }
 0x4a7   :  { %5138 = vmatpush1.bf16.msra.mxu1 %v7886_v28  ;;  %v7937_v28 = vld [vmem:[#allocation15 + $0x4d0] ss:$28 sps:$4 sm:$0xff]  }
 0x4a8   :  { %5139 = vmatprep.subr.bf16.mxu1 %v7894_v5  ;;  %v7945_v5 = vld [vmem:[#allocation15 + $0x50c] ss:$28 sps:$4 sm:$0xff]  }
 0x4ab   :  { %5140 = vmatpush1.bf16.msra.mxu1 %v7892_v30 }
 0x4ac   :  { %5141 = vmatprep.subr.bf16.mxu1 %v7900_v12 }
 0x4af   :  { %5142 = vmatpush1.bf16.msra.mxu1 %v7898_v35  ;;  %v7946_v35 = vld [vmem:[#allocation15 + $0x510] ss:$28 sps:$4 sm:$0xff]  }
 0x4b0   :  { %5152 = vmatprep.subr.bf16.mxu1 %v7906_v37  ;;  %v7951_v37 = vld [vmem:[#allocation15 + $0x544] ss:$28 sps:$4 sm:$0xff]  }
 0x525   :  { %v3093_v43 = vpop.f32.mrb[20].mxu1  ;;  %v9021_v45 = vpop.f32.mrb[24].mxu0 }
 0x526   :  { %v3094_v46 = vadd.f32 %v3093_v43, %v2829_v39  ;;  %v3095_v47 = vpop.f32.mrb[21].mxu1  ;;  %v3136_v48 = vpop.f32.mrb[25].mxu0  ;;  %v7954_v39 = vld [vmem:[#allocation15 + $0x54c] ss:$28 sps:$4 sm:$0xff]   ;;  %v7957_v43 = vld [vmem:[#allocation15 + $0x57c] ss:$28 sps:$4 sm:$0xff]  }
 0x527   :  { %v3096_v53 = vadd.f32 %v3095_v47, %v2833_v40  ;;  %v3137_v54 = vadd.f32 %v3136_v48, %v2841_v41  ;;  %v3097_v55 = vpop.f32.mrb[22].mxu1  ;;  %v3138_v56 = vpop.f32.mrb[26].mxu0  ;;  %v7949_v40 = vld [vmem:[#allocation15 + $0x540] ss:$28 sps:$4 sm:$0xff]   ;;  %v7952_v41 = vld [vmem:[#allocation15 + $0x548] ss:$28 sps:$4 sm:$0xff]  }
 0x528   :  { %v3181_v6 = vmax.f32 %v3094_v46, 0.0  ;;  %v3098_v57 = vpop.f32.mrb[23].mxu1  ;;  %v3139_v32 = vpop.f32.mrb[27].mxu0  ;;  %v7960_v46 = vld [vmem:[#allocation15 + $0x584] ss:$28 sps:$4 sm:$0xff]  }
 0x529   :  { %v3182_v58 = vmax.f32 %v3096_v53, 0.0  ;;  %v3184_v59 = vmax.f32 %v3137_v54, 0.0  ;;  %v7955_v47 = vld [vmem:[#allocation15 + $0x578] ss:$28 sps:$4 sm:$0xff]   ;;  %v7958_v48 = vld [vmem:[#allocation15 + $0x580] ss:$28 sps:$4 sm:$0xff]  }
 0x52a   :  { %v9025_v63 = vpack.c.bf16 %v3181_v6, %v3181_v6  ;;  %v7963_v53 = vld [vmem:[#allocation15 + $0x5b4] ss:$28 sps:$4 sm:$0xff]   ;;  %v7966_v54 = vld [vmem:[#allocation15 + $0x5bc] ss:$28 sps:$4 sm:$0xff]   ;;  %v7969_v6 = vld [vmem:[#allocation15 + $0x5ec] ss:$28 sps:$4 sm:$0xff]  }
 0x52b   :  { %v9023_v60 = vpack.c.bf16 %v3182_v58, %v3182_v58  ;;  %v9029_v2 = vpack.c.bf16 %v3184_v59, %v3184_v59  ;;  %v7961_v55 = vld [vmem:[#allocation15 + $0x5b0] ss:$28 sps:$4 sm:$0xff]   ;;  %v7964_v56 = vld [vmem:[#allocation15 + $0x5b8] ss:$28 sps:$4 sm:$0xff]   ;;  %v7967_v32 = vld [vmem:[#allocation15 + $0x5e8] ss:$28 sps:$4 sm:$0xff]  }
 0x52c   :  { %v7972_v57 = vld [vmem:[#allocation15 + $0x5f4] ss:$28 sps:$4 sm:$0xff]   ;;  %v7975_v59 = vld [vmem:[#allocation15 + $0x624] ss:$28 sps:$4 sm:$0xff]  }
 0x52d   :  { %5020 = vmatprep.mubr.bf16.mxu0 %v9023_v60  ;;  %5143 = vmatprep.mubr.bf16.mxu1 %v9023_v60  ;;  %v7970_v58 = vld [vmem:[#allocation15 + $0x5f0] ss:$28 sps:$4 sm:$0xff]  }
 0x52e   :  { %5021 = vmatmul.mubr.bf16.vlgmr.msra.gmra.mrb[28].mxu0 %v9025_v63  ;;  %5144 = vmatmul.mubr.bf16.vlgmr.msra.gmra.mrb[28].mxu1 %v9025_v63 }
 0x52f   :  { %5030 = vmatpush1.bf16.msra.mxu0 %v7901_v61  ;;  %5153 = vmatpush1.bf16.msra.mxu1 %v7904_v62  ;;  %v7978_v61 = vld [vmem:[#allocation15 + $0x62c] ss:$28 sps:$4 sm:$0xff]   ;;  %v7973_v62 = vld [vmem:[#allocation15 + $0x620] ss:$28 sps:$4 sm:$0xff]  }
 0x530   :  { %5061 = vmatprep.mubr.bf16.mxu0 %v9029_v2  ;;  %5184 = vmatprep.mubr.bf16.mxu1 %v9029_v2 }
 0x531   :  { %5031 = vmatprep.subr.bf16.mxu0 %v7909_v50  ;;  %5154 = vmatprep.subr.bf16.mxu1 %v7912_v1  ;;  %v7976_v50 = vld [vmem:[#allocation15 + $0x628] ss:$28 sps:$4 sm:$0xff]   ;;  %v7981_v1 = vld [vmem:[#allocation15 + $0x65c] ss:$28 sps:$4 sm:$0xff]  }
 0x533   :  { %5032 = vmatpush1.bf16.msra.mxu0 %v7907_v3  ;;  %5155 = vmatpush1.bf16.msra.mxu1 %v7910_v42  ;;  %v7984_v3 = vld [vmem:[#allocation15 + $0x664] ss:$28 sps:$4 sm:$0xff]   ;;  %v7979_v42 = vld [vmem:[#allocation15 + $0x658] ss:$28 sps:$4 sm:$0xff]  }
 0x534   :  { %5033 = vmatprep.subr.bf16.mxu0 %v7915_v7  ;;  %5156 = vmatprep.subr.bf16.mxu1 %v7918_v9  ;;  %v7982_v7 = vld [vmem:[#allocation15 + $0x660] ss:$28 sps:$4 sm:$0xff]   ;;  %v2837_v9 = vrot.slane %v9013_v38, %v8938_v8 }
 0x537   :  { %5034 = vmatpush1.bf16.msra.mxu0 %v7913_v10  ;;  %5157 = vmatpush1.bf16.msra.mxu1 %v7916_v11  ;;  %v7987_v10 = vld [vmem:[#allocation15 + $0x694] ss:$28 sps:$4 sm:$0xff]   ;;  %v7990_v11 = vld [vmem:[#allocation15 + $0x69c] ss:$28 sps:$4 sm:$0xff]  }
 0x538   :  { %5035 = vmatprep.subr.bf16.mxu0 %v7921_v14  ;;  %5158 = vmatprep.subr.bf16.mxu1 %v7924_v15  ;;  %v7985_v14 = vld [vmem:[#allocation15 + $0x690] ss:$28 sps:$4 sm:$0xff]   ;;  %v7988_v15 = vld [vmem:[#allocation15 + $0x698] ss:$28 sps:$4 sm:$0xff]  }
 0x53b   :  { %5036 = vmatpush1.bf16.msra.mxu0 %v7919_v16  ;;  %5159 = vmatpush1.bf16.msra.mxu1 %v7922_v17  ;;  %v3135_v16 = vadd.f32 %v9021_v45, %v2837_v9  ;;  %v7993_v17 = vld [vmem:[#allocation15 + $0x6cc] ss:$28 sps:$4 sm:$0xff]   ;;  %v8005_v45 = vld [vmem:[#allocation15 + $0x73c] ss:$28 sps:$4 sm:$0xff]  }
 0x53c   :  { %5037 = vmatprep.subr.bf16.mxu0 %v7927_v18  ;;  %5160 = vmatprep.subr.bf16.mxu1 %v7930_v19  ;;  %v7996_v18 = vld [vmem:[#allocation15 + $0x6d4] ss:$28 sps:$4 sm:$0xff]   ;;  %v7991_v19 = vld [vmem:[#allocation15 + $0x6c8] ss:$28 sps:$4 sm:$0xff]  }
 0x53d   :  { %v8053_v9 = vld [vmem:[#allocation15 + $0x210] ss:$28 sps:$4 sm:$0xff]  }
 0x53f   :  { %5038 = vmatpush1.bf16.msra.mxu0 %v7925_v13  ;;  %5161 = vmatpush1.bf16.msra.mxu1 %v7928_v20  ;;  %v7994_v13 = vld [vmem:[#allocation15 + $0x6d0] ss:$28 sps:$4 sm:$0xff]   ;;  %v3183_v20 = vmax.f32 %v3135_v16, 0.0  ;;  %v8055_v16 = vld [vmem:[#allocation15 + $0x80] ss:$28 sps:$4 sm:$0xff]  }
 0x540   :  { %5039 = vmatprep.subr.bf16.mxu0 %v7933_v21  ;;  %5162 = vmatprep.subr.bf16.mxu1 %v7936_v22  ;;  %v7999_v21 = vld [vmem:[#allocation15 + $0x704] ss:$28 sps:$4 sm:$0xff]   ;;  %v8002_v22 = vld [vmem:[#allocation15 + $0x70c] ss:$28 sps:$4 sm:$0xff]  }
 0x543   :  { %5040 = vmatpush1.bf16.msra.mxu0 %v7931_v23  ;;  %5163 = vmatpush1.bf16.msra.mxu1 %v7934_v24  ;;  %v7997_v23 = vld [vmem:[#allocation15 + $0x700] ss:$28 sps:$4 sm:$0xff]   ;;  %v8000_v24 = vld [vmem:[#allocation15 + $0x708] ss:$28 sps:$4 sm:$0xff]  }
 0x544   :  { %5041 = vmatprep.subr.bf16.mxu0 %v7939_v26  ;;  %5164 = vmatprep.subr.bf16.mxu1 %v7942_v27  ;;  %v9040_v26 = vpack.c.bf16 %v3183_v20, %v3183_v20  ;;  %v8008_v27 = vld [vmem:[#allocation15 + $0x744] ss:$28 sps:$4 sm:$0xff]  }
 0x545   :  { %v9035_v30 = vpop.f32.mrb[24].mxu1  ;;  %v8064_v20 = vld [vmem:[#allocation15 + $0xc0] ss:$28 sps:$4 sm:$0xff]  }
 0x546   :  { %v7238_v31 = vpop.f32.mrb[25].mxu1 }
 0x547   :  { %v3178_v12 = vpop.f32.mrb[26].mxu1  ;;  %5042 = vmatpush1.bf16.msra.mxu0 %v7937_v28  ;;  %5165 = vmatpush1.bf16.msra.mxu1 %v7940_v29  ;;  %v8003_v28 = vld [vmem:[#allocation15 + $0x738] ss:$28 sps:$4 sm:$0xff]   ;;  %v8006_v29 = vld [vmem:[#allocation15 + $0x740] ss:$28 sps:$4 sm:$0xff]  }
 0x548   :  { %v7239_v36 = vpop.f32.mrb[27].mxu1  ;;  %5043 = vmatprep.subr.bf16.mxu0 %v7945_v5  ;;  %5166 = vmatprep.subr.bf16.mxu1 %v7948_v25  ;;  %v8011_v5 = vld [vmem:[#allocation15 + $0x774] ss:$28 sps:$4 sm:$0xff]   ;;  %v8014_v25 = vld [vmem:[#allocation15 + $0x77c] ss:$28 sps:$4 sm:$0xff]  }
 0x549   :  { %v8009_v31 = vld [vmem:[#allocation15 + $0x770] ss:$28 sps:$4 sm:$0xff]   ;;  %v8012_v12 = vld [vmem:[#allocation15 + $0x778] ss:$28 sps:$4 sm:$0xff]   ;;  %v8015_v36 = vld [vmem:[#allocation15 + $0x7a8] ss:$28 sps:$4 sm:$0xff]  }
 0x54b   :  { %5044 = vmatpush1.bf16.msra.mxu0 %v7943_v34  ;;  %5167 = vmatpush1.bf16.msra.mxu1 %v7946_v35  ;;  %v8017_v34 = vld [vmem:[#allocation15 + $0x7ac] ss:$28 sps:$4 sm:$0xff]   ;;  %v8020_v35 = vld [vmem:[#allocation15 + $0x7b4] ss:$28 sps:$4 sm:$0xff]  }
 0x54c   :  { %5045 = vmatprep.subr.bf16.mxu0 %v7951_v37  ;;  %5168 = vmatprep.subr.bf16.mxu1 %v7954_v39  ;;  %v8018_v37 = vld [vmem:[#allocation15 + $0x7b0] ss:$28 sps:$4 sm:$0xff]   ;;  %v8023_v39 = vld [vmem:[#allocation15 + $0x7e4] ss:$28 sps:$4 sm:$0xff]  }
 0x54f   :  { %5046 = vmatpush1.bf16.msra.mxu0 %v7949_v40  ;;  %5169 = vmatpush1.bf16.msra.mxu1 %v7952_v41  ;;  %v8026_v40 = vld [vmem:[#allocation15 + $0x7ec] ss:$28 sps:$4 sm:$0xff]   ;;  %v8021_v41 = vld [vmem:[#allocation15 + $0x7e0] ss:$28 sps:$4 sm:$0xff]  }
 0x550   :  { %5047 = vmatprep.subr.bf16.mxu0 %v7957_v43  ;;  %5170 = vmatprep.subr.bf16.mxu1 %v7960_v46  ;;  %v8024_v43 = vld [vmem:[#allocation15 + $0x7e8] ss:$28 sps:$4 sm:$0xff]   ;;  %v8029_v46 = vld [vmem:[#allocation15 + $0x81c] ss:$28 sps:$4 sm:$0xff]  }
 0x553   :  { %5048 = vmatpush1.bf16.msra.mxu0 %v7955_v47  ;;  %5171 = vmatpush1.bf16.msra.mxu1 %v7958_v48  ;;  %v8032_v47 = vld [vmem:[#allocation15 + $0x824] ss:$28 sps:$4 sm:$0xff]   ;;  %v8027_v48 = vld [vmem:[#allocation15 + $0x818] ss:$28 sps:$4 sm:$0xff]  }
 0x554   :  { %5049 = vmatprep.subr.bf16.mxu0 %v7963_v53  ;;  %5172 = vmatprep.subr.bf16.mxu1 %v7966_v54  ;;  %v8030_v53 = vld [vmem:[#allocation15 + $0x820] ss:$28 sps:$4 sm:$0xff]   ;;  %v2845_v54 = vrot.slane %v9013_v38, %v8950_v44  ;;  %v8047_v38 = vld [vmem:[#allocation15 + $0x14] ss:$28 sps:$4 sm:$0xff]  }
 0x557   :  { %5050 = vmatpush1.bf16.msra.mxu0 %v7961_v55  ;;  %5173 = vmatpush1.bf16.msra.mxu1 %v7964_v56  ;;  %v8035_v55 = vld [vmem:[#allocation15 + $0x854] ss:$28 sps:$4 sm:$0xff]   ;;  %v8038_v56 = vld [vmem:[#allocation15 + $0x85c] ss:$28 sps:$4 sm:$0xff]  }
 0x558   :  { %5051 = vmatprep.subr.bf16.mxu0 %v7969_v6  ;;  %5174 = vmatprep.subr.bf16.mxu1 %v7972_v57  ;;  %v8033_v6 = vld [vmem:[#allocation15 + $0x850] ss:$28 sps:$4 sm:$0xff]   ;;  %v8036_v57 = vld [vmem:[#allocation15 + $0x858] ss:$28 sps:$4 sm:$0xff]  }
 0x55b   :  { %5052 = vmatpush1.bf16.msra.mxu0 %v7967_v32  ;;  %5175 = vmatpush1.bf16.msra.mxu1 %v7970_v58  ;;  %v3176_v32 = vadd.f32 %v9035_v30, %v2845_v54  ;;  %v8041_v58 = vld [vmem:[#allocation15 + $0x88c] ss:$28 sps:$4 sm:$0xff]   ;;  %v8049_v30 = vld [vmem:[#allocation15 + $0x18] ss:$28 sps:$4 sm:$0xff]  }
 0x55c   :  { %5053 = vmatprep.subr.bf16.mxu0 %v7975_v59  ;;  %5176 = vmatprep.subr.bf16.mxu1 %v7978_v61  ;;  %v8044_v59 = vld [vmem:[#allocation15 + $0x894] ss:$28 sps:$4 sm:$0xff]   ;;  %v8039_v61 = vld [vmem:[#allocation15 + $0x888] ss:$28 sps:$4 sm:$0xff]  }
 0x55d   :  { %v8098_v54 = vld [vmem:[#allocation15 + $0x5c8] ss:$28 sps:$4 sm:$0xff]  }
 0x55f   :  { %5054 = vmatpush1.bf16.msra.mxu0 %v7973_v62  ;;  %5177 = vmatpush1.bf16.msra.mxu1 %v7976_v50  ;;  %v8042_v62 = vld [vmem:[#allocation15 + $0x890] ss:$28 sps:$4 sm:$0xff]   ;;  %v3185_v50 = vmax.f32 %v3176_v32, 0.0  ;;  %v8100_v32 = vld [vmem:[#allocation15 + $0x278] ss:$28 sps:$4 sm:$0xff]  }
 0x560   :  { %5055 = vmatprep.subr.bf16.mxu0 %v7981_v1  ;;  %5178 = vmatprep.subr.bf16.mxu1 %v7984_v3  ;;  %v8048_v1 = vld [vmem:[#allocation15 + $0x1d8] ss:$28 sps:$4 sm:$0xff]   ;;  %v8045_v3 = vld [vmem:[#allocation15 + $0x10] ss:$28 sps:$4 sm:$0xff]  }
 0x563   :  { %5056 = vmatpush1.bf16.msra.mxu0 %v7979_v42  ;;  %5179 = vmatpush1.bf16.msra.mxu1 %v7982_v7  ;;  %v9049_v42 = vpack.c.bf16 %v3185_v50, %v3185_v50  ;;  %v8052_v7 = vld [vmem:[#allocation15 + $0x4c] ss:$28 sps:$4 sm:$0xff]   ;;  %v8109_v50 = vld [vmem:[#allocation15 + $0x478] ss:$28 sps:$4 sm:$0xff]  }
 0x564   :  { %5057 = vmatprep.subr.bf16.mxu0 %v7987_v10  ;;  %5180 = vmatprep.subr.bf16.mxu1 %v7990_v11  ;;  %v8050_v10 = vld [vmem:[#allocation15 + $0x48] ss:$28 sps:$4 sm:$0xff]   ;;  %v8054_v11 = vld [vmem:[#allocation15 + $0x50] ss:$28 sps:$4 sm:$0xff]  }
 0x567   :  { %5058 = vmatpush1.bf16.msra.mxu0 %v7985_v14  ;;  %5181 = vmatpush1.bf16.msra.mxu1 %v7988_v15  ;;  %v8057_v14 = vld [vmem:[#allocation15 + $0x84] ss:$28 sps:$4 sm:$0xff]  }
 0x568   :  { %5059 = vmatprep.subr.bf16.mxu0 %v7993_v17  ;;  %5182 = vmatprep.subr.bf16.mxu1 %v7996_v18  ;;  %v8058_v15 = vld [vmem:[#allocation15 + $0x248] ss:$28 sps:$4 sm:$0xff]   ;;  %v8062_v18 = vld [vmem:[#allocation15 + $0xbc] ss:$28 sps:$4 sm:$0xff]  }
 0x569   :  { %v8059_v17 = vld [vmem:[#allocation15 + $0x88] ss:$28 sps:$4 sm:$0xff]  }
 0x56b   :  { %5060 = vmatpush1.bf16.msra.mxu0 %v7991_v19  ;;  %5183 = vmatpush1.bf16.msra.mxu1 %v7994_v13  ;;  %v8063_v19 = vld [vmem:[#allocation15 + $0x280] ss:$28 sps:$4 sm:$0xff]   ;;  %v8060_v13 = vld [vmem:[#allocation15 + $0xb8] ss:$28 sps:$4 sm:$0xff]  }
 0x56c   :  { %5070 = vmatprep.subr.bf16.mxu0 %v7999_v21  ;;  %5193 = vmatprep.subr.bf16.mxu1 %v8002_v22  ;;  %v8067_v21 = vld [vmem:[#allocation15 + $0xf4] ss:$28 sps:$4 sm:$0xff]  }
 0x56d   :  { %v8065_v22 = vld [vmem:[#allocation15 + $0xf0] ss:$28 sps:$4 sm:$0xff]  }
 0x56e   :  { %5062 = vmatmul.mubr.bf16.vlgmr.msra.gmra.mrb[28].mxu0 %v9040_v26  ;;  %5185 = vmatmul.mubr.bf16.vlgmr.msra.gmra.mrb[28].mxu1 %v9040_v26 }
 0x56f   :  { %5071 = vmatpush1.bf16.msra.mxu0 %v7997_v23  ;;  %5194 = vmatpush1.bf16.msra.mxu1 %v8000_v24  ;;  %v8069_v23 = vld [vmem:[#allocation15 + $0xf8] ss:$28 sps:$4 sm:$0xff]   ;;  %v8072_v24 = vld [vmem:[#allocation15 + $0x12c] ss:$28 sps:$4 sm:$0xff]  }
 0x570   :  { %5072 = vmatprep.subr.bf16.mxu0 %v8005_v45  ;;  %5195 = vmatprep.subr.bf16.mxu1 %v8008_v27  ;;  %v8073_v45 = vld [vmem:[#allocation15 + $0x2f0] ss:$28 sps:$4 sm:$0xff]   ;;  %v8070_v27 = vld [vmem:[#allocation15 + $0x128] ss:$28 sps:$4 sm:$0xff]  }
 0x571   :  { %5102 = vmatprep.mubr.bf16.mxu0 %v8613_v0  ;;  %5225 = vmatprep.mubr.bf16.mxu1 %v8613_v0 }
 0x573   :  { %5073 = vmatpush1.bf16.msra.mxu0 %v8003_v28  ;;  %5196 = vmatpush1.bf16.msra.mxu1 %v8006_v29  ;;  %v8074_v28 = vld [vmem:[#allocation15 + $0x130] ss:$28 sps:$4 sm:$0xff]   ;;  %v8077_v29 = vld [vmem:[#allocation15 + $0x164] ss:$28 sps:$4 sm:$0xff]  }
 0x574   :  { %5074 = vmatprep.subr.bf16.mxu0 %v8011_v5  ;;  %5197 = vmatprep.subr.bf16.mxu1 %v8014_v25  ;;  %v8078_v5 = vld [vmem:[#allocation15 + $0x328] ss:$28 sps:$4 sm:$0xff]   ;;  %v8075_v25 = vld [vmem:[#allocation15 + $0x160] ss:$28 sps:$4 sm:$0xff]  }
 0x577   :  { %5075 = vmatpush1.bf16.msra.mxu0 %v8009_v31  ;;  %5198 = vmatpush1.bf16.msra.mxu1 %v8012_v12  ;;  %v8079_v31 = vld [vmem:[#allocation15 + $0x168] ss:$28 sps:$4 sm:$0xff]   ;;  %v8082_v12 = vld [vmem:[#allocation15 + $0x19c] ss:$28 sps:$4 sm:$0xff]  }
 0x578   :  { %5076 = vmatprep.subr.bf16.mxu0 %v8017_v34  ;;  %5199 = vmatprep.subr.bf16.mxu1 %v8020_v35  ;;  %v8083_v34 = vld [vmem:[#allocation15 + $0x360] ss:$28 sps:$4 sm:$0xff]   ;;  %v8080_v35 = vld [vmem:[#allocation15 + $0x198] ss:$28 sps:$4 sm:$0xff]  }
 0x57b   :  { %5077 = vmatpush1.bf16.msra.mxu0 %v8015_v36  ;;  %5200 = vmatpush1.bf16.msra.mxu1 %v8018_v37  ;;  %v8084_v36 = vld [vmem:[#allocation15 + $0x1a0] ss:$28 sps:$4 sm:$0xff]   ;;  %v8087_v37 = vld [vmem:[#allocation15 + $0x1d4] ss:$28 sps:$4 sm:$0xff]  }
 0x57c   :  { %5078 = vmatprep.subr.bf16.mxu0 %v8023_v39  ;;  %5201 = vmatprep.subr.bf16.mxu1 %v8026_v40  ;;  %v8088_v39 = vld [vmem:[#allocation15 + $0x558] ss:$28 sps:$4 sm:$0xff]   ;;  %v8085_v40 = vld [vmem:[#allocation15 + $0x1d0] ss:$28 sps:$4 sm:$0xff]  }
 0x57f   :  { %5079 = vmatpush1.bf16.msra.mxu0 %v8021_v41  ;;  %5202 = vmatpush1.bf16.msra.mxu1 %v8024_v43  ;;  %v8089_v41 = vld [vmem:[#allocation15 + $0x398] ss:$28 sps:$4 sm:$0xff]   ;;  %v8092_v43 = vld [vmem:[#allocation15 + $0x20c] ss:$28 sps:$4 sm:$0xff]  }
 0x580   :  { %5080 = vmatprep.subr.bf16.mxu0 %v8029_v46  ;;  %5203 = vmatprep.subr.bf16.mxu1 %v8032_v47  ;;  %v8093_v46 = vld [vmem:[#allocation15 + $0x590] ss:$28 sps:$4 sm:$0xff]   ;;  %v8090_v47 = vld [vmem:[#allocation15 + $0x208] ss:$28 sps:$4 sm:$0xff]  }
 0x583   :  { %5081 = vmatpush1.bf16.msra.mxu0 %v8027_v48  ;;  %5204 = vmatpush1.bf16.msra.mxu1 %v8030_v53  ;;  %v8094_v48 = vld [vmem:[#allocation15 + $0x3d0] ss:$28 sps:$4 sm:$0xff]   ;;  %v8097_v53 = vld [vmem:[#allocation15 + $0x244] ss:$28 sps:$4 sm:$0xff]  }
 0x584   :  { %5082 = vmatprep.subr.bf16.mxu0 %v8035_v55  ;;  %5205 = vmatprep.subr.bf16.mxu1 %v8038_v56  ;;  %v8095_v55 = vld [vmem:[#allocation15 + $0x240] ss:$28 sps:$4 sm:$0xff]   ;;  %v8099_v56 = vld [vmem:[#allocation15 + $0x408] ss:$28 sps:$4 sm:$0xff]  }
 0x587   :  { %5083 = vmatpush1.bf16.msra.mxu0 %v8033_v6  ;;  %5206 = vmatpush1.bf16.msra.mxu1 %v8036_v57  ;;  %v8102_v6 = vld [vmem:[#allocation15 + $0x27c] ss:$28 sps:$4 sm:$0xff]  }
 0x588   :  { %5084 = vmatprep.subr.bf16.mxu0 %v8041_v58  ;;  %5207 = vmatprep.subr.bf16.mxu1 %v8044_v59  ;;  %v8103_v57 = vld [vmem:[#allocation15 + $0x600] ss:$28 sps:$4 sm:$0xff]   ;;  %v8107_v59 = vld [vmem:[#allocation15 + $0x2b4] ss:$28 sps:$4 sm:$0xff]  }
 0x589   :  { %v8104_v58 = vld [vmem:[#allocation15 + $0x440] ss:$28 sps:$4 sm:$0xff]  }
 0x58b   :  { %5085 = vmatpush1.bf16.msra.mxu0 %v8039_v61  ;;  %5208 = vmatpush1.bf16.msra.mxu1 %v8042_v62  ;;  %v8108_v61 = vld [vmem:[#allocation15 + $0x638] ss:$28 sps:$4 sm:$0xff]   ;;  %v8105_v62 = vld [vmem:[#allocation15 + $0x2b0] ss:$28 sps:$4 sm:$0xff]  }
 0x58c   :  { %5234 = vmatprep.subr.bf16.mxu0 %v8047_v38  ;;  %7023 = vmatprep.subr.bf16.mxu1 %v8048_v1  ;;  %v8112_v38 = vld [vmem:[#allocation15 + $0x2ec] ss:$28 sps:$4 sm:$0xff]  }
 0x58d   :  { %v8113_v1 = vld [vmem:[#allocation15 + $0x670] ss:$28 sps:$4 sm:$0xff]  }
 0x58e   :  { %5103 = vmatmul.mubr.bf16.vlgmr.msra.gmra.mrb[28].mxu0 %v9049_v42  ;;  %5226 = vmatmul.mubr.bf16.vlgmr.msra.gmra.mrb[28].mxu1 %v9049_v42 }
 0x58f   :  { %5235 = vmatpush1.bf16.msra.mxu0 %v8045_v3  ;;  %5266 = vmatprep.mubr.bf16.mxu0 %v9023_v60  ;;  %v8110_v3 = vld [vmem:[#allocation15 + $0x2e8] ss:$28 sps:$4 sm:$0xff]  }
 0x590   :  { %7024 = vmatpush3.bf16.msra.mxu1 %v8049_v30  ;;  %5389 = vmatprep.mubr.bf16.mxu1 %v9023_v60  ;;  %v8068_v60 = vld [vmem:[#allocation15 + $0x2b8] ss:$28 sps:$4 sm:$0xff]   ;;  %v8114_v30 = vld [vmem:[#allocation15 + $0x4b0] ss:$28 sps:$4 sm:$0xff]  }
 0x591   :  { %5236 = vmatprep.subr.bf16.mxu0 %v8052_v7  ;;  %7025 = vmatprep.subr.bf16.mxu1 %v8053_v9  ;;  %v8117_v7 = vld [vmem:[#allocation15 + $0x324] ss:$28 sps:$4 sm:$0xff]  }
 0x592   :  { %v8118_v9 = vld [vmem:[#allocation15 + $0x6a8] ss:$28 sps:$4 sm:$0xff]  }
 0x593   :  { %5237 = vmatpush1.bf16.msra.mxu0 %v8050_v10  ;;  %v8115_v10 = vld [vmem:[#allocation15 + $0x320] ss:$28 sps:$4 sm:$0xff]  }
 0x594   :  { %7026 = vmatpush3.bf16.msra.mxu1 %v8054_v11  ;;  %5238 = vmatprep.subr.bf16.mxu0 %v8057_v14  ;;  %v8119_v11 = vld [vmem:[#allocation15 + $0x4e8] ss:$28 sps:$4 sm:$0xff]   ;;  %v8122_v14 = vld [vmem:[#allocation15 + $0x35c] ss:$28 sps:$4 sm:$0xff]  }
 0x595   :  { %7027 = vmatprep.subr.bf16.mxu1 %v8058_v15  ;;  %v8123_v15 = vld [vmem:[#allocation15 + $0x6e0] ss:$28 sps:$4 sm:$0xff]  }
 0x597   :  { %5239 = vmatpush1.bf16.msra.mxu0 %v8055_v16  ;;  %v8120_v16 = vld [vmem:[#allocation15 + $0x358] ss:$28 sps:$4 sm:$0xff]  }
 0x598   :  { %7028 = vmatpush3.bf16.msra.mxu1 %v8059_v17  ;;  %5240 = vmatprep.subr.bf16.mxu0 %v8062_v18  ;;  %v8124_v17 = vld [vmem:[#allocation15 + $0x520] ss:$28 sps:$4 sm:$0xff]   ;;  %v8127_v18 = vld [vmem:[#allocation15 + $0x394] ss:$28 sps:$4 sm:$0xff]  }
 0x599   :  { %7029 = vmatprep.subr.bf16.mxu1 %v8063_v19  ;;  %v8125_v19 = vld [vmem:[#allocation15 + $0x390] ss:$28 sps:$4 sm:$0xff]  }
 0x59b   :  { %5241 = vmatpush1.bf16.msra.mxu0 %v8060_v13  ;;  %v8128_v13 = vld [vmem:[#allocation15 + $0x718] ss:$28 sps:$4 sm:$0xff]  }
 0x59c   :  { %7030 = vmatpush3.bf16.msra.mxu1 %v8064_v20  ;;  %5242 = vmatprep.subr.bf16.mxu0 %v8067_v21  ;;  %v8131_v20 = vld [vmem:[#allocation15 + $0x3cc] ss:$28 sps:$4 sm:$0xff]  }
 0x59d   :  { %7031 = vmatprep.subr.bf16.mxu1 %v8068_v60  ;;  %v8129_v21 = vld [vmem:[#allocation15 + $0x3c8] ss:$28 sps:$4 sm:$0xff]   ;;  %v8132_v60 = vld [vmem:[#allocation15 + $0x750] ss:$28 sps:$4 sm:$0xff]  }
 0x59f   :  { %5243 = vmatpush1.bf16.msra.mxu0 %v8065_v22  ;;  %v8135_v22 = vld [vmem:[#allocation15 + $0x404] ss:$28 sps:$4 sm:$0xff]  }
 0x5a0   :  { %7032 = vmatpush3.bf16.msra.mxu1 %v8069_v23  ;;  %5244 = vmatprep.subr.bf16.mxu0 %v8072_v24  ;;  %v8133_v23 = vld [vmem:[#allocation15 + $0x400] ss:$28 sps:$4 sm:$0xff]  }
 0x5a1   :  { %7033 = vmatprep.subr.bf16.mxu1 %v8073_v45  ;;  %v8139_v24 = vld [vmem:[#allocation15 + $0x43c] ss:$28 sps:$4 sm:$0xff]  }
 0x5a2   :  { %v8137_v45 = vld [vmem:[#allocation15 + $0x438] ss:$28 sps:$4 sm:$0xff]  }
 0x5a3   :  { %5245 = vmatpush1.bf16.msra.mxu0 %v8070_v27  ;;  %v8143_v27 = vld [vmem:[#allocation15 + $0x474] ss:$28 sps:$4 sm:$0xff]  }
 0x5a4   :  { %7034 = vmatpush3.bf16.msra.mxu1 %v8074_v28  ;;  %5246 = vmatprep.subr.bf16.mxu0 %v8077_v29  ;;  %v8141_v28 = vld [vmem:[#allocation15 + $0x470] ss:$28 sps:$4 sm:$0xff]   ;;  %v8144_v29 = vld [vmem:[#allocation15 + $0x7f8] ss:$28 sps:$4 sm:$0xff]  }
 0x5a5   :  { %7035 = vmatprep.subr.bf16.mxu1 %v8078_v5  ;;  %v8147_v5 = vld [vmem:[#allocation15 + $0x4ac] ss:$28 sps:$4 sm:$0xff]  }
 0x5a7   :  { %5247 = vmatpush1.bf16.msra.mxu0 %v8075_v25  ;;  %v8145_v25 = vld [vmem:[#allocation15 + $0x4a8] ss:$28 sps:$4 sm:$0xff]  }
 0x5a8   :  { %7036 = vmatpush3.bf16.msra.mxu1 %v8079_v31  ;;  %5248 = vmatprep.subr.bf16.mxu0 %v8082_v12  ;;  %v8148_v31 = vld [vmem:[#allocation15 + $0x830] ss:$28 sps:$4 sm:$0xff]   ;;  %v8151_v12 = vld [vmem:[#allocation15 + $0x4e4] ss:$28 sps:$4 sm:$0xff]  }
 0x5a9   :  { %7037 = vmatprep.subr.bf16.mxu1 %v8083_v34  ;;  %v8149_v34 = vld [vmem:[#allocation15 + $0x4e0] ss:$28 sps:$4 sm:$0xff]  }
 0x5ab   :  { %5249 = vmatpush1.bf16.msra.mxu0 %v8080_v35  ;;  %v8152_v35 = vld [vmem:[#allocation15 + $0x868] ss:$28 sps:$4 sm:$0xff]  }
 0x5ac   :  { %7038 = vmatpush3.bf16.msra.mxu1 %v8084_v36  ;;  %5250 = vmatprep.subr.bf16.mxu0 %v8087_v37  ;;  %v8155_v36 = vld [vmem:[#allocation15 + $0x51c] ss:$28 sps:$4 sm:$0xff]  }
 0x5ad   :  { %7045 = vmatprep.subr.bf16.mxu1 %v8088_v39  ;;  %v8153_v37 = vld [vmem:[#allocation15 + $0x518] ss:$28 sps:$4 sm:$0xff]   ;;  %v8156_v39 = vld [vmem:[#allocation15 + $0x8a0] ss:$28 sps:$4 sm:$0xff]  }
 0x5af   :  { %5390 = vmatmul.mubr.bf16.vlgmr.msra.gmra.mrb[32].mxu1 %v9025_v63  ;;  %5251 = vmatpush1.bf16.msra.mxu0 %v8085_v40  ;;  %v8159_v40 = vld [vmem:[#allocation15 + $0x554] ss:$28 sps:$4 sm:$0xff]  }
 0x5b0   :  { %7046 = vmatpush3.bf16.msra.mxu1 %v8089_v41  ;;  %5429 = vmatprep.mubr.bf16.mxu1 %v9029_v2  ;;  %v8205_v41 = vld [vmem:[#allocation18 + $0x40] sm:$0xff]  }
 0x5b1   :  { %5252 = vmatprep.subr.bf16.mxu0 %v8092_v43  ;;  %7047 = vmatprep.subr.bf16.mxu1 %v8093_v46  ;;  %v8157_v43 = vld [vmem:[#allocation15 + $0x550] ss:$28 sps:$4 sm:$0xff]  }
 0x5b2   :  { %v8162_v46 = vld [vmem:[#allocation15 + $0x58c] ss:$28 sps:$4 sm:$0xff]  }
 0x5b3   :  { %5253 = vmatpush1.bf16.msra.mxu0 %v8090_v47  ;;  %v8206_v47 = vld [vmem:[#allocation18] sm:$0xff]  }
 0x5b4   :  { %7048 = vmatpush3.bf16.msra.mxu1 %v8094_v48  ;;  %5254 = vmatprep.subr.bf16.mxu0 %v8097_v53  ;;  %v8207_v48 = vld [vmem:[#allocation18 + $0x48] sm:$0xff]   ;;  %v8160_v53 = vld [vmem:[#allocation15 + $0x588] ss:$28 sps:$4 sm:$0xff]  }
 0x5b5   :  { %7049 = vmatprep.subr.bf16.mxu1 %v8098_v54  ;;  %v8165_v54 = vld [vmem:[#allocation15 + $0x5c4] ss:$28 sps:$4 sm:$0xff]  }
 0x5b7   :  { %5255 = vmatpush1.bf16.msra.mxu0 %v8095_v55  ;;  %v8208_v55 = vld [vmem:[#allocation18 + $0x8] sm:$0xff]  }
 0x5b8   :  { %7050 = vmatpush3.bf16.msra.mxu1 %v8099_v56  ;;  %5256 = vmatprep.subr.bf16.mxu0 %v8102_v6  ;;  %v8209_v56 = vld [vmem:[#allocation18 + $0x50] sm:$0xff]  }
 0x5b9   :  { %7051 = vmatprep.subr.bf16.mxu1 %v8103_v57  ;;  %v8163_v6 = vld [vmem:[#allocation15 + $0x5c0] ss:$28 sps:$4 sm:$0xff]  }
 0x5ba   :  { %v8168_v57 = vld [vmem:[#allocation15 + $0x5fc] ss:$28 sps:$4 sm:$0xff]  }
 0x5bb   :  { %5257 = vmatpush1.bf16.msra.mxu0 %v8100_v32  ;;  %v8210_v32 = vld [vmem:[#allocation18 + $0x10] sm:$0xff]  }
 0x5bc   :  { %7052 = vmatpush3.bf16.msra.mxu1 %v8104_v58  ;;  %5258 = vmatprep.subr.bf16.mxu0 %v8107_v59  ;;  %v8211_v58 = vld [vmem:[#allocation18 + $0x58] sm:$0xff]   ;;  %v8166_v59 = vld [vmem:[#allocation15 + $0x5f8] ss:$28 sps:$4 sm:$0xff]  }
 0x5bd   :  { %7053 = vmatprep.subr.bf16.mxu1 %v8108_v61  ;;  %v8171_v61 = vld [vmem:[#allocation15 + $0x634] ss:$28 sps:$4 sm:$0xff]  }
 0x5bf   :  { %5259 = vmatpush1.bf16.msra.mxu0 %v8105_v62  ;;  %v8212_v62 = vld [vmem:[#allocation18 + $0x18] sm:$0xff]  }
 0x5c0   :  { %7054 = vmatpush3.bf16.msra.mxu1 %v8109_v50  ;;  %5260 = vmatprep.subr.bf16.mxu0 %v8112_v38  ;;  %v8213_v50 = vld [vmem:[#allocation18 + $0x60] sm:$0xff]  }
 0x5c1   :  { %7055 = vmatprep.subr.bf16.mxu1 %v8113_v1  ;;  %v8169_v38 = vld [vmem:[#allocation15 + $0x630] ss:$28 sps:$4 sm:$0xff]  }
 0x5c2   :  { %v8174_v1 = vld [vmem:[#allocation15 + $0x66c] ss:$28 sps:$4 sm:$0xff]  }
 0x5c3   :  { %5261 = vmatpush1.bf16.msra.mxu0 %v8110_v3  ;;  %v8214_v3 = vld [vmem:[#allocation18 + $0x20] sm:$0xff]  }
 0x5c4   :  { %7056 = vmatpush3.bf16.msra.mxu1 %v8114_v30  ;;  %5262 = vmatprep.subr.bf16.mxu0 %v8117_v7  ;;  %v8215_v30 = vld [vmem:[#allocation18 + $0x68] sm:$0xff]   ;;  %v8172_v7 = vld [vmem:[#allocation15 + $0x668] ss:$28 sps:$4 sm:$0xff]  }
 0x5c5   :  { %7057 = vmatprep.subr.bf16.mxu1 %v8118_v9  ;;  %v8177_v9 = vld [vmem:[#allocation15 + $0x6a4] ss:$28 sps:$4 sm:$0xff]  }
 0x5c7   :  { %5263 = vmatpush1.bf16.msra.mxu0 %v8115_v10  ;;  %v8216_v10 = vld [vmem:[#allocation18 + $0x28] sm:$0xff]  }
 0x5c8   :  { %7058 = vmatpush3.bf16.msra.mxu1 %v8119_v11  ;;  %5264 = vmatprep.subr.bf16.mxu0 %v8122_v14  ;;  %v8217_v11 = vld [vmem:[#allocation18 + $0x70] sm:$0xff]  }
 0x5c9   :  { %7059 = vmatprep.subr.bf16.mxu1 %v8123_v15  ;;  %v8175_v14 = vld [vmem:[#allocation15 + $0x6a0] ss:$28 sps:$4 sm:$0xff]  }
 0x5ca   :  { %v8180_v15 = vld [vmem:[#allocation15 + $0x6dc] ss:$28 sps:$4 sm:$0xff]  }
 0x5cb   :  { %5265 = vmatpush1.bf16.msra.mxu0 %v8120_v16  ;;  %v8218_v16 = vld [vmem:[#allocation18 + $0x30] sm:$0xff]  }
 0x5cc   :  { %7060 = vmatpush3.bf16.msra.mxu1 %v8124_v17  ;;  %5275 = vmatprep.subr.bf16.mxu0 %v8127_v18  ;;  %v8219_v17 = vld [vmem:[#allocation18 + $0x78] sm:$0xff]   ;;  %v8178_v18 = vld [vmem:[#allocation15 + $0x6d8] ss:$28 sps:$4 sm:$0xff]  }
 0x5cd   :  { %7240 = vmatprep.subr.bf16.mxu1 %v8614_v33 }
 0x5ce   :  { %5267 = vmatmul.mubr.bf16.vlgmr.msra.gmra.mrb[32].mxu0 %v9025_v63  ;;  %v8136_v63 = vld [vmem:[#allocation15 + $0x788] ss:$28 sps:$4 sm:$0xff]  }
 0x5cf   :  { %5430 = vmatmul.mubr.bf16.vlgmr.msra.gmra.mrb[36].mxu1 %v9040_v26  ;;  %5276 = vmatpush1.bf16.msra.mxu0 %v8125_v19  ;;  %v8183_v19 = vld [vmem:[#allocation15 + $0x714] ss:$28 sps:$4 sm:$0xff]  }
 0x5d0   :  { %5307 = vmatprep.mubr.bf16.mxu0 %v9029_v2  ;;  %7241 = vmatpush3.bf16.msra.mxu1 %v8128_v13  ;;  %v8140_v2 = vld [vmem:[#allocation15 + $0x7c0] ss:$28 sps:$4 sm:$0xff]  }
 0x5d1   :  { %5277 = vmatprep.subr.bf16.mxu0 %v8131_v20  ;;  %7242 = vmatprep.subr.bf16.mxu1 %v8614_v33  ;;  %v8220_v13 = vld [vmem:[#allocation18 + $0x38] sm:$0xff]   ;;  %v8221_v20 = vld [vmem:[#allocation18 + $0xc0] sm:$0xff]  }
 0x5d2   :  { %7256 = vmatprep.mubr.msk.bf16.mxu1 %vm8615_vm0, %v8614_v33 }
 0x5d3   :  { %5278 = vmatpush1.bf16.msra.mxu0 %v8129_v21  ;;  %v8181_v21 = vld [vmem:[#allocation15 + $0x710] ss:$28 sps:$4 sm:$0xff]  }
 0x5d4   :  { %7243 = vmatpush3.bf16.msra.mxu1 %v8132_v60  ;;  %5279 = vmatprep.subr.bf16.mxu0 %v8135_v22  ;;  %v8186_v60 = vld [vmem:[#allocation15 + $0x74c] ss:$28 sps:$4 sm:$0xff]  }
 0x5d5   :  { %7244 = vmatprep.subr.bf16.mxu1 %v8614_v33  ;;  %v8184_v22 = vld [vmem:[#allocation15 + $0x748] ss:$28 sps:$4 sm:$0xff]  }
 0x5d7   :  { %5280 = vmatpush1.bf16.msra.mxu0 %v8133_v23  ;;  %v8189_v23 = vld [vmem:[#allocation15 + $0x784] ss:$28 sps:$4 sm:$0xff]  }
 0x5d8   :  { %7245 = vmatpush3.bf16.msra.mxu1 %v8136_v63  ;;  %5281 = vmatprep.subr.bf16.mxu0 %v8139_v24  ;;  %v8187_v63 = vld [vmem:[#allocation15 + $0x780] ss:$28 sps:$4 sm:$0xff]  }
 0x5d9   :  { %7246 = vmatprep.subr.bf16.mxu1 %v8614_v33  ;;  %v8192_v24 = vld [vmem:[#allocation15 + $0x7bc] ss:$28 sps:$4 sm:$0xff]  }
 0x5db   :  { %5282 = vmatpush1.bf16.msra.mxu0 %v8137_v45  ;;  %v8190_v45 = vld [vmem:[#allocation15 + $0x7b8] ss:$28 sps:$4 sm:$0xff]  }
 0x5dc   :  { %7247 = vmatpush3.bf16.msra.mxu1 %v8140_v2  ;;  %5283 = vmatprep.subr.bf16.mxu0 %v8143_v27  ;;  %v8195_v2 = vld [vmem:[#allocation15 + $0x7f4] ss:$28 sps:$4 sm:$0xff]  }
 0x5dd   :  { %7248 = vmatprep.subr.bf16.mxu1 %v8614_v33  ;;  %v8193_v27 = vld [vmem:[#allocation15 + $0x7f0] ss:$28 sps:$4 sm:$0xff]  }
 0x5df   :  { %5284 = vmatpush1.bf16.msra.mxu0 %v8141_v28  ;;  %v8198_v28 = vld [vmem:[#allocation15 + $0x82c] ss:$28 sps:$4 sm:$0xff]  }
 0x5e0   :  { %7249 = vmatpush3.bf16.msra.mxu1 %v8144_v29  ;;  %5285 = vmatprep.subr.bf16.mxu0 %v8147_v5  ;;  %v8201_v29 = vld [vmem:[#allocation15 + $0x864] ss:$28 sps:$4 sm:$0xff]   ;;  %v8204_v5 = vld [vmem:[#allocation15 + $0x89c] ss:$28 sps:$4 sm:$0xff]  }
 0x5e1   :  { %7250 = vmatprep.subr.bf16.mxu1 %v8614_v33 }
 0x5e3   :  { %5286 = vmatpush1.bf16.msra.mxu0 %v8145_v25  ;;  %v8202_v25 = vld [vmem:[#allocation15 + $0x898] ss:$28 sps:$4 sm:$0xff]  }
 0x5e4   :  { %7251 = vmatpush3.bf16.msra.mxu1 %v8148_v31  ;;  %5287 = vmatprep.subr.bf16.mxu0 %v8151_v12  ;;  %v8245_v31 = vld [vmem:[#allocation18 + $0x140] sm:$0xff]  }
 0x5e5   :  { %7252 = vmatprep.subr.bf16.mxu1 %v8614_v33  ;;  %v8246_v12 = vld [vmem:[#allocation18 + $0x100] sm:$0xff]  }
 0x5e7   :  { %5288 = vmatpush1.bf16.msra.mxu0 %v8149_v34  ;;  %v8247_v34 = vld [vmem:[#allocation18 + $0x148] sm:$0xff]  }
 0x5e8   :  { %7253 = vmatpush3.bf16.msra.mxu1 %v8152_v35  ;;  %5289 = vmatprep.subr.bf16.mxu0 %v8155_v36  ;;  %v8248_v35 = vld [vmem:[#allocation18 + $0x108] sm:$0xff]   ;;  %v8249_v36 = vld [vmem:[#allocation18 + $0x150] sm:$0xff]  }
 0x5e9   :  { %7254 = vmatprep.subr.bf16.mxu1 %v8614_v33 }
 0x5eb   :  { %5290 = vmatpush1.bf16.msra.mxu0 %v8153_v37  ;;  %v8250_v37 = vld [vmem:[#allocation18 + $0x110] sm:$0xff]  }
 0x5ec   :  { %7255 = vmatpush3.bf16.msra.mxu1 %v8156_v39  ;;  %5291 = vmatprep.subr.bf16.mxu0 %v8159_v40  ;;  %v8251_v39 = vld [vmem:[#allocation18 + $0x158] sm:$0xff]  }
 0x5ed   :  { %7076 = vmatprep.subr.bf16.mxu1 %v8205_v41  ;;  %v8252_v40 = vld [vmem:[#allocation18 + $0x118] sm:$0xff]   ;;  %v8253_v41 = vld [vmem:[#allocation18 + $0x160] sm:$0xff]  }
 0x5ef   :  { %7257 = vmatmul.mubr.bf16.vlgmr.msra.gmra.mrb[40].mxu1 %v9049_v42  ;;  %5292 = vmatpush1.bf16.msra.mxu0 %v8157_v43  ;;  %v8254_v43 = vld [vmem:[#allocation18 + $0x120] sm:$0xff]  }
 0x5f0   :  { %5293 = vmatprep.subr.bf16.mxu0 %v8162_v46  ;;  %7077 = vmatpush3.bf16.msra.mxu1 %v8206_v47  ;;  %v9074_v46 = vld [vmem:[#allocation16] sm:$0xff]  ;;  %v8256_v47 = vld [vmem:[#allocation18 + $0x128] sm:$0xff]  }
 0x5f1   :  { %7078 = vmatprep.subr.bf16.mxu1 %v8207_v48  ;;  %v3516_v48 = vrot.slane %v9074_v46, %v8907_v51 }
 0x5f3   :  { %5294 = vmatpush1.bf16.msra.mxu0 %v8160_v53  ;;  %v3520_v53 = vrot.slane %v9074_v46, %v8910_v52  ;;  %v8222_v52 = vld [vmem:[#allocation18 + $0x80] sm:$0xff]  }
 0x5f4   :  { %5295 = vmatprep.subr.bf16.mxu0 %v8165_v54  ;;  %7079 = vmatpush3.bf16.msra.mxu1 %v8208_v55  ;;  %v3528_v54 = vrot.slane %v9074_v46, %v8917_v4 }
 0x5f5   :  { %7080 = vmatprep.subr.bf16.mxu1 %v8209_v56 }
 0x5f7   :  { %5296 = vmatpush1.bf16.msra.mxu0 %v8163_v6 }
 0x5f8   :  { %5297 = vmatprep.subr.bf16.mxu0 %v8168_v57  ;;  %7081 = vmatpush3.bf16.msra.mxu1 %v8210_v32 }
 0x5f9   :  { %7082 = vmatprep.subr.bf16.mxu1 %v8211_v58 }
 0x5fb   :  { %5298 = vmatpush1.bf16.msra.mxu0 %v8166_v59 }
 0x5fc   :  { %5299 = vmatprep.subr.bf16.mxu0 %v8171_v61  ;;  %7083 = vmatpush3.bf16.msra.mxu1 %v8212_v62 }
 0x5fd   :  { %7084 = vmatprep.subr.bf16.mxu1 %v8213_v50 }
 0x5ff   :  { %5300 = vmatpush1.bf16.msra.mxu0 %v8169_v38 }
 0x600   :  { %5301 = vmatprep.subr.bf16.mxu0 %v8174_v1  ;;  %7085 = vmatpush3.bf16.msra.mxu1 %v8214_v3 }
 0x601   :  { %7086 = vmatprep.subr.bf16.mxu1 %v8215_v30 }
 0x603   :  { %5302 = vmatpush1.bf16.msra.mxu0 %v8172_v7 }
 0x604   :  { %5303 = vmatprep.subr.bf16.mxu0 %v8177_v9  ;;  %7087 = vmatpush3.bf16.msra.mxu1 %v8216_v10  ;;  %v8223_v9 = vld [vmem:[#allocation18 + $0xc8] sm:$0xff]  }
 0x605   :  { %7088 = vmatprep.subr.bf16.mxu1 %v8217_v11  ;;  %v8224_v10 = vld [vmem:[#allocation18 + $0x88] sm:$0xff]   ;;  %v8225_v11 = vld [vmem:[#allocation18 + $0xd0] sm:$0xff]  }
 0x607   :  { %5304 = vmatpush1.bf16.msra.mxu0 %v8175_v14  ;;  %v8226_v14 = vld [vmem:[#allocation18 + $0x90] sm:$0xff]  }
 0x608   :  { %5305 = vmatprep.subr.bf16.mxu0 %v8180_v15  ;;  %7089 = vmatpush3.bf16.msra.mxu1 %v8218_v16  ;;  %v8227_v15 = vld [vmem:[#allocation18 + $0xd8] sm:$0xff]  }
 0x609   :  { %7090 = vmatprep.subr.bf16.mxu1 %v8219_v17  ;;  %v8228_v16 = vld [vmem:[#allocation18 + $0x98] sm:$0xff]   ;;  %v8229_v17 = vld [vmem:[#allocation18 + $0xe0] sm:$0xff]  }
 0x60b   :  { %5306 = vmatpush1.bf16.msra.mxu0 %v8178_v18  ;;  %v8230_v18 = vld [vmem:[#allocation18 + $0xa0] sm:$0xff]  }
 0x60c   :  { %5316 = vmatprep.subr.bf16.mxu0 %v8183_v19  ;;  %7091 = vmatpush3.bf16.msra.mxu1 %v8220_v13  ;;  %v8231_v19 = vld [vmem:[#allocation18 + $0xe8] sm:$0xff]  }
 0x60d   :  { %7098 = vmatprep.subr.bf16.mxu1 %v8221_v20  ;;  %v8232_v13 = vld [vmem:[#allocation18 + $0xa8] sm:$0xff]   ;;  %v3524_v20 = vrot.slane %v9074_v46, %v8938_v8 }
 0x60e   :  { %5308 = vmatmul.mubr.bf16.vlgmr.msra.gmra.mrb[32].mxu0 %v9040_v26  ;;  %v8196_v26 = vld [vmem:[#allocation15 + $0x828] ss:$28 sps:$4 sm:$0xff]  }
 0x60f   :  { %5317 = vmatpush1.bf16.msra.mxu0 %v8181_v21  ;;  %5348 = vmatprep.mubr.bf16.mxu0 %v8613_v0  ;;  %v8199_v0 = vld [vmem:[#allocation15 + $0x860] ss:$28 sps:$4 sm:$0xff]  }
 0x610   :  { %5318 = vmatprep.subr.bf16.mxu0 %v8186_v60  ;;  %v8233_v21 = vld [vmem:[#allocation18 + $0xf0] sm:$0xff]  }
 0x611   :  { %v8234_v60 = vld [vmem:[#allocation18 + $0xb0] sm:$0xff]  }
 0x613   :  { %5319 = vmatpush1.bf16.msra.mxu0 %v8184_v22 }
 0x614   :  { %5320 = vmatprep.subr.bf16.mxu0 %v8189_v23  ;;  %v8235_v23 = vld [vmem:[#allocation18 + $0xf8] sm:$0xff]  }
 0x617   :  { %5321 = vmatpush1.bf16.msra.mxu0 %v8187_v63  ;;  %v8257_v63 = vld [vmem:[#allocation18 + $0x170] sm:$0xff]  }
 0x618   :  { %5322 = vmatprep.subr.bf16.mxu0 %v8192_v24 }
 0x61b   :  { %5323 = vmatpush1.bf16.msra.mxu0 %v8190_v45  ;;  %v8258_v45 = vld [vmem:[#allocation18 + $0x130] sm:$0xff]  }
 0x61c   :  { %5324 = vmatprep.subr.bf16.mxu0 %v8195_v2 }
 0x61f   :  { %5325 = vmatpush1.bf16.msra.mxu0 %v8193_v27  ;;  %v8236_v27 = vld [vmem:[#allocation18 + $0xb8] sm:$0xff]  }
 0x620   :  { %5326 = vmatprep.subr.bf16.mxu0 %v8198_v28 }
 0x623   :  { %5327 = vmatpush1.bf16.msra.mxu0 %v8196_v26 }
 0x624   :  { %5328 = vmatprep.subr.bf16.mxu0 %v8201_v29 }
 0x627   :  { %5329 = vmatpush1.bf16.msra.mxu0 %v8199_v0  ;;  %v8259_v0 = vld [vmem:[#allocation18 + $0x178] sm:$0xff]  }
 0x628   :  { %5330 = vmatprep.subr.bf16.mxu0 %v8204_v5  ;;  %v8260_v5 = vld [vmem:[#allocation18 + $0x138] sm:$0xff]  }
 0x62b   :  { %5331 = vmatpush1.bf16.msra.mxu0 %v8202_v25  ;;  %v8237_v25 = vld [vmem:[#allocation18 + $0x180] sm:$0xff]  }
 0x62c   :  { %7120 = vmatprep.subr.bf16.mxu0 %v8245_v31 }
 0x62e   :  { %5349 = vmatmul.mubr.bf16.vlgmr.msra.gmra.mrb[32].mxu0 %v9049_v42  ;;  %v8255_v42 = vld [vmem:[#allocation18 + $0x168] sm:$0xff]  }
 0x62f   :  { %7121 = vmatpush3.bf16.msra.mxu0 %v8246_v12  ;;  %v8238_v12 = vld [vmem:[#allocation18 + $0x188] sm:$0xff]  }
 0x630   :  { %7122 = vmatprep.subr.bf16.mxu0 %v8247_v34  ;;  %v8239_v34 = vld [vmem:[#allocation18 + $0x190] sm:$0xff]  }
 0x633   :  { %7123 = vmatpush3.bf16.msra.mxu0 %v8248_v35  ;;  %v8240_v35 = vld [vmem:[#allocation18 + $0x198] sm:$0xff]  }
 0x634   :  { %7124 = vmatprep.subr.bf16.mxu0 %v8249_v36  ;;  %v8241_v36 = vld [vmem:[#allocation18 + $0x1a0] sm:$0xff]  }
 0x637   :  { %7125 = vmatpush3.bf16.msra.mxu0 %v8250_v37  ;;  %v8242_v37 = vld [vmem:[#allocation18 + $0x1a8] sm:$0xff]  }
 0x638   :  { %7126 = vmatprep.subr.bf16.mxu0 %v8251_v39  ;;  %v3539_v39 = vsub.s32 6, %v8902_v49 }
 0x63b   :  { %7127 = vmatpush3.bf16.msra.mxu0 %v8252_v40  ;;  %v8243_v40 = vld [vmem:[#allocation18 + $0x1b0] sm:$0xff]  }
 0x63c   :  { %7128 = vmatprep.subr.bf16.mxu0 %v8253_v41  ;;  %v3540_v41 = vrot.slane %v9074_v46, %v3539_v39 }
 0x63f   :  { %7129 = vmatpush3.bf16.msra.mxu0 %v8254_v43 }
 0x640   :  { %7130 = vmatprep.subr.bf16.mxu0 %v8255_v42 }
 0x643   :  { %7131 = vmatpush3.bf16.msra.mxu0 %v8256_v47  ;;  %v8244_v47 = vld [vmem:[#allocation18 + $0x1b8] sm:$0xff]  }
 0x644   :  { %7132 = vmatprep.subr.bf16.mxu0 %v8257_v63 }
 0x647   :  { %7133 = vmatpush3.bf16.msra.mxu0 %v8258_v45 }
 0x648   :  { %7134 = vmatprep.subr.bf16.mxu0 %v8259_v0 }
 0x64b   :  { %7135 = vmatpush3.bf16.msra.mxu0 %v8260_v5 }
 0x64c   :  { %7280 = vmatprep.subr.bf16.mxu0 %v8614_v33 }
 0x661   :  { %v5104_v55 = vpop.f32.mrb[28].mxu0  ;;  %v5227_v56 = vpop.f32.mrb[28].mxu1 }
 0x662   :  { %v7304_v6 = vadd.f32 %v5104_v55, %v3516_v48  ;;  %v5106_v57 = vpop.f32.mrb[29].mxu0  ;;  %v5229_v32 = vpop.f32.mrb[29].mxu1  ;;  %v7306_v22 = vadd.f32 %v5227_v56, %v3524_v20 }
 0x663   :  { %v7305_v58 = vadd.f32 %v5106_v57, %v3520_v53  ;;  %v7307_v59 = vadd.f32 %v5229_v32, %v3528_v54  ;;  %v5108_v61 = vpop.f32.mrb[30].mxu0  ;;  %v5231_v62 = vpop.f32.mrb[30].mxu1 }
 0x664   :  { %v5477_v50 = vmax.f32 %v7304_v6, 0.0  ;;  %v5109_v38 = vpop.f32.mrb[31].mxu0  ;;  %v5232_v1 = vpop.f32.mrb[31].mxu1  ;;  %v5479_v28 = vmax.f32 %v7306_v22, 0.0  ;;  %v8266_v22 = vld [vmem:[#allocation21 + $0x28] sm:$0xff]  }
 0x665   :  { %v5478_v51 = vmax.f32 %v7305_v58, 0.0  ;;  %v5480_v3 = vmax.f32 %v7307_v59, 0.0  ;;  %v3532_v38 = vrot.slane %v9074_v46, %v8950_v44  ;;  %v8262_v44 = vld [vmem:[#allocation21 + $0x8] sm:$0xff]  }
 0x666   :  { %v5484_v7 = vpack.c.bf16 %v5477_v50, %v5477_v50  ;;  %v5486_v31 = vpack.c.bf16 %v5479_v28, %v5479_v28  ;;  %v3535_v50 = vsub.s32 5, %v8902_v49  ;;  %v8261_v49 = vld [vmem:[#allocation21] sm:$0xff]   ;;  %v8267_v28 = vld [vmem:[#allocation21 + $0x30] sm:$0xff]  }
 0x667   :  { %v5485_v30 = vpack.c.bf16 %v5478_v51, %v5478_v51  ;;  %v5487_v4 = vpack.c.bf16 %v5480_v3, %v5480_v3 }
 0x668   :  { %v3536_v1 = vrot.slane %v9074_v46, %v3535_v50  ;;  %v8263_v46 = vld [vmem:[#allocation21 + $0x10] sm:$0xff]  }
 0x669   :  { %5978 = vmatprep.mubr.bf16.mxu1 %v5485_v30 }
 0x66a   :  { %5979 = vmatmul.mubr.bf16.vlgmr.msra.gmra.mrb[44].mxu1 %v5484_v7 }
 0x66b   :  { %7099 = vmatpush3.bf16.msra.mxu1 %v8222_v52  ;;  %6018 = vmatprep.mubr.bf16.mxu1 %v5487_v4 }
 0x66c   :  { %7100 = vmatprep.subr.bf16.mxu1 %v8223_v9 }
 0x66f   :  { %7101 = vmatpush3.bf16.msra.mxu1 %v8224_v10 }
 0x670   :  { %7102 = vmatprep.subr.bf16.mxu1 %v8225_v11 }
 0x673   :  { %7103 = vmatpush3.bf16.msra.mxu1 %v8226_v14 }
 0x674   :  { %7104 = vmatprep.subr.bf16.mxu1 %v8227_v15  ;;  %v8264_v15 = vld [vmem:[#allocation21 + $0x18] sm:$0xff]  }
 0x677   :  { %7105 = vmatpush3.bf16.msra.mxu1 %v8228_v16  ;;  %v8265_v16 = vld [vmem:[#allocation21 + $0x20] sm:$0xff]  }
 0x678   :  { %7106 = vmatprep.subr.bf16.mxu1 %v8229_v17 }
 0x67b   :  { %7107 = vmatpush3.bf16.msra.mxu1 %v8230_v18 }
 0x67c   :  { %7108 = vmatprep.subr.bf16.mxu1 %v8231_v19 }
 0x67f   :  { %7109 = vmatpush3.bf16.msra.mxu1 %v8232_v13 }
 0x680   :  { %7110 = vmatprep.subr.bf16.mxu1 %v8233_v21  ;;  %v6833_v21 = vld [vmem:[#allocation19] ss:$0 sm:$0xff] }
 0x682   :  { %v7039_v24 = vpop.f32.mrb[32].mxu1 }
 0x683   :  { %v7040_v2 = vpop.f32.mrb[33].mxu1  ;;  %7111 = vmatpush3.bf16.msra.mxu1 %v8234_v60 }
 0x684   :  { %v7041_v26 = vadd.f32 %v7040_v2, %v7039_v24  ;;  %v7042_v29 = vpop.f32.mrb[34].mxu1  ;;  %7112 = vmatprep.subr.bf16.mxu1 %v8235_v23 }
 0x685   :  { %v7043_v8 = vpop.f32.mrb[35].mxu1 }
 0x686   :  { %v5392_v48 = vadd.f32 %v7041_v26, %v3540_v41  ;;  %v8268_v26 = vld [vmem:[#allocation21 + $0x38] sm:$0xff]   ;;  %v6890_v41 = vld [vmem:[#allocation22] ss:$0 sm:$0xff] }
 0x687   :  { %7113 = vmatpush3.bf16.msra.mxu1 %v8236_v27 }
 0x688   :  { %7260 = vmatprep.subr.bf16.mxu1 %v8614_v33 }
 0x68a   :  { %6019 = vmatmul.mubr.bf16.vlgmr.msra.gmra.mrb[48].mxu1 %v5486_v31 }
 0x68b   :  { %7261 = vmatpush3.bf16.msra.mxu1 %v8237_v25  ;;  %7276 = vmatprep.mubr.msk.bf16.mxu1 %vm8615_vm0, %v8614_v33 }
 0x68c   :  { %7262 = vmatprep.subr.bf16.mxu1 %v8614_v33 }
 0x68f   :  { %7263 = vmatpush3.bf16.msra.mxu1 %v8238_v12 }
 0x690   :  { %7264 = vmatprep.subr.bf16.mxu1 %v8614_v33 }
 0x693   :  { %7265 = vmatpush3.bf16.msra.mxu1 %v8239_v34 }
 0x694   :  { %7266 = vmatprep.subr.bf16.mxu1 %v8614_v33 }
 0x697   :  { %7267 = vmatpush3.bf16.msra.mxu1 %v8240_v35 }
 0x698   :  { %7268 = vmatprep.subr.bf16.mxu1 %v8614_v33 }
 0x69b   :  { %7269 = vmatpush3.bf16.msra.mxu1 %v8241_v36 }
 0x69c   :  { %7270 = vmatprep.subr.bf16.mxu1 %v8614_v33 }
 0x69f   :  { %7271 = vmatpush3.bf16.msra.mxu1 %v8242_v37 }
 0x6a0   :  { %7272 = vmatprep.subr.bf16.mxu1 %v8614_v33 }
 0x6a2   :  { %v7061_v43 = vpop.f32.mrb[36].mxu1 }
 0x6a3   :  { %v7062_v42 = vpop.f32.mrb[37].mxu1  ;;  %7273 = vmatpush3.bf16.msra.mxu1 %v8243_v40 }
 0x6a4   :  { %v7063_v53 = vadd.f32 %v7062_v42, %v7061_v43  ;;  %v7064_v54 = vpop.f32.mrb[38].mxu1  ;;  %7274 = vmatprep.subr.bf16.mxu1 %v8614_v33 }
 0x6a5   :  { %v7065_v55 = vpop.f32.mrb[39].mxu1 }
 0x6a6   :  { %v5432_v56 = vadd.f32 %v7063_v53, %v5392_v48 }
 0x6a7   :  { %7275 = vmatpush3.bf16.msra.mxu1 %v8244_v47 }
 0x6c2   :  { %v5471_v6 = vpop.f32.mrb[40].mxu1 }
 0x6c3   :  { %v5472_v57 = vadd.f32 %v5471_v6, %v5432_v56  ;;  %v7258_v32 = vpop.f32.mrb[41].mxu1 }
 0x6c4   :  { %v5474_v58 = vpop.f32.mrb[42].mxu1 }
 0x6c5   :  { %v5483_v59 = vmax.f32 %v5472_v57, 0.0  ;;  %v7259_v61 = vpop.f32.mrb[43].mxu1 }
 0x6c7   :  { %v5490_v62 = vpack.c.bf16 %v5483_v59, %v5483_v59 }
 0x6c9   :  { %7277 = vmatmul.mubr.bf16.vlgmr.msra.gmra.mrb[52].mxu1 %v5490_v62 }
 0x701   :  { %v5350_v51 = vpop.f32.mrb[32].mxu0 }
 0x702   :  { %v7308_v3 = vadd.f32 %v5350_v51, %v3532_v38  ;;  %v5352_v30 = vpop.f32.mrb[33].mxu0 }
 0x703   :  { %v7309_v52 = vadd.f32 %v5352_v30, %v3536_v1  ;;  %v5354_v7 = vpop.f32.mrb[34].mxu0 }
 0x704   :  { %v5481_v9 = vmax.f32 %v7308_v3, 0.0  ;;  %v5355_v4 = vpop.f32.mrb[35].mxu0 }
 0x705   :  { %v5482_v10 = vmax.f32 %v7309_v52, 0.0 }
 0x706   :  { %v5488_v14 = vpack.c.bf16 %v5481_v9, %v5481_v9 }
 0x707   :  { %v5489_v11 = vpack.c.bf16 %v5482_v10, %v5482_v10 }
 0x709   :  { %6058 = vmatprep.mubr.bf16.mxu0 %v5489_v11 }
 0x70a   :  { %6059 = vmatmul.mubr.bf16.vlgmr.msra.gmra.mrb[36].mxu0 %v5488_v14 }
 0x70b   :  { %7296 = vmatprep.mubr.msk.bf16.mxu0 %vm8615_vm0, %v8614_v33  ;;  %7281 = vmatpush3.bf16.msra.mxu0 %v8261_v49 }
 0x70c   :  { %7282 = vmatprep.subr.bf16.mxu0 %v8614_v33 }
 0x70f   :  { %7283 = vmatpush3.bf16.msra.mxu0 %v8262_v44 }
 0x710   :  { %7284 = vmatprep.subr.bf16.mxu0 %v8614_v33 }
 0x713   :  { %7285 = vmatpush3.bf16.msra.mxu0 %v8263_v46 }
 0x714   :  { %7286 = vmatprep.subr.bf16.mxu0 %v8614_v33 }
 0x717   :  { %7287 = vmatpush3.bf16.msra.mxu0 %v8264_v15 }
 0x718   :  { %7288 = vmatprep.subr.bf16.mxu0 %v8614_v33 }
 0x71b   :  { %7289 = vmatpush3.bf16.msra.mxu0 %v8265_v16 }
 0x71c   :  { %7290 = vmatprep.subr.bf16.mxu0 %v8614_v33 }
 0x71f   :  { %7291 = vmatpush3.bf16.msra.mxu0 %v8266_v22 }
 0x720   :  { %7292 = vmatprep.subr.bf16.mxu0 %v8614_v33 }
 0x723   :  { %7293 = vmatpush3.bf16.msra.mxu0 %v8267_v28 }
 0x724   :  { %7294 = vmatprep.subr.bf16.mxu0 %v8614_v33 }
 0x727   :  { %7295 = vmatpush3.bf16.msra.mxu0 %v8268_v26 }
 0x73d   :  { %v7092_v17 = vpop.f32.mrb[44].mxu1 }
 0x73e   :  { %v7093_v18 = vpop.f32.mrb[45].mxu1 }
 0x73f   :  { %v7094_v19 = vadd.f32 %v7093_v18, %v7092_v17  ;;  %v7095_v13 = vpop.f32.mrb[46].mxu1 }
 0x740   :  { %v7096_v20 = vpop.f32.mrb[47].mxu1 }
 0x741   :  { %v5981_v63 = vadd.f32 %v7094_v19, %v6833_v21 }
 0x75d   :  { %v7114_v60 = vpop.f32.mrb[48].mxu1 }
 0x75e   :  { %v7115_v23 = vpop.f32.mrb[49].mxu1 }
 0x75f   :  { %v7116_v24 = vadd.f32 %v7115_v23, %v7114_v60  ;;  %v7117_v45 = vpop.f32.mrb[50].mxu1 }
 0x760   :  { %v7118_v2 = vpop.f32.mrb[51].mxu1 }
 0x761   :  { %v6021_v27 = vadd.f32 %v7116_v24, %v5981_v63 }
 0x79c   :  { %v6100_v29 = vpop.f32.mrb[52].mxu1 }
 0x79d   :  { %v7278_v8 = vpop.f32.mrb[53].mxu1 }
 0x79e   :  { %v6103_v0 = vpop.f32.mrb[54].mxu1 }
 0x79f   :  { %v7279_v5 = vpop.f32.mrb[55].mxu1 }
 0x7dd   :  { %v7136_v25 = vpop.f32.mrb[36].mxu0 }
 0x7de   :  { %v7137_v31 = vpop.f32.mrb[37].mxu0 }
 0x7df   :  { %v7138_v12 = vadd.f32 %v7137_v31, %v7136_v25  ;;  %v7139_v34 = vpop.f32.mrb[38].mxu0 }
 0x7e0   :  { %v7140_v35 = vpop.f32.mrb[39].mxu0 }
 0x7e1   :  { %v6061_v36 = vadd.f32 %v7138_v12, %v6021_v27 }
 0x7e3   :  { %v6101_v37 = vadd.f32 %v6100_v29, %v6061_v36 }
 0x7e5   :  { %v6106_v39 = vmax.f32 %v6101_v37, 0.0 }
 0x7e7   :  { %v6107_v40 = vpack.c.bf16 %v6106_v39, %v6106_v39 }
 0x7e9   :  { %7297 = vmatmul.mubr.bf16.vlgmr.msra.gmra.mrb[40].mxu0 %v6107_v40 }
 0x8bc   :  { %v6213_v43 = vpop.f32.mrb[40].mxu0 }
 0x8bd   :  { %v6214_v42 = vadd.f32 %v6890_v41, %v6213_v43  ;;  %v7298_v33 = vpop.f32.mrb[41].mxu0 }
 0x8be   :  { %v6216_v47 = vpop.f32.mrb[42].mxu0 }
 0x8bf   :  { %6219 = vst [vmem:[%s9128_s15] sm:$0xff] %v6214_v42  ;;  %v7299_v48 = vpop.f32.mrb[43].mxu0 }
 0x8c0   :  { %6224 = vsyncpa [#allocation3], 1 }
 0x8c1   :  { %6225 = vsyncpa [#allocation5], 1 }
 0x8c2   :  { %6226 = vsyncpa [#allocation8], 1 }
 0x8c3   :  { %6227 = vsyncpa [#allocation11], 1 }
 0x8c4   :  { %6228 = vsyncpa [#allocation14], 1 }
 0x8c5   :  { %6229 = vsyncpa [#allocation17], 1 }
 0x8c6   :  { %6230 = vsyncpa [#allocation20], 1 }
 0x8c7   :  { %6231 = vsyncpa [#allocation23], 1 }

</bundles_post_ra>
